<compile_context>
chip_gen: v7x
topology: tpu7x:2x2x1
jax: 0.10.0
libtpu: 0.0.40
codegen_flags: <defaults>
</compile_context>

<pallas_src>
import numpy as np
import jax
import jax.numpy as jnp
from jax.experimental import pallas as pl
from jax.experimental.pallas import tpu as pltpu  # noqa: F401  (TPU backend)

# ----------------------------------------------------------------------------
# db4 reconstruction low-pass filter (pywt.Wavelet('db4').filter_bank[2])
# ----------------------------------------------------------------------------
_DB4_DEC_LO = np.array(
    [-0.010597401784997278, 0.032883011666982945, 0.030841381835986965,
     -0.18703481171888114, -0.02798376941698385, 0.6308807679295904,
     0.7148465705525415, 0.23037781330885523], dtype=np.float32)
DB4_REC_LO = _DB4_DEC_LO[::-1].copy()          # filter_bank[2]
KSIZE = 8
PADL = 32                                      # extra zero lanes for conv1 shifts


def cmf(f_lo):
    """get_cmf: high-pass = flip(low) * (-1)**i (same 1D filter for H and V)."""
    k = np.arange(f_lo.shape[0])
    return (f_lo[::-1] * ((-1.0) ** k)).astype(np.float32)


DB4_HI = cmf(DB4_REC_LO)


# ----------------------------------------------------------------------------
# Pallas kernels
# ----------------------------------------------------------------------------
def make_conv1_kernel(ext_w, padl, n_lanes):
    """Fused conv3x3+BN+ReLU (x2) in transposed layout.

    a1_ref   : [Cin*9, n_lanes + 2*padl]   im2col of the input on the extended
                                           (H+2)x(W+2) grid, zero lane padding.
    mask_ref : [1,     n_lanes + 2*padl]   1 on interior extended positions.
    w1_ref   : [C1, Cin*9]  BN1-scaled stage-a weights.   b1_ref: [C1, 1]
    w2_ref   : [9, C2, C1]  BN2-scaled stage-b weights per 3x3 tap.
    b2_ref   : [C2, 1]
    o_ref    : [C2, n_lanes]  stage-b output on the extended grid
               (ring values are garbage and sliced away outside).
    """
    offsets = [(kh - 1) * ext_w + (kw - 1) for kh in range(3) for kw in range(3)]

    def conv1_kernel(a1_ref, mask_ref, w1_ref, b1_ref, w2_ref, b2_ref, o_ref):
        y1 = jnp.dot(w1_ref[...], a1_ref[...], preferred_element_type=jnp.float32)
        y1 = jnp.maximum(y1 + b1_ref[...], 0.0) * mask_ref[...]   # [C1, wide]
        acc = None
        for k, off in enumerate(offsets):
            s = padl + off
            z = y1[:, s:s + n_lanes]                              # shifted view
            term = jnp.dot(w2_ref[k], z, preferred_element_type=jnp.float32)
            acc = term if acc is None else acc + term
        o_ref[...] = jnp.maximum(acc + b2_ref[...], 0.0)

    return conv1_kernel


def level_kernel(x_ref, mh_ref, mv_ref, t_ref, o_ref):
    """One full WNBlock level (mode='Stable').

    x_ref  : [G*H, W]          level input rows (b, c, h), lanes = w
    mh_ref : [W, 2*Wo]         horizontal conv matrix, [lo | hi], pad folded in
    mv_ref : [G*2*Ho, G*H]     block-diagonal of the vertical conv matrix^T
    t_ref  : [G*H, 2*Wo]       tanh(horizontal pass)  -> (c | d)
    o_ref  : [G*2*Ho, 2*Wo]    tanh(vertical pass)    -> (ll,lh | hl,hh)
    """
    t = jnp.tanh(jnp.dot(x_ref[...], mh_ref[...],
                         preferred_element_type=jnp.float32))
    t_ref[...] = t
    o_ref[...] = jnp.tanh(jnp.dot(mv_ref[...], t,
                                  preferred_element_type=jnp.float32))


def linear_kernel(x_ref, w_ref, b_ref, o_ref):
    o_ref[...] = (jnp.dot(x_ref[...], w_ref[...],
                          preferred_element_type=jnp.float32) + b_ref[...])


# ----------------------------------------------------------------------------
# Pallas wrappers (whole-array blocks; everything fits VMEM comfortably)
# ----------------------------------------------------------------------------
def _spec(shape):
    return pl.BlockSpec(shape, lambda i: (0,) * len(shape))


def pallas_conv1(a1, mask, w1s, b1, w2k, b2, *, ext_w, n_lanes):
    c2 = w2k.shape[1]
    kern = make_conv1_kernel(ext_w, PADL, n_lanes)
    return pl.pallas_call(
        kern,
        grid=(1,),
        in_specs=[_spec(a1.shape), _spec(mask.shape), _spec(w1s.shape),
                  _spec(b1.shape), _spec(w2k.shape), _spec(b2.shape)],
        out_specs=_spec((c2, n_lanes)),
        out_shape=jax.ShapeDtypeStruct((c2, n_lanes), jnp.float32),
    )(a1, mask, w1s, b1, w2k, b2)


def pallas_level(x2, mh, mvbd):
    R, Wn = x2.shape
    two_no = mh.shape[1]
    RO = mvbd.shape[0]
    return pl.pallas_call(
        level_kernel,
        grid=(1,),
        in_specs=[_spec((R, Wn)), _spec((Wn, two_no)), _spec((RO, R))],
        out_specs=(_spec((R, two_no)), _spec((RO, two_no))),
        out_shape=(jax.ShapeDtypeStruct((R, two_no), jnp.float32),
                   jax.ShapeDtypeStruct((RO, two_no), jnp.float32)),
    )(x2, mh, mvbd)


def pallas_linear(x, w, b):
    M, K = x.shape
    N = w.shape[1]
    return pl.pallas_call(
        linear_kernel,
        grid=(1,),
        in_specs=[_spec((M, K)), _spec((K, N)), _spec((1, N))],
        out_specs=_spec((M, N)),
        out_shape=jax.ShapeDtypeStruct((M, N), jnp.float32),
    )(x, w, b)


# ----------------------------------------------------------------------------
# Host-side constant builders (run once at setup, numpy)
# ----------------------------------------------------------------------------
def pad_index_map(n, padsize):
    """Source-index map of the module's custom symmetric `pad` for length n."""
    idx = list(range(n))
    i = padsize // n
    jpad = padsize % n
    for _ in range(i):
        idx = idx[:n][::-1] + idx + idx[-n:][::-1]
    if jpad == 0 and n % 2 == 0:
        return idx
    if n % 2 == 1:
        left = idx[:jpad][::-1]
        right = idx[-(jpad + 1):][::-1]
    else:
        left = idx[:jpad][::-1]
        right = idx[-jpad:][::-1]
    return left + idx + right


def build_level_matrices(n, groups):
    """Folded (pad + strided conv) matrices for one wavelet level.

    Returns:
      mh   [n, 2*n_out]            x @ mh == [lo | hi] horizontal DWT
      mvbd [groups*2*n_out, groups*n]  block-diag(mh.T) for the vertical pass
      n_out
    """
    srcmap = pad_index_map(n, KSIZE - 2)
    n_pad = len(srcmap)
    n_out = (n_pad - KSIZE) // 2 + 1
    m_lo = np.zeros((n, n_out), np.float32)
    m_hi = np.zeros((n, n_out), np.float32)
    for o in range(n_out):
        for k in range(KSIZE):
            m_lo[srcmap[2 * o + k], o] += DB4_REC_LO[k]
            m_hi[srcmap[2 * o + k], o] += DB4_HI[k]
    mh = np.concatenate([m_lo, m_hi], axis=1)           # [n, 2*n_out]
    mvt = mh.T                                          # [2*n_out, n]
    mvbd = np.zeros((groups * 2 * n_out, groups * n), np.float32)
    for g in range(groups):
        mvbd[g * 2 * n_out:(g + 1) * 2 * n_out, g * n:(g + 1) * n] = mvt
    return jnp.asarray(mh), jnp.asarray(mvbd), n_out


def build_conv_mask(batch, h, w):
    m = np.zeros((batch, h + 2, w + 2), np.float32)
    m[:, 1:h + 1, 1:w + 1] = 1.0
    m = m.reshape(1, batch * (h + 2) * (w + 2))
    return jnp.asarray(np.pad(m, ((0, 0), (PADL, PADL))))


# ----------------------------------------------------------------------------
# FLDQWN forward (mode='Stable', moreconv=False, bottleneck=False)
# ----------------------------------------------------------------------------
def fldqwn_forward(x, params, regu_details, regu_approx):
    B, Cin, H, W = x.shape
    He, We = H + 2, W + 2
    n_lanes = B * He * We

    # ---- conv1 (both conv3x3+BN+ReLU stages fused into one Pallas call) ----
    xp = jnp.pad(x, ((0, 0), (0, 0), (2, 2), (2, 2)))
    cols = [xp[:, :, kh:kh + He, kw:kw + We] for kh in range(3) for kw in range(3)]
    a1 = jnp.stack(cols, axis=2)                       # [B, Cin, 9, He, We]
    a1 = a1.transpose(1, 2, 0, 3, 4).reshape(Cin * 9, n_lanes)
    a1 = jnp.pad(a1, ((0, 0), (PADL, PADL)))           # zero lanes for shifts

    y2e = pallas_conv1(a1, params["conv_mask"], params["w1s"], params["b1"],
                       params["w2k"], params["b2"], ext_w=We, n_lanes=n_lanes)
    C = params["w2k"].shape[1]
    xcur = (y2e.reshape(C, B, He, We)[:, :, 1:H + 1, 1:W + 1]
            .transpose(1, 0, 2, 3))                    # [B, C, H, W]

    # ---- wavelet levels (one Pallas call per level) ----
    rs, det = [], []
    for lev in params["levels"]:
        mh, mvbd = lev["mh"], lev["mvbd"]
        Bc, Cc, Hc, Wc = xcur.shape
        assert Hc == Wc, "square feature maps expected"
        no = mh.shape[1] // 2
        x2 = xcur.reshape(Bc * Cc * Hc, Wc)
        t, o = pallas_level(x2, mh, mvbd)
        c = t[:, :no]                                  # horizontal low  (B*C*H, Wo)
        d = t[:, no:]                                  # horizontal high
        O = o.reshape(Bc, Cc, 2 * no, 2 * no)          # rows: vertical lo|hi
        ll = O[:, :, :no, :no]
        lh = O[:, :, no:, :no]
        hl = O[:, :, :no, no:]
        hh = O[:, :, no:, no:]

        r = None
        if regu_approx + regu_details != 0.0:
            rd = 0.0
            rc = 0.0
            if regu_details:
                rd = regu_details * jnp.mean(jnp.abs(d))
                rd = rd + regu_details * jnp.mean(jnp.abs(lh))
                rd = rd + regu_details * jnp.mean(jnp.abs(hh))
            if regu_approx:
                # matches the original module (incl. the duplicated c/ll term)
                rc = regu_approx * jnp.abs(jnp.mean(c) - jnp.mean(ll))
                rc = rc + regu_approx * jnp.abs(jnp.mean(ll) - jnp.mean(c))
                rc = rc + regu_approx * jnp.abs(jnp.mean(hl) - jnp.mean(d))
            if regu_approx == 0.0:
                r = rd
            elif regu_details == 0.0:
                r = rc
            else:
                r = rd + rc
        rs.append(r)

        # avgpool(concat([lh, hl, hh], 1)) == per-channel means, concatenated
        det.append(jnp.concatenate([jnp.mean(lh, axis=(2, 3)),
                                    jnp.mean(hl, axis=(2, 3)),
                                    jnp.mean(hh, axis=(2, 3))], axis=1))
        xcur = ll

    det.append(jnp.mean(xcur, axis=(2, 3)))            # avgpool of final approx
    feat = jnp.concatenate(det, axis=1)                # [B, out_planes]
    logits = pallas_linear(feat, params["fc_w"], params["fc_b"])
    return logits, rs


# ----------------------------------------------------------------------------
# Main: deterministic synthetic parameters + small input
# ----------------------------------------------------------------------------
if __name__ == "__main__":
    num_classes = 10
    first_in_channel = 3
    first_out_channel = 8
    num_level = 2
    regu_details = 0.1
    regu_approx = 0.1
    B, H, W = 2, 16, 16
    eps = 1e-5

    out_planes = first_out_channel + first_out_channel * 3 * num_level  # 56

    key = jax.random.PRNGKey(0)
    ks = jax.random.split(key, 16)

    def normal(k, shape, scale=0.1):
        return (scale * jax.random.normal(k, shape)).astype(jnp.float32)

    # raw (unfolded) parameters — same init scheme as before
    w_conv1a = normal(ks[0], (first_out_channel, first_in_channel, 3, 3), 0.2)
    bn1a_g = 1.0 + normal(ks[1], (first_out_channel,), 0.1)
    bn1a_b = normal(ks[2], (first_out_channel,), 0.1)
    bn1a_m = normal(ks[3], (first_out_channel,), 0.05)
    bn1a_v = 1.0 + jnp.abs(normal(ks[4], (first_out_channel,), 0.1))
    w_conv1b = normal(ks[5], (first_out_channel, first_out_channel, 3, 3), 0.2)
    bn1b_g = 1.0 + normal(ks[6], (first_out_channel,), 0.1)
    bn1b_b = normal(ks[7], (first_out_channel,), 0.1)
    bn1b_m = normal(ks[8], (first_out_channel,), 0.05)
    bn1b_v = 1.0 + jnp.abs(normal(ks[9], (first_out_channel,), 0.1))

    # fold BN (eval mode) into the conv weights once, host-side
    scale1 = bn1a_g / jnp.sqrt(bn1a_v + eps)
    w1s = w_conv1a.reshape(first_out_channel, first_in_channel * 9) * scale1[:, None]
    b1 = (bn1a_b - bn1a_m * scale1)[:, None]
    scale2 = bn1b_g / jnp.sqrt(bn1b_v + eps)
    w2_sc = w_conv1b * scale2[:, None, None, None]
    w2k = jnp.transpose(w2_sc, (2, 3, 0, 1)).reshape(
        9, first_out_channel, first_out_channel)
    b2 = (bn1b_b - bn1b_m * scale2)[:, None]

    # precompute per-level wavelet conv matrices (pad folded in, lo|hi fused)
    levels = []
    groups = B * first_out_channel
    s = H
    for _ in range(num_level):
        mh, mvbd, n_out = build_level_matrices(s, groups)
        levels.append({"mh": mh, "mvbd": mvbd})
        s = n_out

    params = {
        "conv_mask": build_conv_mask(B, H, W),
        "w1s": w1s, "b1": b1, "w2k": w2k, "b2": b2,
        "levels": levels,
        # final linear (stored pre-transposed: [out_planes, num_classes])
        "fc_w": normal(ks[10], (out_planes, num_classes), 0.1),
        "fc_b": normal(ks[11], (1, num_classes), 0.1),
    }

    x = normal(ks[12], (B, first_in_channel, H, W), 1.0)

    fwd = jax.jit(lambda xx, pp: fldqwn_forward(xx, pp, regu_details, regu_approx))
    logits, rs = fwd(x, params)
    jax.block_until_ready(logits)
    for r in rs:
        jax.block_until_ready(r)

    assert logits.shape == (B, num_classes)
    assert len(rs) == num_level
    print("KERNEL_OK")
</pallas_src>

<mosaic_0001>
module attributes {stable_mosaic.version = 11 : i64} {
  func.func @conv1_kernel(%arg0: i32, %arg1: memref<27x712xf32, #tpu.memory_space<vmem>>, %arg2: memref<1x712xf32, #tpu.memory_space<vmem>>, %arg3: memref<8x27xf32, #tpu.memory_space<vmem>>, %arg4: memref<8x1xf32, #tpu.memory_space<vmem>>, %arg5: memref<9x8x8xf32, #tpu.memory_space<vmem>>, %arg6: memref<8x1xf32, #tpu.memory_space<vmem>>, %arg7: memref<8x648xf32, #tpu.memory_space<vmem>>) attributes {dimension_semantics = [#tpu.dimension_semantics<arbitrary>], iteration_bounds = array<i64: 1>, scalar_prefetch = 0 : i64, scratch_operands = 0 : i64, tpu.core_type = #tpu.core_type<tc>, window_params = [{pipeline_mode = #tpu.pipeline_mode<synchronous>, transform_indices = @transform_0, window_bounds = array<i64: 27, 712>}, {pipeline_mode = #tpu.pipeline_mode<synchronous>, transform_indices = @transform_1, window_bounds = array<i64: 1, 712>}, {pipeline_mode = #tpu.pipeline_mode<synchronous>, transform_indices = @transform_2, window_bounds = array<i64: 8, 27>}, {pipeline_mode = #tpu.pipeline_mode<synchronous>, transform_indices = @transform_3, window_bounds = array<i64: 8, 1>}, {pipeline_mode = #tpu.pipeline_mode<synchronous>, transform_indices = @transform_4, window_bounds = array<i64: 9, 8, 8>}, {pipeline_mode = #tpu.pipeline_mode<synchronous>, transform_indices = @transform_5, window_bounds = array<i64: 8, 1>}, {pipeline_mode = #tpu.pipeline_mode<synchronous>, transform_indices = @transform_6, window_bounds = array<i64: 8, 648>}]} {
    %c0 = arith.constant 0 : index
    %c0_0 = arith.constant 0 : index
    %0 = vector.load %arg3[%c0, %c0_0] : memref<8x27xf32, #tpu.memory_space<vmem>>, vector<8x27xf32>
    %c0_1 = arith.constant 0 : index
    %c0_2 = arith.constant 0 : index
    %1 = vector.load %arg1[%c0_1, %c0_2] : memref<27x712xf32, #tpu.memory_space<vmem>>, vector<27x712xf32>
    %cst = arith.constant dense<0.000000e+00> : vector<8x712xf32>
    %2 = tpu.matmul %0, %1, %cst {dimension_numbers = #tpu.dot_dimension_numbers<[1], [0], [0], [1], [0, 0, 1, 1], [], []>} : vector<8x27xf32>, vector<27x712xf32>, vector<8x712xf32> -> vector<8x712xf32>
    %c0_3 = arith.constant 0 : index
    %c0_4 = arith.constant 0 : index
    %3 = vector.load %arg4[%c0_3, %c0_4] : memref<8x1xf32, #tpu.memory_space<vmem>>, vector<8x1xf32>
    %4 = vector.broadcast %3 : vector<8x1xf32> to vector<8x712xf32>
    %5 = arith.addf %2, %4 : vector<8x712xf32>
    %cst_5 = arith.constant 0.000000e+00 : f32
    %6 = vector.broadcast %cst_5 : f32 to vector<8x712xf32>
    %7 = arith.maximumf %5, %6 : vector<8x712xf32>
    %c0_6 = arith.constant 0 : index
    %c0_7 = arith.constant 0 : index
    %8 = vector.load %arg2[%c0_6, %c0_7] : memref<1x712xf32, #tpu.memory_space<vmem>>, vector<1x712xf32>
    %9 = vector.broadcast %8 : vector<1x712xf32> to vector<8x712xf32>
    %10 = arith.mulf %7, %9 : vector<8x712xf32>
    %11 = vector.extract_strided_slice %10 {offsets = [0, 13], sizes = [8, 648], strides = [1, 1]} : vector<8x712xf32> to vector<8x648xf32>
    %c0_8 = arith.constant 0 : index
    %c0_9 = arith.constant 0 : index
    %c0_10 = arith.constant 0 : index
    %12 = vector.load %arg5[%c0_8, %c0_9, %c0_10] : memref<9x8x8xf32, #tpu.memory_space<vmem>>, vector<1x8x8xf32>
    %13 = vector.shape_cast %12 : vector<1x8x8xf32> to vector<8x8xf32>
    %cst_11 = arith.constant dense<0.000000e+00> : vector<8x648xf32>
    %14 = tpu.matmul %13, %11, %cst_11 {dimension_numbers = #tpu.dot_dimension_numbers<[1], [0], [0], [1], [0, 0, 1, 1], [], []>} : vector<8x8xf32>, vector<8x648xf32>, vector<8x648xf32> -> vector<8x648xf32>
    %15 = vector.extract_strided_slice %10 {offsets = [0, 14], sizes = [8, 648], strides = [1, 1]} : vector<8x712xf32> to vector<8x648xf32>
    %c1 = arith.constant 1 : index
    %c0_12 = arith.constant 0 : index
    %c0_13 = arith.constant 0 : index
    %16 = vector.load %arg5[%c1, %c0_12, %c0_13] : memref<9x8x8xf32, #tpu.memory_space<vmem>>, vector<1x8x8xf32>
    %17 = vector.shape_cast %16 : vector<1x8x8xf32> to vector<8x8xf32>
    %cst_14 = arith.constant dense<0.000000e+00> : vector<8x648xf32>
    %18 = tpu.matmul %17, %15, %cst_14 {dimension_numbers = #tpu.dot_dimension_numbers<[1], [0], [0], [1], [0, 0, 1, 1], [], []>} : vector<8x8xf32>, vector<8x648xf32>, vector<8x648xf32> -> vector<8x648xf32>
    %19 = arith.addf %14, %18 : vector<8x648xf32>
    %20 = vector.extract_strided_slice %10 {offsets = [0, 15], sizes = [8, 648], strides = [1, 1]} : vector<8x712xf32> to vector<8x648xf32>
    %c2 = arith.constant 2 : index
    %c0_15 = arith.constant 0 : index
    %c0_16 = arith.constant 0 : index
    %21 = vector.load %arg5[%c2, %c0_15, %c0_16] : memref<9x8x8xf32, #tpu.memory_space<vmem>>, vector<1x8x8xf32>
    %22 = vector.shape_cast %21 : vector<1x8x8xf32> to vector<8x8xf32>
    %cst_17 = arith.constant dense<0.000000e+00> : vector<8x648xf32>
    %23 = tpu.matmul %22, %20, %cst_17 {dimension_numbers = #tpu.dot_dimension_numbers<[1], [0], [0], [1], [0, 0, 1, 1], [], []>} : vector<8x8xf32>, vector<8x648xf32>, vector<8x648xf32> -> vector<8x648xf32>
    %24 = arith.addf %19, %23 : vector<8x648xf32>
    %25 = vector.extract_strided_slice %10 {offsets = [0, 31], sizes = [8, 648], strides = [1, 1]} : vector<8x712xf32> to vector<8x648xf32>
    %c3 = arith.constant 3 : index
    %c0_18 = arith.constant 0 : index
    %c0_19 = arith.constant 0 : index
    %26 = vector.load %arg5[%c3, %c0_18, %c0_19] : memref<9x8x8xf32, #tpu.memory_space<vmem>>, vector<1x8x8xf32>
    %27 = vector.shape_cast %26 : vector<1x8x8xf32> to vector<8x8xf32>
    %cst_20 = arith.constant dense<0.000000e+00> : vector<8x648xf32>
    %28 = tpu.matmul %27, %25, %cst_20 {dimension_numbers = #tpu.dot_dimension_numbers<[1], [0], [0], [1], [0, 0, 1, 1], [], []>} : vector<8x8xf32>, vector<8x648xf32>, vector<8x648xf32> -> vector<8x648xf32>
    %29 = arith.addf %24, %28 : vector<8x648xf32>
    %30 = vector.extract_strided_slice %10 {offsets = [0, 32], sizes = [8, 648], strides = [1, 1]} : vector<8x712xf32> to vector<8x648xf32>
    %c4 = arith.constant 4 : index
    %c0_21 = arith.constant 0 : index
    %c0_22 = arith.constant 0 : index
    %31 = vector.load %arg5[%c4, %c0_21, %c0_22] : memref<9x8x8xf32, #tpu.memory_space<vmem>>, vector<1x8x8xf32>
    %32 = vector.shape_cast %31 : vector<1x8x8xf32> to vector<8x8xf32>
    %cst_23 = arith.constant dense<0.000000e+00> : vector<8x648xf32>
    %33 = tpu.matmul %32, %30, %cst_23 {dimension_numbers = #tpu.dot_dimension_numbers<[1], [0], [0], [1], [0, 0, 1, 1], [], []>} : vector<8x8xf32>, vector<8x648xf32>, vector<8x648xf32> -> vector<8x648xf32>
    %34 = arith.addf %29, %33 : vector<8x648xf32>
    %35 = vector.extract_strided_slice %10 {offsets = [0, 33], sizes = [8, 648], strides = [1, 1]} : vector<8x712xf32> to vector<8x648xf32>
    %c5 = arith.constant 5 : index
    %c0_24 = arith.constant 0 : index
    %c0_25 = arith.constant 0 : index
    %36 = vector.load %arg5[%c5, %c0_24, %c0_25] : memref<9x8x8xf32, #tpu.memory_space<vmem>>, vector<1x8x8xf32>
    %37 = vector.shape_cast %36 : vector<1x8x8xf32> to vector<8x8xf32>
    %cst_26 = arith.constant dense<0.000000e+00> : vector<8x648xf32>
    %38 = tpu.matmul %37, %35, %cst_26 {dimension_numbers = #tpu.dot_dimension_numbers<[1], [0], [0], [1], [0, 0, 1, 1], [], []>} : vector<8x8xf32>, vector<8x648xf32>, vector<8x648xf32> -> vector<8x648xf32>
    %39 = arith.addf %34, %38 : vector<8x648xf32>
    %40 = vector.extract_strided_slice %10 {offsets = [0, 49], sizes = [8, 648], strides = [1, 1]} : vector<8x712xf32> to vector<8x648xf32>
    %c6 = arith.constant 6 : index
    %c0_27 = arith.constant 0 : index
    %c0_28 = arith.constant 0 : index
    %41 = vector.load %arg5[%c6, %c0_27, %c0_28] : memref<9x8x8xf32, #tpu.memory_space<vmem>>, vector<1x8x8xf32>
    %42 = vector.shape_cast %41 : vector<1x8x8xf32> to vector<8x8xf32>
    %cst_29 = arith.constant dense<0.000000e+00> : vector<8x648xf32>
    %43 = tpu.matmul %42, %40, %cst_29 {dimension_numbers = #tpu.dot_dimension_numbers<[1], [0], [0], [1], [0, 0, 1, 1], [], []>} : vector<8x8xf32>, vector<8x648xf32>, vector<8x648xf32> -> vector<8x648xf32>
    %44 = arith.addf %39, %43 : vector<8x648xf32>
    %45 = vector.extract_strided_slice %10 {offsets = [0, 50], sizes = [8, 648], strides = [1, 1]} : vector<8x712xf32> to vector<8x648xf32>
    %c7 = arith.constant 7 : index
    %c0_30 = arith.constant 0 : index
    %c0_31 = arith.constant 0 : index
    %46 = vector.load %arg5[%c7, %c0_30, %c0_31] : memref<9x8x8xf32, #tpu.memory_space<vmem>>, vector<1x8x8xf32>
    %47 = vector.shape_cast %46 : vector<1x8x8xf32> to vector<8x8xf32>
    %cst_32 = arith.constant dense<0.000000e+00> : vector<8x648xf32>
    %48 = tpu.matmul %47, %45, %cst_32 {dimension_numbers = #tpu.dot_dimension_numbers<[1], [0], [0], [1], [0, 0, 1, 1], [], []>} : vector<8x8xf32>, vector<8x648xf32>, vector<8x648xf32> -> vector<8x648xf32>
    %49 = arith.addf %44, %48 : vector<8x648xf32>
    %50 = vector.extract_strided_slice %10 {offsets = [0, 51], sizes = [8, 648], strides = [1, 1]} : vector<8x712xf32> to vector<8x648xf32>
    %c8 = arith.constant 8 : index
    %c0_33 = arith.constant 0 : index
    %c0_34 = arith.constant 0 : index
    %51 = vector.load %arg5[%c8, %c0_33, %c0_34] : memref<9x8x8xf32, #tpu.memory_space<vmem>>, vector<1x8x8xf32>
    %52 = vector.shape_cast %51 : vector<1x8x8xf32> to vector<8x8xf32>
    %cst_35 = arith.constant dense<0.000000e+00> : vector<8x648xf32>
    %53 = tpu.matmul %52, %50, %cst_35 {dimension_numbers = #tpu.dot_dimension_numbers<[1], [0], [0], [1], [0, 0, 1, 1], [], []>} : vector<8x8xf32>, vector<8x648xf32>, vector<8x648xf32> -> vector<8x648xf32>
    %54 = arith.addf %49, %53 : vector<8x648xf32>
    %c0_36 = arith.constant 0 : index
    %c0_37 = arith.constant 0 : index
    %55 = vector.load %arg6[%c0_36, %c0_37] : memref<8x1xf32, #tpu.memory_space<vmem>>, vector<8x1xf32>
    %56 = vector.broadcast %55 : vector<8x1xf32> to vector<8x648xf32>
    %57 = arith.addf %54, %56 : vector<8x648xf32>
    %cst_38 = arith.constant 0.000000e+00 : f32
    %58 = vector.broadcast %cst_38 : f32 to vector<8x648xf32>
    %59 = arith.maximumf %57, %58 : vector<8x648xf32>
    %c0_39 = arith.constant 0 : index
    %c0_40 = arith.constant 0 : index
    %60 = vector.load %arg7[%c0_39, %c0_40] : memref<8x648xf32, #tpu.memory_space<vmem>>, vector<8x648xf32>
    tpu.vector_store %arg7[%c0_39, %c0_40], %59 {strides = array<i32>} : memref<8x648xf32, #tpu.memory_space<vmem>>, vector<8x648xf32>,
    return
  }
  func.func @transform_0(%arg0: i32) -> (i32, i32) {
    %c0_i32 = arith.constant 0 : i32
    %c0_i32_0 = arith.constant 0 : i32
    %c0_i32_1 = arith.constant 0 : i32
    return %c0_i32, %c0_i32_0 : i32, i32
  }
  func.func @transform_1(%arg0: i32) -> (i32, i32) {
    %c0_i32 = arith.constant 0 : i32
    %c0_i32_0 = arith.constant 0 : i32
    %c0_i32_1 = arith.constant 0 : i32
    return %c0_i32, %c0_i32_0 : i32, i32
  }
  func.func @transform_2(%arg0: i32) -> (i32, i32) {
    %c0_i32 = arith.constant 0 : i32
    %c0_i32_0 = arith.constant 0 : i32
    %c0_i32_1 = arith.constant 0 : i32
    return %c0_i32, %c0_i32_0 : i32, i32
  }
  func.func @transform_3(%arg0: i32) -> (i32, i32) {
    %c0_i32 = arith.constant 0 : i32
    %c0_i32_0 = arith.constant 0 : i32
    %c0_i32_1 = arith.constant 0 : i32
    return %c0_i32, %c0_i32_0 : i32, i32
  }
  func.func @transform_4(%arg0: i32) -> (i32, i32, i32) {
    %c0_i32 = arith.constant 0 : i32
    %c0_i32_0 = arith.constant 0 : i32
    %c0_i32_1 = arith.constant 0 : i32
    %c0_i32_2 = arith.constant 0 : i32
    return %c0_i32, %c0_i32_0, %c0_i32_1 : i32, i32, i32
  }
  func.func @transform_5(%arg0: i32) -> (i32, i32) {
    %c0_i32 = arith.constant 0 : i32
    %c0_i32_0 = arith.constant 0 : i32
    %c0_i32_1 = arith.constant 0 : i32
    return %c0_i32, %c0_i32_0 : i32, i32
  }
  func.func @transform_6(%arg0: i32) -> (i32, i32) {
    %c0_i32 = arith.constant 0 : i32
    %c0_i32_0 = arith.constant 0 : i32
    %c0_i32_1 = arith.constant 0 : i32
    return %c0_i32, %c0_i32_0 : i32, i32
  }
}

module attributes {stable_mosaic.version = 11 : i64} {
  func.func @level_kernel(%arg0: i32, %arg1: memref<256x16xf32, #tpu.memory_space<vmem>>, %arg2: memref<16x22xf32, #tpu.memory_space<vmem>>, %arg3: memref<352x256xf32, #tpu.memory_space<vmem>>, %arg4: memref<256x22xf32, #tpu.memory_space<vmem>>, %arg5: memref<352x22xf32, #tpu.memory_space<vmem>>) attributes {dimension_semantics = [#tpu.dimension_semantics<arbitrary>], iteration_bounds = array<i64: 1>, scalar_prefetch = 0 : i64, scratch_operands = 0 : i64, tpu.core_type = #tpu.core_type<tc>, window_params = [{pipeline_mode = #tpu.pipeline_mode<synchronous>, transform_indices = @transform_0, window_bounds = array<i64: 256, 16>}, {pipeline_mode = #tpu.pipeline_mode<synchronous>, transform_indices = @transform_1, window_bounds = array<i64: 16, 22>}, {pipeline_mode = #tpu.pipeline_mode<synchronous>, transform_indices = @transform_2, window_bounds = array<i64: 352, 256>}, {pipeline_mode = #tpu.pipeline_mode<synchronous>, transform_indices = @transform_3, window_bounds = array<i64: 256, 22>}, {pipeline_mode = #tpu.pipeline_mode<synchronous>, transform_indices = @transform_4, window_bounds = array<i64: 352, 22>}]} {
    %c0 = arith.constant 0 : index
    %c0_0 = arith.constant 0 : index
    %0 = vector.load %arg1[%c0, %c0_0] : memref<256x16xf32, #tpu.memory_space<vmem>>, vector<256x16xf32>
    %c0_1 = arith.constant 0 : index
    %c0_2 = arith.constant 0 : index
    %1 = vector.load %arg2[%c0_1, %c0_2] : memref<16x22xf32, #tpu.memory_space<vmem>>, vector<16x22xf32>
    %cst = arith.constant dense<0.000000e+00> : vector<256x22xf32>
    %2 = tpu.matmul %0, %1, %cst {dimension_numbers = #tpu.dot_dimension_numbers<[1], [0], [0], [1], [0, 0, 1, 1], [], []>} : vector<256x16xf32>, vector<16x22xf32>, vector<256x22xf32> -> vector<256x22xf32>
    %3 = math.tanh %2 : vector<256x22xf32>
    %c0_3 = arith.constant 0 : index
    %c0_4 = arith.constant 0 : index
    %4 = vector.load %arg4[%c0_3, %c0_4] : memref<256x22xf32, #tpu.memory_space<vmem>>, vector<256x22xf32>
    tpu.vector_store %arg4[%c0_3, %c0_4], %3 {strides = array<i32>} : memref<256x22xf32, #tpu.memory_space<vmem>>, vector<256x22xf32>,
    %c0_5 = arith.constant 0 : index
    %c0_6 = arith.constant 0 : index
    %5 = vector.load %arg3[%c0_5, %c0_6] : memref<352x256xf32, #tpu.memory_space<vmem>>, vector<352x256xf32>
    %cst_7 = arith.constant dense<0.000000e+00> : vector<352x22xf32>
    %6 = tpu.matmul %5, %3, %cst_7 {dimension_numbers = #tpu.dot_dimension_numbers<[1], [0], [0], [1], [0, 0, 1, 1], [], []>} : vector<352x256xf32>, vector<256x22xf32>, vector<352x22xf32> -> vector<352x22xf32>
    %7 = math.tanh %6 : vector<352x22xf32>
    %c0_8 = arith.constant 0 : index
    %c0_9 = arith.constant 0 : index
    %8 = vector.load %arg5[%c0_8, %c0_9] : memref<352x22xf32, #tpu.memory_space<vmem>>, vector<352x22xf32>
    tpu.vector_store %arg5[%c0_8, %c0_9], %7 {strides = array<i32>} : memref<352x22xf32, #tpu.memory_space<vmem>>, vector<352x22xf32>,
    return
  }
  func.func @transform_0(%arg0: i32) -> (i32, i32) {
    %c0_i32 = arith.constant 0 : i32
    %c0_i32_0 = arith.constant 0 : i32
    %c0_i32_1 = arith.constant 0 : i32
    return %c0_i32, %c0_i32_0 : i32, i32
  }
  func.func @transform_1(%arg0: i32) -> (i32, i32) {
    %c0_i32 = arith.constant 0 : i32
    %c0_i32_0 = arith.constant 0 : i32
    %c0_i32_1 = arith.constant 0 : i32
    return %c0_i32, %c0_i32_0 : i32, i32
  }
  func.func @transform_2(%arg0: i32) -> (i32, i32) {
    %c0_i32 = arith.constant 0 : i32
    %c0_i32_0 = arith.constant 0 : i32
    %c0_i32_1 = arith.constant 0 : i32
    return %c0_i32, %c0_i32_0 : i32, i32
  }
  func.func @transform_3(%arg0: i32) -> (i32, i32) {
    %c0_i32 = arith.constant 0 : i32
    %c0_i32_0 = arith.constant 0 : i32
    %c0_i32_1 = arith.constant 0 : i32
    return %c0_i32, %c0_i32_0 : i32, i32
  }
  func.func @transform_4(%arg0: i32) -> (i32, i32) {
    %c0_i32 = arith.constant 0 : i32
    %c0_i32_0 = arith.constant 0 : i32
    %c0_i32_1 = arith.constant 0 : i32
    return %c0_i32, %c0_i32_0 : i32, i32
  }
}

module attributes {stable_mosaic.version = 11 : i64} {
  func.func @level_kernel(%arg0: i32, %arg1: memref<176x11xf32, #tpu.memory_space<vmem>>, %arg2: memref<11x18xf32, #tpu.memory_space<vmem>>, %arg3: memref<288x176xf32, #tpu.memory_space<vmem>>, %arg4: memref<176x18xf32, #tpu.memory_space<vmem>>, %arg5: memref<288x18xf32, #tpu.memory_space<vmem>>) attributes {dimension_semantics = [#tpu.dimension_semantics<arbitrary>], iteration_bounds = array<i64: 1>, scalar_prefetch = 0 : i64, scratch_operands = 0 : i64, tpu.core_type = #tpu.core_type<tc>, window_params = [{pipeline_mode = #tpu.pipeline_mode<synchronous>, transform_indices = @transform_0, window_bounds = array<i64: 176, 11>}, {pipeline_mode = #tpu.pipeline_mode<synchronous>, transform_indices = @transform_1, window_bounds = array<i64: 11, 18>}, {pipeline_mode = #tpu.pipeline_mode<synchronous>, transform_indices = @transform_2, window_bounds = array<i64: 288, 176>}, {pipeline_mode = #tpu.pipeline_mode<synchronous>, transform_indices = @transform_3, window_bounds = array<i64: 176, 18>}, {pipeline_mode = #tpu.pipeline_mode<synchronous>, transform_indices = @transform_4, window_bounds = array<i64: 288, 18>}]} {
    %c0 = arith.constant 0 : index
    %c0_0 = arith.constant 0 : index
    %0 = vector.load %arg1[%c0, %c0_0] : memref<176x11xf32, #tpu.memory_space<vmem>>, vector<176x11xf32>
    %c0_1 = arith.constant 0 : index
    %c0_2 = arith.constant 0 : index
    %1 = vector.load %arg2[%c0_1, %c0_2] : memref<11x18xf32, #tpu.memory_space<vmem>>, vector<11x18xf32>
    %cst = arith.constant dense<0.000000e+00> : vector<176x18xf32>
    %2 = tpu.matmul %0, %1, %cst {dimension_numbers = #tpu.dot_dimension_numbers<[1], [0], [0], [1], [0, 0, 1, 1], [], []>} : vector<176x11xf32>, vector<11x18xf32>, vector<176x18xf32> -> vector<176x18xf32>
    %3 = math.tanh %2 : vector<176x18xf32>
    %c0_3 = arith.constant 0 : index
    %c0_4 = arith.constant 0 : index
    %4 = vector.load %arg4[%c0_3, %c0_4] : memref<176x18xf32, #tpu.memory_space<vmem>>, vector<176x18xf32>
    tpu.vector_store %arg4[%c0_3, %c0_4], %3 {strides = array<i32>} : memref<176x18xf32, #tpu.memory_space<vmem>>, vector<176x18xf32>,
    %c0_5 = arith.constant 0 : index
    %c0_6 = arith.constant 0 : index
    %5 = vector.load %arg3[%c0_5, %c0_6] : memref<288x176xf32, #tpu.memory_space<vmem>>, vector<288x176xf32>
    %cst_7 = arith.constant dense<0.000000e+00> : vector<288x18xf32>
    %6 = tpu.matmul %5, %3, %cst_7 {dimension_numbers = #tpu.dot_dimension_numbers<[1], [0], [0], [1], [0, 0, 1, 1], [], []>} : vector<288x176xf32>, vector<176x18xf32>, vector<288x18xf32> -> vector<288x18xf32>
    %7 = math.tanh %6 : vector<288x18xf32>
    %c0_8 = arith.constant 0 : index
    %c0_9 = arith.constant 0 : index
    %8 = vector.load %arg5[%c0_8, %c0_9] : memref<288x18xf32, #tpu.memory_space<vmem>>, vector<288x18xf32>
    tpu.vector_store %arg5[%c0_8, %c0_9], %7 {strides = array<i32>} : memref<288x18xf32, #tpu.memory_space<vmem>>, vector<288x18xf32>,
    return
  }
  func.func @transform_0(%arg0: i32) -> (i32, i32) {
    %c0_i32 = arith.constant 0 : i32
    %c0_i32_0 = arith.constant 0 : i32
    %c0_i32_1 = arith.constant 0 : i32
    return %c0_i32, %c0_i32_0 : i32, i32
  }
  func.func @transform_1(%arg0: i32) -> (i32, i32) {
    %c0_i32 = arith.constant 0 : i32
    %c0_i32_0 = arith.constant 0 : i32
    %c0_i32_1 = arith.constant 0 : i32
    return %c0_i32, %c0_i32_0 : i32, i32
  }
  func.func @transform_2(%arg0: i32) -> (i32, i32) {
    %c0_i32 = arith.constant 0 : i32
    %c0_i32_0 = arith.constant 0 : i32
    %c0_i32_1 = arith.constant 0 : i32
    return %c0_i32, %c0_i32_0 : i32, i32
  }
  func.func @transform_3(%arg0: i32) -> (i32, i32) {
    %c0_i32 = arith.constant 0 : i32
    %c0_i32_0 = arith.constant 0 : i32
    %c0_i32_1 = arith.constant 0 : i32
    return %c0_i32, %c0_i32_0 : i32, i32
  }
  func.func @transform_4(%arg0: i32) -> (i32, i32) {
    %c0_i32 = arith.constant 0 : i32
    %c0_i32_0 = arith.constant 0 : i32
    %c0_i32_1 = arith.constant 0 : i32
    return %c0_i32, %c0_i32_0 : i32, i32
  }
}

module attributes {stable_mosaic.version = 11 : i64} {
  func.func @linear_kernel(%arg0: i32, %arg1: memref<2x56xf32, #tpu.memory_space<vmem>>, %arg2: memref<56x10xf32, #tpu.memory_space<vmem>>, %arg3: memref<1x10xf32, #tpu.memory_space<vmem>>, %arg4: memref<2x10xf32, #tpu.memory_space<vmem>>) attributes {dimension_semantics = [#tpu.dimension_semantics<arbitrary>], iteration_bounds = array<i64: 1>, scalar_prefetch = 0 : i64, scratch_operands = 0 : i64, tpu.core_type = #tpu.core_type<tc>, window_params = [{pipeline_mode = #tpu.pipeline_mode<synchronous>, transform_indices = @transform_0, window_bounds = array<i64: 2, 56>}, {pipeline_mode = #tpu.pipeline_mode<synchronous>, transform_indices = @transform_1, window_bounds = array<i64: 56, 10>}, {pipeline_mode = #tpu.pipeline_mode<synchronous>, transform_indices = @transform_2, window_bounds = array<i64: 1, 10>}, {pipeline_mode = #tpu.pipeline_mode<synchronous>, transform_indices = @transform_3, window_bounds = array<i64: 2, 10>}]} {
    %c0 = arith.constant 0 : index
    %c0_0 = arith.constant 0 : index
    %0 = vector.load %arg1[%c0, %c0_0] : memref<2x56xf32, #tpu.memory_space<vmem>>, vector<2x56xf32>
    %c0_1 = arith.constant 0 : index
    %c0_2 = arith.constant 0 : index
    %1 = vector.load %arg2[%c0_1, %c0_2] : memref<56x10xf32, #tpu.memory_space<vmem>>, vector<56x10xf32>
    %cst = arith.constant dense<0.000000e+00> : vector<2x10xf32>
    %2 = tpu.matmul %0, %1, %cst {dimension_numbers = #tpu.dot_dimension_numbers<[1], [0], [0], [1], [0, 0, 1, 1], [], []>} : vector<2x56xf32>, vector<56x10xf32>, vector<2x10xf32> -> vector<2x10xf32>
    %c0_3 = arith.constant 0 : index
    %c0_4 = arith.constant 0 : index
    %3 = vector.load %arg3[%c0_3, %c0_4] : memref<1x10xf32, #tpu.memory_space<vmem>>, vector<1x10xf32>
    %4 = vector.broadcast %3 : vector<1x10xf32> to vector<2x10xf32>
    %5 = arith.addf %2, %4 : vector<2x10xf32>
    %c0_5 = arith.constant 0 : index
    %c0_6 = arith.constant 0 : index
    %6 = vector.load %arg4[%c0_5, %c0_6] : memref<2x10xf32, #tpu.memory_space<vmem>>, vector<2x10xf32>
    tpu.vector_store %arg4[%c0_5, %c0_6], %5 {strides = array<i32>} : memref<2x10xf32, #tpu.memory_space<vmem>>, vector<2x10xf32>,
    return
  }
  func.func @transform_0(%arg0: i32) -> (i32, i32) {
    %c0_i32 = arith.constant 0 : i32
    %c0_i32_0 = arith.constant 0 : i32
    %c0_i32_1 = arith.constant 0 : i32
    return %c0_i32, %c0_i32_0 : i32, i32
  }
  func.func @transform_1(%arg0: i32) -> (i32, i32) {
    %c0_i32 = arith.constant 0 : i32
    %c0_i32_0 = arith.constant 0 : i32
    %c0_i32_1 = arith.constant 0 : i32
    return %c0_i32, %c0_i32_0 : i32, i32
  }
  func.func @transform_2(%arg0: i32) -> (i32, i32) {
    %c0_i32 = arith.constant 0 : i32
    %c0_i32_0 = arith.constant 0 : i32
    %c0_i32_1 = arith.constant 0 : i32
    return %c0_i32, %c0_i32_0 : i32, i32
  }
  func.func @transform_3(%arg0: i32) -> (i32, i32) {
    %c0_i32 = arith.constant 0 : i32
    %c0_i32_0 = arith.constant 0 : i32
    %c0_i32_1 = arith.constant 0 : i32
    return %c0_i32, %c0_i32_0 : i32, i32
  }
}

</mosaic_0001>

<bundles_post_ra>
// kernel: _lambda_.5
= control target key start
LH: loop header
LB: loop body
LE: loop exit
PB: predicated region body
PF: predicated region fallthrough
CT: control target
= control target key end

     0   :  { %vm50_vm0 = vcmask 130048   ;;  %v1261_v35 = vmov 0.0|0.0   ;;  %vm404_vm1 = vcmask 179200   ;;  %s2021_s1 = inlined_call_operand.vmem [shape: f32[16,22], index: 1, kind: input, shape index: {}]   ;;  %s2022_s0 = inlined_call_operand.vmem [shape: f32[256,16], index: 0, kind: input, shape index: {}]   ;;  %s2023_s2 = inlined_call_operand.vmem [shape: f32[352,256], index: 2, kind: input, shape index: {}]   ;;  %s2024_s3 = inlined_call_operand.vmem [shape: f32[256,22], index: 3, kind: output, shape index: {0}]   ;;  %s2025_s4 = inlined_call_operand.vmem [shape: f32[352,22], index: 4, kind: output, shape index: {1}]  }
   0x1   :  { %v48_v0 = vld [vmem:[%s2021_s1] sm:$0xff]  ;;  %v49_v1 = vld [vmem:[%s2021_s1 + $0x8] sm:$0xff]  ;;  %v18_v5 = vld [vmem:[%s2022_s0 + $0x10] sm:$0xff]  ;;  %1076 = vmatprep.subr.bf16.mxu1 %v1261_v35 }
   0x2   :  { %v16_v2 = vld [vmem:[%s2022_s0] sm:$0xff]  ;;  %v1024_v3 = vpack.c.bf16 %v49_v1, %v48_v0  ;;  %v17_v4 = vld [vmem:[%s2022_s0 + $0x8] sm:$0xff]  ;;  %v19_v6 = vld [vmem:[%s2022_s0 + $0x18] sm:$0xff] }
   0x3   :  { %976 = vmatprep.mubr.msk.f32.mxu0 %vm50_vm0, %v16_v2  ;;  %v20_v7 = vld [vmem:[%s2022_s0 + $0x20] sm:$0xff]  ;;  %v21_v8 = vld [vmem:[%s2022_s0 + $0x28] sm:$0xff]  ;;  %v22_v9 = vld [vmem:[%s2022_s0 + $0x30] sm:$0xff] }
   0x4   :  { %1025 = vmatprep.subr.bf16.mxu0 %v1024_v3  ;;  %v23_v10 = vld [vmem:[%s2022_s0 + $0x38] sm:$0xff]  ;;  %v24_v11 = vld [vmem:[%s2022_s0 + $0x40] sm:$0xff]  ;;  %v25_v12 = vld [vmem:[%s2022_s0 + $0x48] sm:$0xff] }
   0x5   :  { %1027 = vmatpush3.bf16.msra.mxu0 %v1024_v3  ;;  %v26_v13 = vld [vmem:[%s2022_s0 + $0x50] sm:$0xff]  ;;  %v27_v14 = vld [vmem:[%s2022_s0 + $0x58] sm:$0xff]  ;;  %v28_v15 = vld [vmem:[%s2022_s0 + $0x60] sm:$0xff] }
   0x6   :  { %v29_v16 = vld [vmem:[%s2022_s0 + $0x68] sm:$0xff]  ;;  %v30_v17 = vld [vmem:[%s2022_s0 + $0x70] sm:$0xff]  ;;  %v31_v18 = vld [vmem:[%s2022_s0 + $0x78] sm:$0xff]  ;;  %1028 = vmatprep.subr.bf16.mxu0 %v1261_v35 }
   0x7   :  { %v32_v19 = vld [vmem:[%s2022_s0 + $0x80] sm:$0xff]  ;;  %v33_v20 = vld [vmem:[%s2022_s0 + $0x88] sm:$0xff]  ;;  %v34_v21 = vld [vmem:[%s2022_s0 + $0x90] sm:$0xff] }
   0x8   :  { %977 = vmatmul.mubr.msk.f32.vlgmr.msra.gmra.mrb[0].mxu0 %vm50_vm0, %v17_v4  ;;  %v35_v22 = vld [vmem:[%s2022_s0 + $0x98] sm:$0xff]  ;;  %v36_v23 = vld [vmem:[%s2022_s0 + $0xa0] sm:$0xff]  ;;  %v37_v24 = vld [vmem:[%s2022_s0 + $0xa8] sm:$0xff] }
   0x9   :  { %979 = vmatprep.mubr.msk.f32.mxu0 %vm50_vm0, %v18_v5  ;;  %v38_v25 = vld [vmem:[%s2022_s0 + $0xb0] sm:$0xff]  ;;  %v39_v26 = vld [vmem:[%s2022_s0 + $0xb8] sm:$0xff]  ;;  %v40_v27 = vld [vmem:[%s2022_s0 + $0xc0] sm:$0xff] }
   0xa   :  { %v41_v28 = vld [vmem:[%s2022_s0 + $0xc8] sm:$0xff]  ;;  %v42_v29 = vld [vmem:[%s2022_s0 + $0xd0] sm:$0xff]  ;;  %v43_v30 = vld [vmem:[%s2022_s0 + $0xd8] sm:$0xff] }
   0xb   :  { %v44_v31 = vld [vmem:[%s2022_s0 + $0xe0] sm:$0xff]  ;;  %v45_v32 = vld [vmem:[%s2022_s0 + $0xe8] sm:$0xff]  ;;  %v46_v33 = vld [vmem:[%s2022_s0 + $0xf0] sm:$0xff] }
   0xc   :  { %980 = vmatmul.mubr.msk.f32.gmra.mrb[2].mxu0 %vm50_vm0, %v19_v6  ;;  %v47_v34 = vld [vmem:[%s2022_s0 + $0xf8] sm:$0xff]  ;;  %v438_v37 = vld [vmem:[%s2023_s2 + $0x8] sm:$0xff] }
   0xd   :  { %982 = vmatprep.mubr.msk.f32.mxu0 %vm50_vm0, %v20_v7  ;;  %v480_v36 = vld [vmem:[%s2023_s2 + $0x158] sm:$0xff] }
   0xe   :  { %694 = vmatprep.mubr.f32.mxu1 %v480_v36 }
  0x10   :  { %983 = vmatmul.mubr.msk.f32.gmra.mrb[4].mxu0 %vm50_vm0, %v21_v8 }
  0x11   :  { %985 = vmatprep.mubr.msk.f32.mxu0 %vm50_vm0, %v22_v9 }
  0x14   :  { %986 = vmatmul.mubr.msk.f32.gmra.mrb[6].mxu0 %vm50_vm0, %v23_v10 }
  0x15   :  { %988 = vmatprep.mubr.msk.f32.mxu0 %vm50_vm0, %v24_v11 }
  0x18   :  { %989 = vmatmul.mubr.msk.f32.gmra.mrb[8].mxu0 %vm50_vm0, %v25_v12 }
  0x19   :  { %991 = vmatprep.mubr.msk.f32.mxu0 %vm50_vm0, %v26_v13 }
  0x1c   :  { %992 = vmatmul.mubr.msk.f32.gmra.mrb[10].mxu0 %vm50_vm0, %v27_v14 }
  0x1d   :  { %994 = vmatprep.mubr.msk.f32.mxu0 %vm50_vm0, %v28_v15 }
  0x20   :  { %995 = vmatmul.mubr.msk.f32.gmra.mrb[12].mxu0 %vm50_vm0, %v29_v16 }
  0x21   :  { %997 = vmatprep.mubr.msk.f32.mxu0 %vm50_vm0, %v30_v17 }
  0x24   :  { %998 = vmatmul.mubr.msk.f32.gmra.mrb[14].mxu0 %vm50_vm0, %v31_v18 }
  0x25   :  { %1000 = vmatprep.mubr.msk.f32.mxu0 %vm50_vm0, %v32_v19 }
  0x28   :  { %1001 = vmatmul.mubr.msk.f32.gmra.mrb[16].mxu0 %vm50_vm0, %v33_v20 }
  0x29   :  { %1003 = vmatprep.mubr.msk.f32.mxu0 %vm50_vm0, %v34_v21 }
  0x2c   :  { %1004 = vmatmul.mubr.msk.f32.gmra.mrb[18].mxu0 %vm50_vm0, %v35_v22 }
  0x2d   :  { %1006 = vmatprep.mubr.msk.f32.mxu0 %vm50_vm0, %v36_v23 }
  0x30   :  { %1007 = vmatmul.mubr.msk.f32.gmra.mrb[20].mxu0 %vm50_vm0, %v37_v24 }
  0x31   :  { %1009 = vmatprep.mubr.msk.f32.mxu0 %vm50_vm0, %v38_v25 }
  0x34   :  { %1010 = vmatmul.mubr.msk.f32.gmra.mrb[22].mxu0 %vm50_vm0, %v39_v26 }
  0x35   :  { %1012 = vmatprep.mubr.msk.f32.mxu0 %vm50_vm0, %v40_v27 }
  0x38   :  { %1013 = vmatmul.mubr.msk.f32.gmra.mrb[24].mxu0 %vm50_vm0, %v41_v28 }
  0x39   :  { %1015 = vmatprep.mubr.msk.f32.mxu0 %vm50_vm0, %v42_v29 }
  0x3c   :  { %1016 = vmatmul.mubr.msk.f32.gmra.mrb[26].mxu0 %vm50_vm0, %v43_v30 }
  0x3d   :  { %1018 = vmatprep.mubr.msk.f32.mxu0 %vm50_vm0, %v44_v31 }
  0x40   :  { %1019 = vmatmul.mubr.msk.f32.gmra.mrb[28].mxu0 %vm50_vm0, %v45_v32 }
  0x41   :  { %1021 = vmatprep.mubr.msk.f32.mxu0 %vm50_vm0, %v46_v33 }
  0x44   :  { %1022 = vmatmul.mubr.msk.f32.gmra.mrb[30].mxu0 %vm50_vm0, %v47_v34 }
  0x45   :  { %589 = vmatprep.mubr.f32.mxu0 %v438_v37 }
  0xdb   :  { %v978_v38 = vpop.f32.mrb[0].mxu0 }
  0xdc   :  { %1109 = vtanh.f32 %v978_v38  ;;  %v213_v39 = vpop.f32.mrb[1].mxu0 }
  0xdd   :  { %1111 = vtanh.f32 %v213_v39 }
  0xdf   :  { %v981_v40 = vpop.f32.mrb[2].mxu0 }
  0xe0   :  { %1113 = vtanh.f32 %v981_v40  ;;  %v223_v41 = vpop.f32.mrb[3].mxu0 }
  0xe1   :  { %1115 = vtanh.f32 %v223_v41 }
  0xe3   :  { %v984_v42 = vpop.f32.mrb[4].mxu0 }
  0xe4   :  { %1117 = vtanh.f32 %v984_v42  ;;  %v233_v43 = vpop.f32.mrb[5].mxu0 }
  0xe5   :  { %1119 = vtanh.f32 %v233_v43 }
  0xe6   :  { %v1110_v44 = vpop.eup %1109 }
  0xe7   :  { %v1112_v45 = vpop.eup %1111  ;;  %406 = vst.msk [vmem:[%s2024_s3 + $0x8] sm:$0xff] %vm404_vm1, %v1110_v44  ;;  %v987_v46 = vpop.f32.mrb[6].mxu0 }
  0xe8   :  { %405 = vst.msk [vmem:[%s2024_s3] sm:$0xff] %vm404_vm1, %v1112_v45  ;;  %1121 = vtanh.f32 %v987_v46  ;;  %v243_v47 = vpop.f32.mrb[7].mxu0  ;;  %v1029_v48 = vpack.c.bf16 %v1110_v44, %v1112_v45 }
  0xe9   :  { %1123 = vtanh.f32 %v243_v47 }
  0xea   :  { %v1114_v49 = vpop.eup %1113  ;;  %1030 = vmatpush1.bf16.msra.mxu0 %v1029_v48  ;;  %1092 = vmatpush1.bf16.msra.mxu1 %v1029_v48 }
  0xeb   :  { %v1116_v50 = vpop.eup %1115  ;;  %408 = vst.msk [vmem:[%s2024_s3 + $0x18] sm:$0xff] %vm404_vm1, %v1114_v49  ;;  %v990_v51 = vpop.f32.mrb[8].mxu0  ;;  %1031 = vmatprep.subr.bf16.mxu0 %v1261_v35  ;;  %1077 = vmatprep.subr.bf16.mxu1 %v1261_v35 }
  0xec   :  { %407 = vst.msk [vmem:[%s2024_s3 + $0x10] sm:$0xff] %vm404_vm1, %v1116_v50  ;;  %1125 = vtanh.f32 %v990_v51  ;;  %v253_v52 = vpop.f32.mrb[9].mxu0  ;;  %v1032_v53 = vpack.c.bf16 %v1114_v49, %v1116_v50 }
  0xed   :  { %1127 = vtanh.f32 %v253_v52 }
  0xee   :  { %v1118_v54 = vpop.eup %1117  ;;  %1033 = vmatpush1.bf16.msra.mxu0 %v1032_v53  ;;  %1093 = vmatpush1.bf16.msra.mxu1 %v1032_v53 }
  0xef   :  { %v1120_v55 = vpop.eup %1119  ;;  %410 = vst.msk [vmem:[%s2024_s3 + $0x28] sm:$0xff] %vm404_vm1, %v1118_v54  ;;  %v993_v56 = vpop.f32.mrb[10].mxu0  ;;  %1034 = vmatprep.subr.bf16.mxu0 %v1261_v35  ;;  %1078 = vmatprep.subr.bf16.mxu1 %v1261_v35 }
  0xf0   :  { %409 = vst.msk [vmem:[%s2024_s3 + $0x20] sm:$0xff] %vm404_vm1, %v1120_v55  ;;  %1129 = vtanh.f32 %v993_v56  ;;  %v263_v57 = vpop.f32.mrb[11].mxu0  ;;  %v1035_v58 = vpack.c.bf16 %v1118_v54, %v1120_v55  ;;  %v479_v55 = vld [vmem:[%s2023_s2 + $0x150] sm:$0xff]  ;;  %v437_v56 = vld [vmem:[%s2023_s2] sm:$0xff] }
  0xf1   :  { %1131 = vtanh.f32 %v263_v57  ;;  %v440_v57 = vld [vmem:[%s2023_s2 + $0x18] sm:$0xff] }
  0xf2   :  { %v1122_v59 = vpop.eup %1121  ;;  %1036 = vmatpush1.bf16.msra.mxu0 %v1035_v58  ;;  %1094 = vmatpush1.bf16.msra.mxu1 %v1035_v58  ;;  %v481_v58 = vld [vmem:[%s2023_s2 + $0x160] sm:$0xff] }
  0xf3   :  { %v1124_v60 = vpop.eup %1123  ;;  %412 = vst.msk [vmem:[%s2024_s3 + $0x38] sm:$0xff] %vm404_vm1, %v1122_v59  ;;  %v996_v61 = vpop.f32.mrb[12].mxu0  ;;  %1037 = vmatprep.subr.bf16.mxu0 %v1261_v35  ;;  %1079 = vmatprep.subr.bf16.mxu1 %v1261_v35 }
  0xf4   :  { %411 = vst.msk [vmem:[%s2024_s3 + $0x30] sm:$0xff] %vm404_vm1, %v1124_v60  ;;  %1133 = vtanh.f32 %v996_v61  ;;  %v273_v62 = vpop.f32.mrb[13].mxu0  ;;  %v1038_v63 = vpack.c.bf16 %v1122_v59, %v1124_v60  ;;  %v439_v59 = vld [vmem:[%s2023_s2 + $0x10] sm:$0xff]  ;;  %v484_v60 = vld [vmem:[%s2023_s2 + $0x178] sm:$0xff]  ;;  %v442_v61 = vld [vmem:[%s2023_s2 + $0x28] sm:$0xff] }
  0xf5   :  { %1135 = vtanh.f32 %v273_v62  ;;  %v483_v62 = vld [vmem:[%s2023_s2 + $0x170] sm:$0xff] }
  0xf6   :  { %v1126_v0 = vpop.eup %1125  ;;  %1039 = vmatpush1.bf16.msra.mxu0 %v1038_v63  ;;  %1095 = vmatpush1.bf16.msra.mxu1 %v1038_v63  ;;  %v441_v63 = vld [vmem:[%s2023_s2 + $0x20] sm:$0xff] }
  0xf7   :  { %v1128_v1 = vpop.eup %1127  ;;  %414 = vst.msk [vmem:[%s2024_s3 + $0x48] sm:$0xff] %vm404_vm1, %v1126_v0  ;;  %v999_v2 = vpop.f32.mrb[14].mxu0  ;;  %1040 = vmatprep.subr.bf16.mxu0 %v1261_v35  ;;  %1080 = vmatprep.subr.bf16.mxu1 %v1261_v35 }
  0xf8   :  { %413 = vst.msk [vmem:[%s2024_s3 + $0x40] sm:$0xff] %vm404_vm1, %v1128_v1  ;;  %1137 = vtanh.f32 %v999_v2  ;;  %v283_v3 = vpop.f32.mrb[15].mxu0  ;;  %v1041_v4 = vpack.c.bf16 %v1126_v0, %v1128_v1  ;;  %v486_v0 = vld [vmem:[%s2023_s2 + $0x188] sm:$0xff]  ;;  %v444_v1 = vld [vmem:[%s2023_s2 + $0x38] sm:$0xff]  ;;  %v485_v2 = vld [vmem:[%s2023_s2 + $0x180] sm:$0xff] }
  0xf9   :  { %1139 = vtanh.f32 %v283_v3  ;;  %v443_v3 = vld [vmem:[%s2023_s2 + $0x30] sm:$0xff] }
  0xfa   :  { %v1130_v5 = vpop.eup %1129  ;;  %1042 = vmatpush1.bf16.msra.mxu0 %v1041_v4  ;;  %1096 = vmatpush1.bf16.msra.mxu1 %v1041_v4  ;;  %v488_v4 = vld [vmem:[%s2023_s2 + $0x198] sm:$0xff] }
  0xfb   :  { %v1132_v6 = vpop.eup %1131  ;;  %416 = vst.msk [vmem:[%s2024_s3 + $0x58] sm:$0xff] %vm404_vm1, %v1130_v5  ;;  %v1002_v7 = vpop.f32.mrb[16].mxu0  ;;  %1043 = vmatprep.subr.bf16.mxu0 %v1261_v35  ;;  %1081 = vmatprep.subr.bf16.mxu1 %v1261_v35 }
  0xfc   :  { %415 = vst.msk [vmem:[%s2024_s3 + $0x50] sm:$0xff] %vm404_vm1, %v1132_v6  ;;  %1141 = vtanh.f32 %v1002_v7  ;;  %v293_v8 = vpop.f32.mrb[17].mxu0  ;;  %v1044_v9 = vpack.c.bf16 %v1130_v5, %v1132_v6  ;;  %v446_v5 = vld [vmem:[%s2023_s2 + $0x48] sm:$0xff]  ;;  %v487_v6 = vld [vmem:[%s2023_s2 + $0x190] sm:$0xff]  ;;  %v445_v7 = vld [vmem:[%s2023_s2 + $0x40] sm:$0xff] }
  0xfd   :  { %1143 = vtanh.f32 %v293_v8  ;;  %v490_v8 = vld [vmem:[%s2023_s2 + $0x1a8] sm:$0xff] }
  0xfe   :  { %v1134_v10 = vpop.eup %1133  ;;  %1045 = vmatpush1.bf16.msra.mxu0 %v1044_v9  ;;  %1097 = vmatpush1.bf16.msra.mxu1 %v1044_v9  ;;  %v448_v9 = vld [vmem:[%s2023_s2 + $0x58] sm:$0xff] }
  0xff   :  { %v1136_v11 = vpop.eup %1135  ;;  %418 = vst.msk [vmem:[%s2024_s3 + $0x68] sm:$0xff] %vm404_vm1, %v1134_v10  ;;  %v1005_v12 = vpop.f32.mrb[18].mxu0  ;;  %1046 = vmatprep.subr.bf16.mxu0 %v1261_v35  ;;  %1082 = vmatprep.subr.bf16.mxu1 %v1261_v35 }
 0x100   :  { %417 = vst.msk [vmem:[%s2024_s3 + $0x60] sm:$0xff] %vm404_vm1, %v1136_v11  ;;  %1145 = vtanh.f32 %v1005_v12  ;;  %v303_v13 = vpop.f32.mrb[19].mxu0  ;;  %v1047_v14 = vpack.c.bf16 %v1134_v10, %v1136_v11  ;;  %v489_v10 = vld [vmem:[%s2023_s2 + $0x1a0] sm:$0xff]  ;;  %v447_v11 = vld [vmem:[%s2023_s2 + $0x50] sm:$0xff]  ;;  %v492_v12 = vld [vmem:[%s2023_s2 + $0x1b8] sm:$0xff] }
 0x101   :  { %1147 = vtanh.f32 %v303_v13  ;;  %v450_v13 = vld [vmem:[%s2023_s2 + $0x68] sm:$0xff] }
 0x102   :  { %v1138_v15 = vpop.eup %1137  ;;  %1048 = vmatpush1.bf16.msra.mxu0 %v1047_v14  ;;  %1098 = vmatpush1.bf16.msra.mxu1 %v1047_v14  ;;  %v491_v14 = vld [vmem:[%s2023_s2 + $0x1b0] sm:$0xff] }
 0x103   :  { %v1140_v16 = vpop.eup %1139  ;;  %420 = vst.msk [vmem:[%s2024_s3 + $0x78] sm:$0xff] %vm404_vm1, %v1138_v15  ;;  %v1008_v17 = vpop.f32.mrb[20].mxu0  ;;  %1049 = vmatprep.subr.bf16.mxu0 %v1261_v35  ;;  %1083 = vmatprep.subr.bf16.mxu1 %v1261_v35 }
 0x104   :  { %419 = vst.msk [vmem:[%s2024_s3 + $0x70] sm:$0xff] %vm404_vm1, %v1140_v16  ;;  %1149 = vtanh.f32 %v1008_v17  ;;  %v313_v18 = vpop.f32.mrb[21].mxu0  ;;  %v1050_v19 = vpack.c.bf16 %v1138_v15, %v1140_v16  ;;  %v449_v15 = vld [vmem:[%s2023_s2 + $0x60] sm:$0xff]  ;;  %v494_v16 = vld [vmem:[%s2023_s2 + $0x1c8] sm:$0xff]  ;;  %v452_v17 = vld [vmem:[%s2023_s2 + $0x78] sm:$0xff] }
 0x105   :  { %1151 = vtanh.f32 %v313_v18  ;;  %v493_v18 = vld [vmem:[%s2023_s2 + $0x1c0] sm:$0xff] }
 0x106   :  { %v1142_v20 = vpop.eup %1141  ;;  %1051 = vmatpush1.bf16.msra.mxu0 %v1050_v19  ;;  %1099 = vmatpush1.bf16.msra.mxu1 %v1050_v19  ;;  %v451_v19 = vld [vmem:[%s2023_s2 + $0x70] sm:$0xff] }
 0x107   :  { %v1144_v21 = vpop.eup %1143  ;;  %422 = vst.msk [vmem:[%s2024_s3 + $0x88] sm:$0xff] %vm404_vm1, %v1142_v20  ;;  %v1011_v22 = vpop.f32.mrb[22].mxu0  ;;  %1052 = vmatprep.subr.bf16.mxu0 %v1261_v35  ;;  %1084 = vmatprep.subr.bf16.mxu1 %v1261_v35 }
 0x108   :  { %421 = vst.msk [vmem:[%s2024_s3 + $0x80] sm:$0xff] %vm404_vm1, %v1144_v21  ;;  %1153 = vtanh.f32 %v1011_v22  ;;  %v323_v23 = vpop.f32.mrb[23].mxu0  ;;  %v1053_v24 = vpack.c.bf16 %v1142_v20, %v1144_v21  ;;  %v496_v20 = vld [vmem:[%s2023_s2 + $0x1d8] sm:$0xff]  ;;  %v454_v21 = vld [vmem:[%s2023_s2 + $0x88] sm:$0xff]  ;;  %v495_v22 = vld [vmem:[%s2023_s2 + $0x1d0] sm:$0xff] }
 0x109   :  { %1155 = vtanh.f32 %v323_v23  ;;  %v453_v23 = vld [vmem:[%s2023_s2 + $0x80] sm:$0xff] }
 0x10a   :  { %v1146_v25 = vpop.eup %1145  ;;  %1054 = vmatpush1.bf16.msra.mxu0 %v1053_v24  ;;  %1100 = vmatpush1.bf16.msra.mxu1 %v1053_v24  ;;  %v498_v24 = vld [vmem:[%s2023_s2 + $0x1e8] sm:$0xff] }
 0x10b   :  { %v1148_v26 = vpop.eup %1147  ;;  %424 = vst.msk [vmem:[%s2024_s3 + $0x98] sm:$0xff] %vm404_vm1, %v1146_v25  ;;  %v1014_v27 = vpop.f32.mrb[24].mxu0  ;;  %1055 = vmatprep.subr.bf16.mxu0 %v1261_v35  ;;  %1085 = vmatprep.subr.bf16.mxu1 %v1261_v35 }
 0x10c   :  { %423 = vst.msk [vmem:[%s2024_s3 + $0x90] sm:$0xff] %vm404_vm1, %v1148_v26  ;;  %1157 = vtanh.f32 %v1014_v27  ;;  %v333_v28 = vpop.f32.mrb[25].mxu0  ;;  %v1056_v29 = vpack.c.bf16 %v1146_v25, %v1148_v26  ;;  %v456_v25 = vld [vmem:[%s2023_s2 + $0x98] sm:$0xff]  ;;  %v497_v26 = vld [vmem:[%s2023_s2 + $0x1e0] sm:$0xff]  ;;  %v455_v27 = vld [vmem:[%s2023_s2 + $0x90] sm:$0xff] }
 0x10d   :  { %1159 = vtanh.f32 %v333_v28  ;;  %v500_v28 = vld [vmem:[%s2023_s2 + $0x1f8] sm:$0xff] }
 0x10e   :  { %v1150_v30 = vpop.eup %1149  ;;  %1057 = vmatpush1.bf16.msra.mxu0 %v1056_v29  ;;  %1101 = vmatpush1.bf16.msra.mxu1 %v1056_v29  ;;  %v458_v29 = vld [vmem:[%s2023_s2 + $0xa8] sm:$0xff] }
 0x10f   :  { %v1152_v31 = vpop.eup %1151  ;;  %426 = vst.msk [vmem:[%s2024_s3 + $0xa8] sm:$0xff] %vm404_vm1, %v1150_v30  ;;  %v1017_v32 = vpop.f32.mrb[26].mxu0  ;;  %1058 = vmatprep.subr.bf16.mxu0 %v1261_v35  ;;  %1086 = vmatprep.subr.bf16.mxu1 %v1261_v35 }
 0x110   :  { %425 = vst.msk [vmem:[%s2024_s3 + $0xa0] sm:$0xff] %vm404_vm1, %v1152_v31  ;;  %1161 = vtanh.f32 %v1017_v32  ;;  %v343_v33 = vpop.f32.mrb[27].mxu0  ;;  %v1059_v34 = vpack.c.bf16 %v1150_v30, %v1152_v31  ;;  %v499_v30 = vld [vmem:[%s2023_s2 + $0x1f0] sm:$0xff]  ;;  %v457_v31 = vld [vmem:[%s2023_s2 + $0xa0] sm:$0xff]  ;;  %v502_v32 = vld [vmem:[%s2023_s2 + $0x208] sm:$0xff] }
 0x111   :  { %1163 = vtanh.f32 %v343_v33  ;;  %v460_v33 = vld [vmem:[%s2023_s2 + $0xb8] sm:$0xff] }
 0x112   :  { %v1154_v36 = vpop.eup %1153  ;;  %1060 = vmatpush1.bf16.msra.mxu0 %v1059_v34  ;;  %1102 = vmatpush1.bf16.msra.mxu1 %v1059_v34  ;;  %v501_v34 = vld [vmem:[%s2023_s2 + $0x200] sm:$0xff] }
 0x113   :  { %v1156_v37 = vpop.eup %1155  ;;  %428 = vst.msk [vmem:[%s2024_s3 + $0xb8] sm:$0xff] %vm404_vm1, %v1154_v36  ;;  %v1020_v38 = vpop.f32.mrb[28].mxu0  ;;  %1061 = vmatprep.subr.bf16.mxu0 %v1261_v35  ;;  %1087 = vmatprep.subr.bf16.mxu1 %v1261_v35 }
 0x114   :  { %427 = vst.msk [vmem:[%s2024_s3 + $0xb0] sm:$0xff] %vm404_vm1, %v1156_v37  ;;  %1165 = vtanh.f32 %v1020_v38  ;;  %v353_v39 = vpop.f32.mrb[29].mxu0  ;;  %v1062_v40 = vpack.c.bf16 %v1154_v36, %v1156_v37  ;;  %v459_v36 = vld [vmem:[%s2023_s2 + $0xb0] sm:$0xff]  ;;  %v504_v37 = vld [vmem:[%s2023_s2 + $0x218] sm:$0xff]  ;;  %v462_v38 = vld [vmem:[%s2023_s2 + $0xc8] sm:$0xff] }
 0x115   :  { %1167 = vtanh.f32 %v353_v39  ;;  %v503_v39 = vld [vmem:[%s2023_s2 + $0x210] sm:$0xff] }
 0x116   :  { %v1158_v41 = vpop.eup %1157  ;;  %1063 = vmatpush1.bf16.msra.mxu0 %v1062_v40  ;;  %1103 = vmatpush1.bf16.msra.mxu1 %v1062_v40  ;;  %v461_v40 = vld [vmem:[%s2023_s2 + $0xc0] sm:$0xff] }
 0x117   :  { %v1160_v42 = vpop.eup %1159  ;;  %430 = vst.msk [vmem:[%s2024_s3 + $0xc8] sm:$0xff] %vm404_vm1, %v1158_v41  ;;  %v1023_v43 = vpop.f32.mrb[30].mxu0  ;;  %1064 = vmatprep.subr.bf16.mxu0 %v1261_v35  ;;  %1088 = vmatprep.subr.bf16.mxu1 %v1261_v35 }
 0x118   :  { %429 = vst.msk [vmem:[%s2024_s3 + $0xc0] sm:$0xff] %vm404_vm1, %v1160_v42  ;;  %1169 = vtanh.f32 %v1023_v43  ;;  %v363_v44 = vpop.f32.mrb[31].mxu0  ;;  %v1065_v45 = vpack.c.bf16 %v1158_v41, %v1160_v42  ;;  %v506_v41 = vld [vmem:[%s2023_s2 + $0x228] sm:$0xff]  ;;  %v464_v42 = vld [vmem:[%s2023_s2 + $0xd8] sm:$0xff]  ;;  %v505_v43 = vld [vmem:[%s2023_s2 + $0x220] sm:$0xff] }
 0x119   :  { %1171 = vtanh.f32 %v363_v44  ;;  %v463_v44 = vld [vmem:[%s2023_s2 + $0xd0] sm:$0xff] }
 0x11a   :  { %v1162_v46 = vpop.eup %1161  ;;  %1066 = vmatpush1.bf16.msra.mxu0 %v1065_v45  ;;  %1104 = vmatpush1.bf16.msra.mxu1 %v1065_v45  ;;  %v508_v45 = vld [vmem:[%s2023_s2 + $0x238] sm:$0xff] }
 0x11b   :  { %v1164_v47 = vpop.eup %1163  ;;  %432 = vst.msk [vmem:[%s2024_s3 + $0xd8] sm:$0xff] %vm404_vm1, %v1162_v46  ;;  %1067 = vmatprep.subr.bf16.mxu0 %v1261_v35  ;;  %1089 = vmatprep.subr.bf16.mxu1 %v1261_v35 }
 0x11c   :  { %431 = vst.msk [vmem:[%s2024_s3 + $0xd0] sm:$0xff] %vm404_vm1, %v1164_v47  ;;  %v1068_v48 = vpack.c.bf16 %v1162_v46, %v1164_v47  ;;  %v466_v46 = vld [vmem:[%s2023_s2 + $0xe8] sm:$0xff]  ;;  %v507_v47 = vld [vmem:[%s2023_s2 + $0x230] sm:$0xff] }
 0x11e   :  { %v1166_v49 = vpop.eup %1165  ;;  %1069 = vmatpush1.bf16.msra.mxu0 %v1068_v48  ;;  %1105 = vmatpush1.bf16.msra.mxu1 %v1068_v48  ;;  %v465_v48 = vld [vmem:[%s2023_s2 + $0xe0] sm:$0xff] }
 0x11f   :  { %v1168_v50 = vpop.eup %1167  ;;  %434 = vst.msk [vmem:[%s2024_s3 + $0xe8] sm:$0xff] %vm404_vm1, %v1166_v49  ;;  %1070 = vmatprep.subr.bf16.mxu0 %v1261_v35  ;;  %1090 = vmatprep.subr.bf16.mxu1 %v1261_v35 }
 0x120   :  { %433 = vst.msk [vmem:[%s2024_s3 + $0xe0] sm:$0xff] %vm404_vm1, %v1168_v50  ;;  %v1071_v51 = vpack.c.bf16 %v1166_v49, %v1168_v50  ;;  %v510_v49 = vld [vmem:[%s2023_s2 + $0x248] sm:$0xff]  ;;  %v468_v50 = vld [vmem:[%s2023_s2 + $0xf8] sm:$0xff] }
 0x122   :  { %v1170_v52 = vpop.eup %1169  ;;  %1072 = vmatpush1.bf16.msra.mxu0 %v1071_v51  ;;  %1106 = vmatpush1.bf16.msra.mxu1 %v1071_v51  ;;  %v509_v51 = vld [vmem:[%s2023_s2 + $0x240] sm:$0xff] }
 0x123   :  { %v1172_v53 = vpop.eup %1171  ;;  %436 = vst.msk [vmem:[%s2024_s3 + $0xf8] sm:$0xff] %vm404_vm1, %v1170_v52  ;;  %1073 = vmatprep.subr.bf16.mxu0 %v1261_v35  ;;  %1091 = vmatprep.subr.bf16.mxu1 %v1261_v35  ;;  %v482_v35 = vld [vmem:[%s2023_s2 + $0x168] sm:$0xff] }
 0x124   :  { %435 = vst.msk [vmem:[%s2024_s3 + $0xf0] sm:$0xff] %vm404_vm1, %v1172_v53  ;;  %v1074_v54 = vpack.c.bf16 %v1170_v52, %v1172_v53  ;;  %v467_v52 = vld [vmem:[%s2023_s2 + $0xf0] sm:$0xff]  ;;  %v512_v53 = vld [vmem:[%s2023_s2 + $0x258] sm:$0xff] }
 0x126   :  { %1075 = vmatpush1.bf16.msra.mxu0 %v1074_v54  ;;  %1107 = vmatpush1.bf16.msra.mxu1 %v1074_v54  ;;  %v470_v54 = vld [vmem:[%s2023_s2 + $0x108] sm:$0xff] }
 0x129   :  { %695 = vmatmul.mubr.f32.vlgmr.msra.gmra.mrb[0].mxu1 %v479_v55  ;;  %590 = vmatmul.mubr.f32.vlgmr.msra.gmra.mrb[32].mxu0 %v437_v56  ;;  %v511_v55 = vld [vmem:[%s2023_s2 + $0x250] sm:$0xff]  ;;  %v469_v56 = vld [vmem:[%s2023_s2 + $0x100] sm:$0xff] }
 0x12a   :  { %699 = vmatprep.mubr.f32.mxu1 %v482_v35  ;;  %594 = vmatprep.mubr.f32.mxu0 %v440_v57  ;;  %v514_v35 = vld [vmem:[%s2023_s2 + $0x268] sm:$0xff]  ;;  %v472_v57 = vld [vmem:[%s2023_s2 + $0x118] sm:$0xff] }
 0x12d   :  { %700 = vmatmul.mubr.f32.gmra.mrb[2].mxu1 %v481_v58  ;;  %595 = vmatmul.mubr.f32.gmra.mrb[34].mxu0 %v439_v59  ;;  %v513_v58 = vld [vmem:[%s2023_s2 + $0x260] sm:$0xff]  ;;  %v471_v59 = vld [vmem:[%s2023_s2 + $0x110] sm:$0xff] }
 0x12e   :  { %704 = vmatprep.mubr.f32.mxu1 %v484_v60  ;;  %599 = vmatprep.mubr.f32.mxu0 %v442_v61  ;;  %v516_v60 = vld [vmem:[%s2023_s2 + $0x278] sm:$0xff]  ;;  %v474_v61 = vld [vmem:[%s2023_s2 + $0x128] sm:$0xff] }
 0x131   :  { %705 = vmatmul.mubr.f32.gmra.mrb[4].mxu1 %v483_v62  ;;  %600 = vmatmul.mubr.f32.gmra.mrb[36].mxu0 %v441_v63  ;;  %v515_v62 = vld [vmem:[%s2023_s2 + $0x270] sm:$0xff]  ;;  %v473_v63 = vld [vmem:[%s2023_s2 + $0x120] sm:$0xff] }
 0x132   :  { %709 = vmatprep.mubr.f32.mxu1 %v486_v0  ;;  %604 = vmatprep.mubr.f32.mxu0 %v444_v1  ;;  %v518_v0 = vld [vmem:[%s2023_s2 + $0x288] sm:$0xff]  ;;  %v476_v1 = vld [vmem:[%s2023_s2 + $0x138] sm:$0xff] }
 0x135   :  { %710 = vmatmul.mubr.f32.gmra.mrb[6].mxu1 %v485_v2  ;;  %605 = vmatmul.mubr.f32.gmra.mrb[38].mxu0 %v443_v3  ;;  %v517_v2 = vld [vmem:[%s2023_s2 + $0x280] sm:$0xff]  ;;  %v475_v3 = vld [vmem:[%s2023_s2 + $0x130] sm:$0xff] }
 0x136   :  { %714 = vmatprep.mubr.f32.mxu1 %v488_v4  ;;  %609 = vmatprep.mubr.f32.mxu0 %v446_v5  ;;  %v520_v4 = vld [vmem:[%s2023_s2 + $0x298] sm:$0xff]  ;;  %v478_v5 = vld [vmem:[%s2023_s2 + $0x148] sm:$0xff] }
 0x139   :  { %715 = vmatmul.mubr.f32.gmra.mrb[8].mxu1 %v487_v6  ;;  %610 = vmatmul.mubr.f32.gmra.mrb[40].mxu0 %v445_v7  ;;  %v519_v6 = vld [vmem:[%s2023_s2 + $0x290] sm:$0xff]  ;;  %v477_v7 = vld [vmem:[%s2023_s2 + $0x140] sm:$0xff] }
 0x13a   :  { %719 = vmatprep.mubr.f32.mxu1 %v490_v8  ;;  %614 = vmatprep.mubr.f32.mxu0 %v448_v9  ;;  %v522_v8 = vld [vmem:[%s2023_s2 + $0x2a8] sm:$0xff]  ;;  %v521_v9 = vld [vmem:[%s2023_s2 + $0x2a0] sm:$0xff] }
 0x13d   :  { %720 = vmatmul.mubr.f32.gmra.mrb[10].mxu1 %v489_v10  ;;  %615 = vmatmul.mubr.f32.gmra.mrb[42].mxu0 %v447_v11  ;;  %v524_v10 = vld [vmem:[%s2023_s2 + $0x2b8] sm:$0xff]  ;;  %v523_v11 = vld [vmem:[%s2023_s2 + $0x2b0] sm:$0xff] }
 0x13e   :  { %724 = vmatprep.mubr.f32.mxu1 %v492_v12  ;;  %619 = vmatprep.mubr.f32.mxu0 %v450_v13 }
 0x141   :  { %725 = vmatmul.mubr.f32.gmra.mrb[12].mxu1 %v491_v14  ;;  %620 = vmatmul.mubr.f32.gmra.mrb[44].mxu0 %v449_v15 }
 0x142   :  { %729 = vmatprep.mubr.f32.mxu1 %v494_v16  ;;  %624 = vmatprep.mubr.f32.mxu0 %v452_v17 }
 0x145   :  { %730 = vmatmul.mubr.f32.gmra.mrb[14].mxu1 %v493_v18  ;;  %625 = vmatmul.mubr.f32.gmra.mrb[46].mxu0 %v451_v19 }
 0x146   :  { %734 = vmatprep.mubr.f32.mxu1 %v496_v20  ;;  %629 = vmatprep.mubr.f32.mxu0 %v454_v21 }
 0x149   :  { %735 = vmatmul.mubr.f32.gmra.mrb[16].mxu1 %v495_v22  ;;  %630 = vmatmul.mubr.f32.gmra.mrb[48].mxu0 %v453_v23 }
 0x14a   :  { %739 = vmatprep.mubr.f32.mxu1 %v498_v24  ;;  %634 = vmatprep.mubr.f32.mxu0 %v456_v25 }
 0x14d   :  { %740 = vmatmul.mubr.f32.gmra.mrb[18].mxu1 %v497_v26  ;;  %635 = vmatmul.mubr.f32.gmra.mrb[50].mxu0 %v455_v27 }
 0x14e   :  { %744 = vmatprep.mubr.f32.mxu1 %v500_v28  ;;  %639 = vmatprep.mubr.f32.mxu0 %v458_v29 }
 0x151   :  { %745 = vmatmul.mubr.f32.gmra.mrb[20].mxu1 %v499_v30  ;;  %640 = vmatmul.mubr.f32.gmra.mrb[52].mxu0 %v457_v31 }
 0x152   :  { %749 = vmatprep.mubr.f32.mxu1 %v502_v32  ;;  %644 = vmatprep.mubr.f32.mxu0 %v460_v33 }
 0x155   :  { %750 = vmatmul.mubr.f32.gmra.mrb[22].mxu1 %v501_v34  ;;  %645 = vmatmul.mubr.f32.gmra.mrb[54].mxu0 %v459_v36 }
 0x156   :  { %754 = vmatprep.mubr.f32.mxu1 %v504_v37  ;;  %649 = vmatprep.mubr.f32.mxu0 %v462_v38 }
 0x159   :  { %755 = vmatmul.mubr.f32.gmra.mrb[24].mxu1 %v503_v39  ;;  %650 = vmatmul.mubr.f32.gmra.mrb[56].mxu0 %v461_v40 }
 0x15a   :  { %759 = vmatprep.mubr.f32.mxu1 %v506_v41  ;;  %654 = vmatprep.mubr.f32.mxu0 %v464_v42 }
 0x15d   :  { %760 = vmatmul.mubr.f32.gmra.mrb[26].mxu1 %v505_v43  ;;  %655 = vmatmul.mubr.f32.gmra.mrb[58].mxu0 %v463_v44 }
 0x15e   :  { %764 = vmatprep.mubr.f32.mxu1 %v508_v45  ;;  %659 = vmatprep.mubr.f32.mxu0 %v466_v46 }
 0x161   :  { %765 = vmatmul.mubr.f32.gmra.mrb[28].mxu1 %v507_v47  ;;  %660 = vmatmul.mubr.f32.gmra.mrb[60].mxu0 %v465_v48 }
 0x162   :  { %769 = vmatprep.mubr.f32.mxu1 %v510_v49  ;;  %664 = vmatprep.mubr.f32.mxu0 %v468_v50 }
 0x165   :  { %770 = vmatmul.mubr.f32.gmra.mrb[30].mxu1 %v509_v51  ;;  %665 = vmatmul.mubr.f32.gmra.mrb[62].mxu0 %v467_v52 }
 0x166   :  { %774 = vmatprep.mubr.f32.mxu1 %v512_v53  ;;  %669 = vmatprep.mubr.f32.mxu0 %v470_v54 }
 0x169   :  { %775 = vmatmul.mubr.f32.gmra.mrb[32].mxu1 %v511_v55  ;;  %670 = vmatmul.mubr.f32.gmra.mrb[64].mxu0 %v469_v56 }
 0x16a   :  { %779 = vmatprep.mubr.f32.mxu1 %v514_v35  ;;  %674 = vmatprep.mubr.f32.mxu0 %v472_v57 }
 0x16d   :  { %780 = vmatmul.mubr.f32.gmra.mrb[34].mxu1 %v513_v58  ;;  %675 = vmatmul.mubr.f32.gmra.mrb[66].mxu0 %v471_v59 }
 0x16e   :  { %784 = vmatprep.mubr.f32.mxu1 %v516_v60  ;;  %679 = vmatprep.mubr.f32.mxu0 %v474_v61 }
 0x171   :  { %785 = vmatmul.mubr.f32.gmra.mrb[36].mxu1 %v515_v62  ;;  %680 = vmatmul.mubr.f32.gmra.mrb[68].mxu0 %v473_v63 }
 0x172   :  { %789 = vmatprep.mubr.f32.mxu1 %v518_v0  ;;  %684 = vmatprep.mubr.f32.mxu0 %v476_v1 }
 0x175   :  { %790 = vmatmul.mubr.f32.gmra.mrb[38].mxu1 %v517_v2  ;;  %685 = vmatmul.mubr.f32.gmra.mrb[70].mxu0 %v475_v3 }
 0x176   :  { %794 = vmatprep.mubr.f32.mxu1 %v520_v4  ;;  %689 = vmatprep.mubr.f32.mxu0 %v478_v5 }
 0x179   :  { %795 = vmatmul.mubr.f32.gmra.mrb[40].mxu1 %v519_v6  ;;  %690 = vmatmul.mubr.f32.gmra.mrb[72].mxu0 %v477_v7 }
 0x17a   :  { %799 = vmatprep.mubr.f32.mxu1 %v522_v8 }
 0x17d   :  { %800 = vmatmul.mubr.f32.gmra.mrb[42].mxu1 %v521_v9 }
 0x17e   :  { %804 = vmatprep.mubr.f32.mxu1 %v524_v10 }
 0x181   :  { %805 = vmatmul.mubr.f32.gmra.mrb[44].mxu1 %v523_v11 }
 0x1fc   :  { %v696_v12 = vpop.f32.mrb[0].mxu1  ;;  %v591_v13 = vpop.f32.mrb[32].mxu0 }
 0x1fd   :  { %1173 = vtanh.f32 %v696_v12  ;;  %v698_v14 = vpop.f32.mrb[1].mxu1  ;;  %v593_v15 = vpop.f32.mrb[33].mxu0 }
 0x1fe   :  { %1175 = vtanh.f32 %v591_v13 }
 0x200   :  { %v701_v16 = vpop.f32.mrb[2].mxu1  ;;  %v596_v17 = vpop.f32.mrb[34].mxu0 }
 0x201   :  { %1177 = vtanh.f32 %v701_v16  ;;  %v703_v18 = vpop.f32.mrb[3].mxu1  ;;  %v598_v19 = vpop.f32.mrb[35].mxu0 }
 0x202   :  { %1179 = vtanh.f32 %v596_v17 }
 0x204   :  { %v706_v20 = vpop.f32.mrb[4].mxu1  ;;  %v601_v21 = vpop.f32.mrb[36].mxu0 }
 0x205   :  { %1181 = vtanh.f32 %v706_v20  ;;  %v708_v22 = vpop.f32.mrb[5].mxu1  ;;  %v603_v23 = vpop.f32.mrb[37].mxu0 }
 0x206   :  { %1183 = vtanh.f32 %v601_v21 }
 0x207   :  { %v1174_v24 = vpop.eup %1173 }
 0x208   :  { %v1176_v25 = vpop.eup %1175  ;;  %875 = vst.msk [vmem:[%s2025_s4 + $0xa8] sm:$0xff] %vm404_vm1, %v1174_v24  ;;  %v711_v26 = vpop.f32.mrb[6].mxu1 }
 0x209   :  { %v606_v27 = vpop.f32.mrb[38].mxu0  ;;  %854 = vst.msk [vmem:[%s2025_s4] sm:$0xff] %vm404_vm1, %v1176_v25  ;;  %1185 = vtanh.f32 %v711_v26  ;;  %v713_v28 = vpop.f32.mrb[7].mxu1 }
 0x20a   :  { %v608_v29 = vpop.f32.mrb[39].mxu0  ;;  %1187 = vtanh.f32 %v606_v27 }
 0x20b   :  { %v1178_v30 = vpop.eup %1177 }
 0x20c   :  { %v1180_v31 = vpop.eup %1179  ;;  %876 = vst.msk [vmem:[%s2025_s4 + $0xb0] sm:$0xff] %vm404_vm1, %v1178_v30  ;;  %v716_v32 = vpop.f32.mrb[8].mxu1 }
 0x20d   :  { %v611_v33 = vpop.f32.mrb[40].mxu0  ;;  %855 = vst.msk [vmem:[%s2025_s4 + $0x8] sm:$0xff] %vm404_vm1, %v1180_v31  ;;  %1189 = vtanh.f32 %v716_v32  ;;  %v718_v34 = vpop.f32.mrb[9].mxu1 }
 0x20e   :  { %v613_v36 = vpop.f32.mrb[41].mxu0  ;;  %1191 = vtanh.f32 %v611_v33 }
 0x20f   :  { %v1182_v37 = vpop.eup %1181 }
 0x210   :  { %v1184_v38 = vpop.eup %1183  ;;  %877 = vst.msk [vmem:[%s2025_s4 + $0xb8] sm:$0xff] %vm404_vm1, %v1182_v37  ;;  %v721_v39 = vpop.f32.mrb[10].mxu1 }
 0x211   :  { %v616_v40 = vpop.f32.mrb[42].mxu0  ;;  %856 = vst.msk [vmem:[%s2025_s4 + $0x10] sm:$0xff] %vm404_vm1, %v1184_v38  ;;  %1193 = vtanh.f32 %v721_v39  ;;  %v723_v41 = vpop.f32.mrb[11].mxu1 }
 0x212   :  { %v618_v42 = vpop.f32.mrb[43].mxu0  ;;  %1195 = vtanh.f32 %v616_v40 }
 0x213   :  { %v1186_v43 = vpop.eup %1185 }
 0x214   :  { %v1188_v44 = vpop.eup %1187  ;;  %878 = vst.msk [vmem:[%s2025_s4 + $0xc0] sm:$0xff] %vm404_vm1, %v1186_v43  ;;  %v726_v45 = vpop.f32.mrb[12].mxu1 }
 0x215   :  { %v621_v46 = vpop.f32.mrb[44].mxu0  ;;  %857 = vst.msk [vmem:[%s2025_s4 + $0x18] sm:$0xff] %vm404_vm1, %v1188_v44  ;;  %1197 = vtanh.f32 %v726_v45  ;;  %v728_v47 = vpop.f32.mrb[13].mxu1 }
 0x216   :  { %v623_v48 = vpop.f32.mrb[45].mxu0  ;;  %1199 = vtanh.f32 %v621_v46 }
 0x217   :  { %v1190_v49 = vpop.eup %1189 }
 0x218   :  { %v1192_v50 = vpop.eup %1191  ;;  %879 = vst.msk [vmem:[%s2025_s4 + $0xc8] sm:$0xff] %vm404_vm1, %v1190_v49  ;;  %v731_v51 = vpop.f32.mrb[14].mxu1 }
 0x219   :  { %v626_v52 = vpop.f32.mrb[46].mxu0  ;;  %858 = vst.msk [vmem:[%s2025_s4 + $0x20] sm:$0xff] %vm404_vm1, %v1192_v50  ;;  %1201 = vtanh.f32 %v731_v51  ;;  %v733_v53 = vpop.f32.mrb[15].mxu1 }
 0x21a   :  { %v628_v54 = vpop.f32.mrb[47].mxu0  ;;  %1203 = vtanh.f32 %v626_v52 }
 0x21b   :  { %v1194_v55 = vpop.eup %1193 }
 0x21c   :  { %v1196_v56 = vpop.eup %1195  ;;  %880 = vst.msk [vmem:[%s2025_s4 + $0xd0] sm:$0xff] %vm404_vm1, %v1194_v55  ;;  %v736_v35 = vpop.f32.mrb[16].mxu1 }
 0x21d   :  { %v631_v57 = vpop.f32.mrb[48].mxu0  ;;  %859 = vst.msk [vmem:[%s2025_s4 + $0x28] sm:$0xff] %vm404_vm1, %v1196_v56  ;;  %1205 = vtanh.f32 %v736_v35  ;;  %v738_v58 = vpop.f32.mrb[17].mxu1 }
 0x21e   :  { %v633_v59 = vpop.f32.mrb[49].mxu0  ;;  %1207 = vtanh.f32 %v631_v57 }
 0x21f   :  { %v1198_v60 = vpop.eup %1197 }
 0x220   :  { %v1200_v61 = vpop.eup %1199  ;;  %881 = vst.msk [vmem:[%s2025_s4 + $0xd8] sm:$0xff] %vm404_vm1, %v1198_v60  ;;  %v741_v62 = vpop.f32.mrb[18].mxu1 }
 0x221   :  { %v636_v63 = vpop.f32.mrb[50].mxu0  ;;  %860 = vst.msk [vmem:[%s2025_s4 + $0x30] sm:$0xff] %vm404_vm1, %v1200_v61  ;;  %1209 = vtanh.f32 %v741_v62  ;;  %v743_v0 = vpop.f32.mrb[19].mxu1 }
 0x222   :  { %v638_v1 = vpop.f32.mrb[51].mxu0  ;;  %1211 = vtanh.f32 %v636_v63 }
 0x223   :  { %v1202_v2 = vpop.eup %1201 }
 0x224   :  { %v1204_v3 = vpop.eup %1203  ;;  %882 = vst.msk [vmem:[%s2025_s4 + $0xe0] sm:$0xff] %vm404_vm1, %v1202_v2  ;;  %v746_v4 = vpop.f32.mrb[20].mxu1 }
 0x225   :  { %v641_v5 = vpop.f32.mrb[52].mxu0  ;;  %861 = vst.msk [vmem:[%s2025_s4 + $0x38] sm:$0xff] %vm404_vm1, %v1204_v3  ;;  %1213 = vtanh.f32 %v746_v4  ;;  %v748_v6 = vpop.f32.mrb[21].mxu1 }
 0x226   :  { %v643_v7 = vpop.f32.mrb[53].mxu0  ;;  %1215 = vtanh.f32 %v641_v5 }
 0x227   :  { %v1206_v8 = vpop.eup %1205 }
 0x228   :  { %v1208_v9 = vpop.eup %1207  ;;  %883 = vst.msk [vmem:[%s2025_s4 + $0xe8] sm:$0xff] %vm404_vm1, %v1206_v8  ;;  %v751_v10 = vpop.f32.mrb[22].mxu1 }
 0x229   :  { %v646_v11 = vpop.f32.mrb[54].mxu0  ;;  %862 = vst.msk [vmem:[%s2025_s4 + $0x40] sm:$0xff] %vm404_vm1, %v1208_v9  ;;  %1217 = vtanh.f32 %v751_v10  ;;  %v753_v12 = vpop.f32.mrb[23].mxu1 }
 0x22a   :  { %v648_v13 = vpop.f32.mrb[55].mxu0  ;;  %1219 = vtanh.f32 %v646_v11 }
 0x22b   :  { %v1210_v14 = vpop.eup %1209 }
 0x22c   :  { %v1212_v15 = vpop.eup %1211  ;;  %884 = vst.msk [vmem:[%s2025_s4 + $0xf0] sm:$0xff] %vm404_vm1, %v1210_v14  ;;  %v756_v16 = vpop.f32.mrb[24].mxu1 }
 0x22d   :  { %v651_v17 = vpop.f32.mrb[56].mxu0  ;;  %863 = vst.msk [vmem:[%s2025_s4 + $0x48] sm:$0xff] %vm404_vm1, %v1212_v15  ;;  %1221 = vtanh.f32 %v756_v16  ;;  %v758_v18 = vpop.f32.mrb[25].mxu1 }
 0x22e   :  { %v653_v19 = vpop.f32.mrb[57].mxu0  ;;  %1223 = vtanh.f32 %v651_v17 }
 0x22f   :  { %v1214_v20 = vpop.eup %1213 }
 0x230   :  { %v1216_v21 = vpop.eup %1215  ;;  %885 = vst.msk [vmem:[%s2025_s4 + $0xf8] sm:$0xff] %vm404_vm1, %v1214_v20  ;;  %v761_v22 = vpop.f32.mrb[26].mxu1 }
 0x231   :  { %v656_v23 = vpop.f32.mrb[58].mxu0  ;;  %864 = vst.msk [vmem:[%s2025_s4 + $0x50] sm:$0xff] %vm404_vm1, %v1216_v21  ;;  %1225 = vtanh.f32 %v761_v22  ;;  %v763_v24 = vpop.f32.mrb[27].mxu1 }
 0x232   :  { %v658_v25 = vpop.f32.mrb[59].mxu0  ;;  %1227 = vtanh.f32 %v656_v23 }
 0x233   :  { %v1218_v26 = vpop.eup %1217 }
 0x234   :  { %v1220_v27 = vpop.eup %1219  ;;  %886 = vst.msk [vmem:[%s2025_s4 + $0x100] sm:$0xff] %vm404_vm1, %v1218_v26  ;;  %v766_v28 = vpop.f32.mrb[28].mxu1 }
 0x235   :  { %v661_v29 = vpop.f32.mrb[60].mxu0  ;;  %865 = vst.msk [vmem:[%s2025_s4 + $0x58] sm:$0xff] %vm404_vm1, %v1220_v27  ;;  %1229 = vtanh.f32 %v766_v28  ;;  %v768_v30 = vpop.f32.mrb[29].mxu1 }
 0x236   :  { %v663_v31 = vpop.f32.mrb[61].mxu0  ;;  %1231 = vtanh.f32 %v661_v29 }
 0x237   :  { %v1222_v32 = vpop.eup %1221 }
 0x238   :  { %v1224_v33 = vpop.eup %1223  ;;  %887 = vst.msk [vmem:[%s2025_s4 + $0x108] sm:$0xff] %vm404_vm1, %v1222_v32  ;;  %v771_v34 = vpop.f32.mrb[30].mxu1 }
 0x239   :  { %v666_v36 = vpop.f32.mrb[62].mxu0  ;;  %866 = vst.msk [vmem:[%s2025_s4 + $0x60] sm:$0xff] %vm404_vm1, %v1224_v33  ;;  %1233 = vtanh.f32 %v771_v34  ;;  %v773_v37 = vpop.f32.mrb[31].mxu1 }
 0x23a   :  { %v668_v38 = vpop.f32.mrb[63].mxu0  ;;  %1235 = vtanh.f32 %v666_v36 }
 0x23b   :  { %v1226_v39 = vpop.eup %1225 }
 0x23c   :  { %v1228_v40 = vpop.eup %1227  ;;  %888 = vst.msk [vmem:[%s2025_s4 + $0x110] sm:$0xff] %vm404_vm1, %v1226_v39  ;;  %v776_v41 = vpop.f32.mrb[32].mxu1 }
 0x23d   :  { %v671_v42 = vpop.f32.mrb[64].mxu0  ;;  %867 = vst.msk [vmem:[%s2025_s4 + $0x68] sm:$0xff] %vm404_vm1, %v1228_v40  ;;  %1237 = vtanh.f32 %v776_v41  ;;  %v778_v43 = vpop.f32.mrb[33].mxu1 }
 0x23e   :  { %v673_v44 = vpop.f32.mrb[65].mxu0  ;;  %1239 = vtanh.f32 %v671_v42 }
 0x23f   :  { %v1230_v45 = vpop.eup %1229 }
 0x240   :  { %v1232_v46 = vpop.eup %1231  ;;  %889 = vst.msk [vmem:[%s2025_s4 + $0x118] sm:$0xff] %vm404_vm1, %v1230_v45  ;;  %v781_v47 = vpop.f32.mrb[34].mxu1 }
 0x241   :  { %v676_v48 = vpop.f32.mrb[66].mxu0  ;;  %868 = vst.msk [vmem:[%s2025_s4 + $0x70] sm:$0xff] %vm404_vm1, %v1232_v46  ;;  %1241 = vtanh.f32 %v781_v47  ;;  %v783_v49 = vpop.f32.mrb[35].mxu1 }
 0x242   :  { %v678_v50 = vpop.f32.mrb[67].mxu0  ;;  %1243 = vtanh.f32 %v676_v48 }
 0x243   :  { %v1234_v51 = vpop.eup %1233 }
 0x244   :  { %v1236_v52 = vpop.eup %1235  ;;  %890 = vst.msk [vmem:[%s2025_s4 + $0x120] sm:$0xff] %vm404_vm1, %v1234_v51  ;;  %v786_v53 = vpop.f32.mrb[36].mxu1 }
 0x245   :  { %v681_v54 = vpop.f32.mrb[68].mxu0  ;;  %869 = vst.msk [vmem:[%s2025_s4 + $0x78] sm:$0xff] %vm404_vm1, %v1236_v52  ;;  %1245 = vtanh.f32 %v786_v53  ;;  %v788_v55 = vpop.f32.mrb[37].mxu1 }
 0x246   :  { %v683_v56 = vpop.f32.mrb[69].mxu0  ;;  %1247 = vtanh.f32 %v681_v54 }
 0x247   :  { %v1238_v35 = vpop.eup %1237 }
 0x248   :  { %v1240_v57 = vpop.eup %1239  ;;  %891 = vst.msk [vmem:[%s2025_s4 + $0x128] sm:$0xff] %vm404_vm1, %v1238_v35  ;;  %v791_v58 = vpop.f32.mrb[38].mxu1 }
 0x249   :  { %v686_v59 = vpop.f32.mrb[70].mxu0  ;;  %870 = vst.msk [vmem:[%s2025_s4 + $0x80] sm:$0xff] %vm404_vm1, %v1240_v57  ;;  %1249 = vtanh.f32 %v791_v58  ;;  %v793_v60 = vpop.f32.mrb[39].mxu1 }
 0x24a   :  { %v688_v61 = vpop.f32.mrb[71].mxu0  ;;  %1251 = vtanh.f32 %v686_v59 }
 0x24b   :  { %v1242_v62 = vpop.eup %1241 }
 0x24c   :  { %v1244_v63 = vpop.eup %1243  ;;  %892 = vst.msk [vmem:[%s2025_s4 + $0x130] sm:$0xff] %vm404_vm1, %v1242_v62  ;;  %v796_v0 = vpop.f32.mrb[40].mxu1 }
 0x24d   :  { %v691_v1 = vpop.f32.mrb[72].mxu0  ;;  %871 = vst.msk [vmem:[%s2025_s4 + $0x88] sm:$0xff] %vm404_vm1, %v1244_v63  ;;  %1253 = vtanh.f32 %v796_v0  ;;  %v798_v2 = vpop.f32.mrb[41].mxu1 }
 0x24e   :  { %v693_v3 = vpop.f32.mrb[73].mxu0  ;;  %1255 = vtanh.f32 %v691_v1 }
 0x24f   :  { %v1246_v4 = vpop.eup %1245 }
 0x250   :  { %v1248_v5 = vpop.eup %1247  ;;  %893 = vst.msk [vmem:[%s2025_s4 + $0x138] sm:$0xff] %vm404_vm1, %v1246_v4  ;;  %v801_v6 = vpop.f32.mrb[42].mxu1 }
 0x251   :  { %872 = vst.msk [vmem:[%s2025_s4 + $0x90] sm:$0xff] %vm404_vm1, %v1248_v5  ;;  %1257 = vtanh.f32 %v801_v6  ;;  %v803_v7 = vpop.f32.mrb[43].mxu1 }
 0x253   :  { %v1250_v8 = vpop.eup %1249 }
 0x254   :  { %v1252_v9 = vpop.eup %1251  ;;  %894 = vst.msk [vmem:[%s2025_s4 + $0x140] sm:$0xff] %vm404_vm1, %v1250_v8  ;;  %v806_v10 = vpop.f32.mrb[44].mxu1 }
 0x255   :  { %873 = vst.msk [vmem:[%s2025_s4 + $0x98] sm:$0xff] %vm404_vm1, %v1252_v9  ;;  %1259 = vtanh.f32 %v806_v10  ;;  %v808_v11 = vpop.f32.mrb[45].mxu1 }
 0x257   :  { %v1254_v12 = vpop.eup %1253 }
 0x258   :  { %v1256_v13 = vpop.eup %1255  ;;  %895 = vst.msk [vmem:[%s2025_s4 + $0x148] sm:$0xff] %vm404_vm1, %v1254_v12 }
 0x259   :  { %874 = vst.msk [vmem:[%s2025_s4 + $0xa0] sm:$0xff] %vm404_vm1, %v1256_v13 }
 0x25b   :  { %v1258_v14 = vpop.eup %1257 }
 0x25c   :  { %896 = vst.msk [vmem:[%s2025_s4 + $0x150] sm:$0xff] %vm404_vm1, %v1258_v14 }
 0x25f   :  { %v1260_v15 = vpop.eup %1259 }
 0x260   :  { %897 = vst.msk [vmem:[%s2025_s4 + $0x158] sm:$0xff] %vm404_vm1, %v1260_v15 }

// kernel: _lambda_.4
= control target key start
LH: loop header
LB: loop body
LE: loop exit
PB: predicated region body
PF: predicated region fallthrough
CT: control target
= control target key end

     0   :  { %vm58_vm0 = vcmask 1042432   ;;  %v2724_v3 = vmov 0.0   ;;  %v2725_v8 = vmov 0   ;;  %vm2726_vm1 = vmmov 1   ;;  %s2727_s24 = smov 114   ;;  %s2729_s25 = smov 113   ;;  %s3144_s0 = inlined_call_operand.vmem [shape: f32[27,712], index: 0, kind: input, shape index: {}]   ;;  %s3145_s2 = inlined_call_operand.vmem [shape: f32[8,27], index: 2, kind: input, shape index: {}]   ;;  %s3146_s3 = inlined_call_operand.vmem [shape: f32[8,1], index: 3, kind: input, shape index: {}]   ;;  %s3147_s1 = inlined_call_operand.vmem [shape: f32[1,712], index: 1, kind: input, shape index: {}]   ;;  %s3148_s5 = inlined_call_operand.vmem [shape: f32[8,1], index: 5, kind: input, shape index: {}]   ;;  %s3149_s4 = inlined_call_operand.vmem [shape: f32[9,8,8], index: 4, kind: input, shape index: {}]   ;;  %s3150_s6 = inlined_call_operand.vmem [shape: f32[8,648], index: 6, kind: output, shape index: {}]  }
   0x1   :  { %v25_v0 = vld [vmem:[%s3144_s0 + $0x8] sm:$0xff]  ;;  %v31_v1 = vld [vmem:[%s3144_s0 + $0x38] sm:$0xff]  ;;  %v24_v2 = vld [vmem:[%s3144_s0] sm:$0xff]  ;;  %141 = vmatprep.mubr.f32.mxu0 %v2724_v3  ;;  %506 = vmatprep.mubr.f32.mxu1 %v2724_v3  ;;  %vm54_vm3 = vcmask 220160   ;;  %v298_v41 = vlaneseq  ;;  %s2730_s26 = smov 97   ;;  %s2731_s27 = smov 96  }
   0x2   :  { %v2632_v4 = vpack.c.bf16 %v31_v1, %v25_v0  ;;  %v30_v5 = vld [vmem:[%s3144_s0 + $0x30] sm:$0xff]  ;;  %v37_v6 = vld [vmem:[%s3144_s0 + $0x68] sm:$0xff]  ;;  %v43_v7 = vld [vmem:[%s3144_s0 + $0x98] sm:$0x7]  ;;  %2722 = vset.pattern.permute.xlu0 %v2725_v8  ;;  %2723 = vset.pattern.permute.xlu1 %v2725_v8  ;;  %s2732_s28 = smov 95   ;;  %s2733_s29 = smov 79  }
   0x3   :  { %v2634_v9 = vpack.c.bf16 %v30_v5, %v24_v2  ;;  %v2636_v10 = vpack.c.bf16 %v43_v7, %v37_v6  ;;  %vm2792_vm2 = vmpackc.low %vm58_vm0, %vm2726_vm1  ;;  %v36_v12 = vld [vmem:[%s3144_s0 + $0x60] sm:$0xff]  ;;  %v42_v13 = vld [vmem:[%s3144_s0 + $0x90] sm:$0x7]  ;;  %v2874_v42 = vshrl.u32 %v298_v41, 7  ;;  %s2734_s30 = smov 78   ;;  %s2735_s7 = smov 77  }
   0x4   :  { %2633 = vmatprep.subr.bf16.mxu0 %v2632_v4  ;;  %v27_v14 = vld [vmem:[%s3144_s0 + $0x18] sm:$0xff]  ;;  %v33_v15 = vld [vmem:[%s3144_s0 + $0x48] sm:$0xff]  ;;  %v2639_v16 = vpack.c.bf16 %v42_v13, %v36_v12  ;;  %v26_v18 = vld [vmem:[%s3144_s0 + $0x10] sm:$0xff]  ;;  %vm355_vm4 = vcmask 932864   ;;  %vm367_vm5 = vcmask 64512   ;;  %vm596_vm6 = vcmask 941056  }
   0x5   :  { %2635 = vmatpush1.bf16.msra.mxu0 %v2634_v9  ;;  %v2642_v17 = vpack.c.bf16 %v33_v15, %v27_v14  ;;  %v32_v19 = vld [vmem:[%s3144_s0 + $0x40] sm:$0xff]  ;;  %v39_v20 = vld [vmem:[%s3144_s0 + $0x78] sm:$0xff]  ;;  %v45_v21 = vld [vmem:[%s3144_s0 + $0xa8] sm:$0x7]  ;;  %v300_v43 = vsub.s32 0, %v2874_v42  ;;  %v304_v46 = vsub.s32 1, %v2874_v42 }
   0x6   :  { %2638 = vmatprep.subr.msk.bf16.mxu0 %vm2792_vm2, %v2636_v10  ;;  %v23_v22 = vld [vmem:[%s3145_s2] sm:$0xff]  ;;  %v2644_v23 = vpack.c.bf16 %v32_v19, %v26_v18  ;;  %v2646_v25 = vpack.c.bf16 %v45_v21, %v39_v20  ;;  %v38_v26 = vld [vmem:[%s3144_s0 + $0x70] sm:$0xff]  ;;  %v29_v28 = vld [vmem:[%s3144_s0 + $0x28] sm:$0xff]  ;;  %v308_v56 = vsub.s32 2, %v2874_v42  ;;  %v312_v4 = vsub.s32 3, %v2874_v42 }
   0x7   :  { %v48_v24 = vld [vmem:[%s3146_s3] sm:$0xff]  ;;  %v35_v29 = vld [vmem:[%s3144_s0 + $0x58] sm:$0xff]  ;;  %v34_v33 = vld [vmem:[%s3144_s0 + $0x50] sm:$0xff]  ;;  %v316_v9 = vsub.s32 4, %v2874_v42  ;;  %v320_v13 = vsub.s32 5, %v2874_v42  ;;  %vm838_vm7 = vcmask 924672  }
   0x8   :  { %v44_v27 = vld [vmem:[%s3144_s0 + $0xa0] sm:$0x7]  ;;  %51 = vperm.xlu0 %2722, %v48_v24   ;;  %v2652_v31 = vpack.c.bf16 %v35_v29, %v29_v28  ;;  %v41_v34 = vld [vmem:[%s3144_s0 + $0x88] sm:$0xff]  ;;  %v47_v35 = vld [vmem:[%s3144_s0 + $0xb8] sm:$0x7]  ;;  %vm1086_vm8 = vcmask 793600  }
   0x9   :  { %2641 = vmatpush1.bf16.msk.msra.mxu0 %vm2792_vm2, %v2639_v16  ;;  %v2649_v30 = vpack.c.bf16 %v44_v27, %v38_v26  ;;  %v28_v32 = vld [vmem:[%s3144_s0 + $0x20] sm:$0xff]  ;;  %v2656_v37 = vpack.c.bf16 %v47_v35, %v41_v34  ;;  %v46_v39 = vld [vmem:[%s3144_s0 + $0xb0] sm:$0x7]  ;;  %vm1334_vm9 = vcmask 785408   ;;  %vm1582_vm10 = vcmask 777216  }
   0xa   :  { %2643 = vmatprep.subr.bf16.mxu0 %v2642_v17  ;;  %v2654_v36 = vpack.c.bf16 %v34_v33, %v28_v32  ;;  %v40_v38 = vld [vmem:[%s3144_s0 + $0x80] sm:$0xff]  ;;  %vm1830_vm11 = vcmask 646144   ;;  %vm2078_vm12 = vcmask 637952   ;;  %vm2326_vm13 = vcmask 629760  }
   0xb   :  { %v2659_v40 = vpack.c.bf16 %v46_v39, %v40_v38  ;;  %v296_v45 = vld [vmem:[%s3147_s1] sm:$0x3f]  ;;  %s2728_s1 = smov 115   ;;  %v2597_v39 = vld [vmem:[%s3149_s4 + $0x8] sm:$0xff] }
   0xc   :  { %2590 = vmatmul.mubr.msk.f32.vlgmr.msra.gmra.mrb[0].mxu0 %vm54_vm3, %v23_v22  ;;  %v301_v49 = vrot.slane %v296_v45, %v300_v43  ;;  %v305_v52 = vrot.slane %v296_v45, %v304_v46  ;;  %v309_v60 = vrot.slane %v296_v45, %v308_v56  ;;  %v313_v6 = vrot.slane %v296_v45, %v312_v4  ;;  %v2560_v18 = vld [vmem:[%s3148_s5] sm:$0xff] }
   0xd   :  { %2645 = vmatpush1.bf16.msra.mxu0 %v2644_v23  ;;  %212 = vmatprep.mubr.f32.mxu0 %v2724_v3  ;;  %v317_v11 = vrot.slane %v296_v45, %v316_v9  ;;  %v321_v16 = vrot.slane %v296_v45, %v320_v13 }
   0xe   :  { %2648 = vmatprep.subr.msk.bf16.mxu0 %vm2792_vm2, %v2646_v25 }
  0x11   :  { %2651 = vmatpush1.bf16.msk.msra.mxu0 %vm2792_vm2, %v2649_v30 }
  0x12   :  { %2653 = vmatprep.subr.bf16.mxu0 %v2652_v31 }
  0x14   :  { %2593 = vmatmul.mubr.msk.f32.vlgmr.msra.gmra.mrb[2].mxu0 %vm54_vm3, %v23_v22 }
  0x15   :  { %2655 = vmatpush1.bf16.msra.mxu0 %v2654_v36  ;;  %283 = vmatprep.mubr.f32.mxu0 %v2724_v3 }
  0x16   :  { %2658 = vmatprep.subr.msk.bf16.mxu0 %vm2792_vm2, %v2656_v37 }
  0x19   :  { %2661 = vmatpush1.bf16.msk.msra.mxu0 %vm2792_vm2, %v2659_v40 }
  0x1c   :  { %2596 = vmatmul.mubr.msk.f32.vlgmr.msra.gmra.mrb[4].mxu0 %vm54_vm3, %v23_v22 }
  0x1d   :  { %435 = vmatprep.mubr.f32.mxu0 %v2724_v3 }
  0x87   :  { %v52_v44 = vpop.permute.xlu0 %51 }
  0xdf   :  { %v143_v47 = vpop.f32.mrb[0].mxu0 }
  0xe0   :  { %v144_v48 = vadd.f32 %v143_v47, %v52_v44  ;;  %v145_v50 = vpop.f32.mrb[1].mxu0 }
  0xe1   :  { %v146_v51 = vadd.f32 %v145_v50, %v52_v44  ;;  %v334_v50 = vld [vmem:[%s3149_s4] sm:$0xff] }
  0xe2   :  { %v290_v53 = vmax.f32 %v144_v48, 0.0 }
  0xe3   :  { %v291_v54 = vmax.f32 %v146_v51, 0.0 }
  0xe4   :  { %v2881_v55 = vmul.f32 %v301_v49, %v290_v53 }
  0xe5   :  { %v2884_v57 = vmul.f32 %v305_v52, %v291_v54 }
  0xe6   :  { %343 = vrot.lane.b32.xlu1 %v2881_v55, %s2727_s24 }
  0xe7   :  { %v214_v58 = vpop.f32.mrb[2].mxu0  ;;  %345 = vrot.lane.b32.xlu0 %v2884_v57, %s2727_s24 }
  0xe8   :  { %v215_v59 = vadd.f32 %v214_v58, %v52_v44  ;;  %v216_v61 = vpop.f32.mrb[3].mxu0 }
  0xe9   :  { %v217_v2 = vadd.f32 %v216_v61, %v52_v44  ;;  %v2604_v61 = vld [vmem:[%s3149_s4 + $0x10] sm:$0xff] }
  0xea   :  { %v292_v62 = vmax.f32 %v215_v59, 0.0  ;;  %584 = vrot.lane.b32.xlu1 %v2881_v55, %s2728_s1 }
  0xeb   :  { %v293_v5 = vmax.f32 %v217_v2, 0.0 }
  0xec   :  { %v2892_v63 = vmul.f32 %v309_v60, %v292_v62 }
  0xed   :  { %v331_v7 = vmul.f32 %v313_v6, %v293_v5 }
  0xee   :  { %588 = vrot.lane.b32.xlu0 %v2892_v63, %s2728_s1  ;;  %826 = vrot.lane.b32.xlu1 %v2881_v55, %s2729_s25 }
  0xef   :  { %v285_v0 = vpop.f32.mrb[4].mxu0 }
  0xf0   :  { %v287_v1 = vpop.f32.mrb[5].mxu0  ;;  %v286_v8 = vadd.f32 %v285_v0, %v52_v44 }
  0xf1   :  { %v288_v12 = vadd.f32 %v287_v1, %v52_v44 }
  0xf2   :  { %830 = vrot.lane.b32.xlu0 %v2892_v63, %s2729_s25  ;;  %1074 = vrot.lane.b32.xlu1 %v2881_v55, %s2730_s26  ;;  %v294_v10 = vmax.f32 %v286_v8, 0.0  ;;  %v2608_v8 = vld [vmem:[%s3149_s4 + $0x18] sm:$0xff] }
  0xf3   :  { %v295_v15 = vmax.f32 %v288_v12, 0.0 }
  0xf4   :  { %v332_v14 = vmul.f32 %v317_v11, %v294_v10 }
  0xf5   :  { %v333_v17 = vmul.f32 %v321_v16, %v295_v15 }
  0xf6   :  { %1078 = vrot.lane.b32.xlu0 %v2892_v63, %s2730_s26  ;;  %1322 = vrot.lane.b32.xlu1 %v2881_v55, %s2731_s27 }
  0xfa   :  { %1326 = vrot.lane.b32.xlu0 %v2892_v63, %s2731_s27  ;;  %586 = vrot.lane.b32.xlu1 %v2884_v57, %s2728_s1 }
  0xfe   :  { %349 = vrot.lane.b32.xlu0 %v331_v7, %s2727_s24  ;;  %828 = vrot.lane.b32.xlu1 %v2884_v57, %s2729_s25 }
 0x102   :  { %590 = vrot.lane.b32.xlu0 %v331_v7, %s2728_s1  ;;  %1076 = vrot.lane.b32.xlu1 %v2884_v57, %s2730_s26 }
 0x106   :  { %832 = vrot.lane.b32.xlu0 %v331_v7, %s2729_s25  ;;  %1324 = vrot.lane.b32.xlu1 %v2884_v57, %s2731_s27 }
 0x10a   :  { %1080 = vrot.lane.b32.xlu0 %v331_v7, %s2730_s26  ;;  %347 = vrot.lane.b32.xlu1 %v2892_v63, %s2727_s24 }
 0x10e   :  { %1328 = vrot.lane.b32.xlu0 %v331_v7, %s2731_s27  ;;  %351 = vrot.lane.b32.xlu1 %v332_v14, %s2727_s24 }
 0x112   :  { %353 = vrot.lane.b32.xlu0 %v333_v17, %s2727_s24  ;;  %1572 = vrot.lane.b32.xlu1 %v2884_v57, %s2732_s28 }
 0x116   :  { %1574 = vrot.lane.b32.xlu0 %v2892_v63, %s2732_s28  ;;  %592 = vrot.lane.b32.xlu1 %v332_v14, %s2728_s1 }
 0x11a   :  { %594 = vrot.lane.b32.xlu0 %v333_v17, %s2728_s1  ;;  %834 = vrot.lane.b32.xlu1 %v332_v14, %s2729_s25 }
 0x11e   :  { %1576 = vrot.lane.b32.xlu0 %v331_v7, %s2732_s28  ;;  %1082 = vrot.lane.b32.xlu1 %v332_v14, %s2730_s26 }
 0x122   :  { %836 = vrot.lane.b32.xlu0 %v333_v17, %s2729_s25  ;;  %1330 = vrot.lane.b32.xlu1 %v332_v14, %s2731_s27 }
 0x126   :  { %1822 = vrot.lane.b32.xlu0 %v2892_v63, %s2733_s29  ;;  %1570 = vrot.lane.b32.xlu1 %v2881_v55, %s2732_s28 }
 0x12a   :  { %1084 = vrot.lane.b32.xlu0 %v333_v17, %s2730_s26  ;;  %1578 = vrot.lane.b32.xlu1 %v332_v14, %s2732_s28 }
 0x12e   :  { %1824 = vrot.lane.b32.xlu0 %v331_v7, %s2733_s29  ;;  %1820 = vrot.lane.b32.xlu1 %v2884_v57, %s2733_s29 }
 0x132   :  { %1332 = vrot.lane.b32.xlu0 %v333_v17, %s2731_s27  ;;  %1818 = vrot.lane.b32.xlu1 %v2881_v55, %s2733_s29 }
 0x136   :  { %2070 = vrot.lane.b32.xlu0 %v2892_v63, %s2734_s30  ;;  %1826 = vrot.lane.b32.xlu1 %v332_v14, %s2733_s29 }
 0x13a   :  { %1580 = vrot.lane.b32.xlu0 %v333_v17, %s2732_s28  ;;  %2068 = vrot.lane.b32.xlu1 %v2884_v57, %s2734_s30 }
 0x13e   :  { %2072 = vrot.lane.b32.xlu0 %v331_v7, %s2734_s30  ;;  %2066 = vrot.lane.b32.xlu1 %v2881_v55, %s2734_s30 }
 0x142   :  { %1828 = vrot.lane.b32.xlu0 %v333_v17, %s2733_s29  ;;  %2074 = vrot.lane.b32.xlu1 %v332_v14, %s2734_s30 }
 0x146   :  { %2318 = vrot.lane.b32.xlu0 %v2892_v63, %s2735_s7  ;;  %2316 = vrot.lane.b32.xlu1 %v2884_v57, %s2735_s7 }
 0x14a   :  { %2076 = vrot.lane.b32.xlu0 %v333_v17, %s2734_s30  ;;  %2314 = vrot.lane.b32.xlu1 %v2881_v55, %s2735_s7 }
 0x14e   :  { %2320 = vrot.lane.b32.xlu0 %v331_v7, %s2735_s7  ;;  %2322 = vrot.lane.b32.xlu1 %v332_v14, %s2735_s7 }
 0x152   :  { %2324 = vrot.lane.b32.xlu0 %v333_v17, %s2735_s7  ;;  %2563 = vperm.xlu1 %2723, %v2560_v18   ;;  %v2612_v18 = vld [vmem:[%s3149_s4 + $0x20] sm:$0xff] }
 0x158   :  { %v344_v19 = vpop.permute.xlu1 %343 }
 0x159   :  { %v346_v20 = vpop.permute.xlu0 %345 }
 0x15a   :  { %v356_v40 = vsel %vm355_vm4, %v344_v19, %v346_v20 }
 0x15c   :  { %v585_v21 = vpop.permute.xlu1 %584 }
 0x160   :  { %v589_v22 = vpop.permute.xlu0 %588  ;;  %v827_v23 = vpop.permute.xlu1 %826 }
 0x164   :  { %v2951_v24 = vpop.permute.xlu0 %830  ;;  %v2953_v25 = vpop.permute.xlu1 %1074 }
 0x168   :  { %v2955_v26 = vpop.permute.xlu0 %1078  ;;  %v2957_v27 = vpop.permute.xlu1 %1322 }
 0x16c   :  { %v2959_v28 = vpop.permute.xlu0 %1326  ;;  %v587_v29 = vpop.permute.xlu1 %586 }
 0x16d   :  { %v598_v45 = vsel %vm596_vm6, %v587_v29, %v589_v22  ;;  %v597_v46 = vsel %vm596_vm6, %v585_v21, %v587_v29 }
 0x170   :  { %v350_v30 = vpop.permute.xlu0 %349  ;;  %v829_v31 = vpop.permute.xlu1 %828 }
 0x171   :  { %v840_v55 = vsel %vm838_vm7, %v829_v31, %v2951_v24  ;;  %v839_v56 = vsel %vm838_vm7, %v827_v23, %v829_v31 }
 0x174   :  { %v591_v32 = vpop.permute.xlu0 %590  ;;  %v2961_v33 = vpop.permute.xlu1 %1076 }
 0x175   :  { %v599_v54 = vsel %vm596_vm6, %v589_v22, %v591_v32  ;;  %v1088_v1 = vsel %vm1086_vm8, %v2961_v33, %v2955_v26  ;;  %v1087_v2 = vsel %vm1086_vm8, %v2953_v25, %v2961_v33 }
 0x178   :  { %v833_v34 = vpop.permute.xlu0 %832  ;;  %v2963_v35 = vpop.permute.xlu1 %1324 }
 0x179   :  { %v841_v62 = vsel %vm838_vm7, %v2951_v24, %v833_v34  ;;  %v1336_v12 = vsel %vm1334_vm9, %v2963_v35, %v2959_v28  ;;  %v1335_v13 = vsel %vm1334_vm9, %v2957_v27, %v2963_v35 }
 0x17c   :  { %v2965_v36 = vpop.permute.xlu0 %1080  ;;  %v348_v37 = vpop.permute.xlu1 %347 }
 0x17d   :  { %v357_v38 = vsel %vm355_vm4, %v346_v20, %v348_v37  ;;  %v358_v44 = vsel %vm355_vm4, %v348_v37, %v350_v30  ;;  %v1089_v9 = vsel %vm1086_vm8, %v2955_v26, %v2965_v36 }
 0x17e   :  { %371 = vmatprep.subr.mxu0 %v357_v38  ;;  %v2620_v38 = vld [vmem:[%s3149_s4 + $0x30] sm:$0xff] }
 0x17f   :  { %372 = vmatpush1.msra.mxu0 %v356_v40 }
 0x180   :  { %v2972_v41 = vpop.permute.xlu0 %1328  ;;  %v352_v42 = vpop.permute.xlu1 %351  ;;  %2598 = vmatmul.mubr.msk.f32.vlgmr.msra.gmra.mrb[6].mxu0 %vm367_vm5, %v2597_v39 }
 0x181   :  { %v359_v43 = vsel %vm355_vm4, %v350_v30, %v352_v42  ;;  %577 = vmatprep.mubr.f32.mxu0 %v2724_v3  ;;  %v1337_v19 = vsel %vm1334_vm9, %v2959_v28, %v2972_v41  ;;  %v2616_v28 = vld [vmem:[%s3149_s4 + $0x28] sm:$0xff] }
 0x182   :  { %442 = vmatprep.subr.mxu1 %v359_v43 }
 0x183   :  { %443 = vmatpush1.msra.mxu1 %v358_v44 }
 0x184   :  { %v354_v47 = vpop.permute.xlu0 %353  ;;  %2599 = vmatmul.mubr.msk.f32.vlgmr.msra.gmra.mrb[0].mxu1 %vm367_vm5, %v2597_v39  ;;  %611 = vmatprep.subr.mxu1 %v598_v45  ;;  %v2981_v48 = vpop.permute.xlu1 %1572 }
 0x185   :  { %v360_v49 = vsel %vm355_vm4, %v352_v42, %v354_v47  ;;  %513 = vmatprep.subr.mxu0 %v354_v47  ;;  %612 = vmatpush1.msra.mxu1 %v597_v46 }
 0x186   :  { %514 = vmatpush1.msra.mxu0 %v360_v49  ;;  %675 = vmatprep.mubr.f32.mxu1 %v2724_v3 }
 0x187   :  { %2600 = vmatmul.mubr.msk.f32.vlgmr.msra.gmra.mrb[8].mxu0 %vm367_vm5, %v2597_v39 }
 0x188   :  { %v2989_v51 = vpop.permute.xlu0 %1574  ;;  %2601 = vmatmul.mubr.msk.f32.vlgmr.msra.gmra.mrb[2].mxu1 %vm367_vm5, %v334_v50  ;;  %v593_v52 = vpop.permute.xlu1 %592  ;;  %817 = vmatprep.mubr.f32.mxu0 %v2724_v3 }
 0x189   :  { %v600_v53 = vsel %vm596_vm6, %v591_v32, %v593_v52  ;;  %746 = vmatprep.mubr.f32.mxu1 %v2724_v3  ;;  %v1584_v22 = vsel %vm1582_vm10, %v2981_v48, %v2989_v51 }
 0x18a   :  { %682 = vmatprep.subr.mxu1 %v600_v53 }
 0x18b   :  { %683 = vmatpush1.msra.mxu1 %v599_v54 }
 0x18c   :  { %v595_v57 = vpop.permute.xlu0 %594  ;;  %2602 = vmatmul.mubr.msk.f32.vlgmr.msra.gmra.mrb[0].mxu1 %vm367_vm5, %v334_v50  ;;  %853 = vmatprep.subr.mxu1 %v840_v55  ;;  %v835_v58 = vpop.permute.xlu1 %834 }
 0x18d   :  { %v601_v59 = vsel %vm596_vm6, %v593_v52, %v595_v57  ;;  %753 = vmatprep.subr.mxu0 %v595_v57  ;;  %854 = vmatpush1.msra.mxu1 %v839_v56  ;;  %v842_v60 = vsel %vm838_vm7, %v833_v34, %v835_v58  ;;  %v2628_v57 = vld [vmem:[%s3149_s4 + $0x40] sm:$0xff] }
 0x18e   :  { %754 = vmatpush1.msra.mxu0 %v601_v59  ;;  %924 = vmatprep.subr.mxu1 %v842_v60 }
 0x18f   :  { %2603 = vmatmul.mubr.msk.f32.vlgmr.msra.gmra.mrb[8].mxu0 %vm367_vm5, %v334_v50  ;;  %917 = vmatprep.mubr.f32.mxu1 %v2724_v3 }
 0x190   :  { %v3009_v63 = vpop.permute.xlu0 %1576  ;;  %2605 = vmatmul.mubr.msk.f32.vlgmr.msra.gmra.mrb[2].mxu1 %vm367_vm5, %v2604_v61  ;;  %v1083_v0 = vpop.permute.xlu1 %1082  ;;  %1059 = vmatprep.mubr.f32.mxu0 %v2724_v3 }
 0x191   :  { %925 = vmatpush1.msra.mxu1 %v841_v62  ;;  %988 = vmatprep.mubr.f32.mxu1 %v2724_v3  ;;  %v1090_v7 = vsel %vm1086_vm8, %v2965_v36, %v1083_v0  ;;  %v1585_v29 = vsel %vm1582_vm10, %v2989_v51, %v3009_v63 }
 0x192   :  { %1101 = vmatprep.subr.mxu1 %v1088_v1 }
 0x194   :  { %v837_v4 = vpop.permute.xlu0 %836  ;;  %2606 = vmatmul.mubr.msk.f32.vlgmr.msra.gmra.mrb[0].mxu1 %vm367_vm5, %v2604_v61  ;;  %v1331_v5 = vpop.permute.xlu1 %1330 }
 0x195   :  { %v843_v6 = vsel %vm838_vm7, %v835_v58, %v837_v4  ;;  %1102 = vmatpush1.msra.mxu1 %v1087_v2  ;;  %995 = vmatprep.subr.mxu0 %v837_v4  ;;  %v1338_v17 = vsel %vm1334_vm9, %v2972_v41, %v1331_v5 }
 0x196   :  { %1172 = vmatprep.subr.mxu1 %v1090_v7  ;;  %996 = vmatpush1.msra.mxu0 %v843_v6 }
 0x197   :  { %2607 = vmatmul.mubr.msk.f32.vlgmr.msra.gmra.mrb[8].mxu0 %vm367_vm5, %v2604_v61  ;;  %1165 = vmatprep.mubr.f32.mxu1 %v2724_v3 }
 0x198   :  { %v3032_v10 = vpop.permute.xlu0 %1822  ;;  %2609 = vmatmul.mubr.msk.f32.vlgmr.msra.gmra.mrb[2].mxu1 %vm367_vm5, %v2608_v8  ;;  %v1571_v11 = vpop.permute.xlu1 %1570  ;;  %1307 = vmatprep.mubr.f32.mxu0 %v2724_v3 }
 0x199   :  { %1173 = vmatpush1.msra.mxu1 %v1089_v9  ;;  %1236 = vmatprep.mubr.f32.mxu1 %v2724_v3  ;;  %v1583_v23 = vsel %vm1582_vm10, %v1571_v11, %v2981_v48  ;;  %v2624_v48 = vld [vmem:[%s3149_s4 + $0x38] sm:$0xff] }
 0x19a   :  { %1349 = vmatprep.subr.mxu1 %v1336_v12 }
 0x19c   :  { %v1085_v14 = vpop.permute.xlu0 %1084  ;;  %2610 = vmatmul.mubr.msk.f32.vlgmr.msra.gmra.mrb[0].mxu1 %vm367_vm5, %v2608_v8  ;;  %v1579_v15 = vpop.permute.xlu1 %1578 }
 0x19d   :  { %v1091_v16 = vsel %vm1086_vm8, %v1083_v0, %v1085_v14  ;;  %1350 = vmatpush1.msra.mxu1 %v1335_v13  ;;  %1243 = vmatprep.subr.mxu0 %v1085_v14  ;;  %v1586_v27 = vsel %vm1582_vm10, %v3009_v63, %v1579_v15 }
 0x19e   :  { %1420 = vmatprep.subr.mxu1 %v1338_v17  ;;  %1244 = vmatpush1.msra.mxu0 %v1091_v16 }
 0x19f   :  { %2611 = vmatmul.mubr.msk.f32.vlgmr.msra.gmra.mrb[8].mxu0 %vm367_vm5, %v2608_v8  ;;  %1413 = vmatprep.mubr.f32.mxu1 %v2724_v3 }
 0x1a0   :  { %v1825_v20 = vpop.permute.xlu0 %1824  ;;  %2613 = vmatmul.mubr.msk.f32.vlgmr.msra.gmra.mrb[2].mxu1 %vm367_vm5, %v2612_v18  ;;  %v1821_v21 = vpop.permute.xlu1 %1820  ;;  %1555 = vmatprep.mubr.f32.mxu0 %v2724_v3 }
 0x1a1   :  { %1421 = vmatpush1.msra.mxu1 %v1337_v19  ;;  %1484 = vmatprep.mubr.f32.mxu1 %v2724_v3  ;;  %v1832_v32 = vsel %vm1830_vm11, %v1821_v21, %v3032_v10  ;;  %v1833_v39 = vsel %vm1830_vm11, %v3032_v10, %v1825_v20 }
 0x1a2   :  { %1597 = vmatprep.subr.mxu1 %v1584_v22 }
 0x1a4   :  { %v1333_v24 = vpop.permute.xlu0 %1332  ;;  %2614 = vmatmul.mubr.msk.f32.vlgmr.msra.gmra.mrb[0].mxu1 %vm367_vm5, %v2612_v18  ;;  %v1819_v25 = vpop.permute.xlu1 %1818 }
 0x1a5   :  { %v1339_v26 = vsel %vm1334_vm9, %v1331_v5, %v1333_v24  ;;  %1598 = vmatpush1.msra.mxu1 %v1583_v23  ;;  %1491 = vmatprep.subr.mxu0 %v1333_v24  ;;  %v1831_v33 = vsel %vm1830_vm11, %v1819_v25, %v1821_v21 }
 0x1a6   :  { %1668 = vmatprep.subr.mxu1 %v1586_v27  ;;  %1492 = vmatpush1.msra.mxu0 %v1339_v26 }
 0x1a7   :  { %2615 = vmatmul.mubr.msk.f32.vlgmr.msra.gmra.mrb[8].mxu0 %vm367_vm5, %v2612_v18  ;;  %1661 = vmatprep.mubr.f32.mxu1 %v2724_v3 }
 0x1a8   :  { %v2071_v30 = vpop.permute.xlu0 %2070  ;;  %2617 = vmatmul.mubr.msk.f32.vlgmr.msra.gmra.mrb[2].mxu1 %vm367_vm5, %v2616_v28  ;;  %v1827_v31 = vpop.permute.xlu1 %1826  ;;  %1803 = vmatprep.mubr.f32.mxu0 %v2724_v3 }
 0x1a9   :  { %1669 = vmatpush1.msra.mxu1 %v1585_v29  ;;  %1732 = vmatprep.mubr.f32.mxu1 %v2724_v3  ;;  %v1834_v37 = vsel %vm1830_vm11, %v1825_v20, %v1827_v31 }
 0x1aa   :  { %1845 = vmatprep.subr.mxu1 %v1832_v32 }
 0x1ac   :  { %v1581_v34 = vpop.permute.xlu0 %1580  ;;  %2618 = vmatmul.mubr.msk.f32.vlgmr.msra.gmra.mrb[0].mxu1 %vm367_vm5, %v2616_v28  ;;  %v2069_v35 = vpop.permute.xlu1 %2068 }
 0x1ad   :  { %v1587_v36 = vsel %vm1582_vm10, %v1579_v15, %v1581_v34  ;;  %1846 = vmatpush1.msra.mxu1 %v1831_v33  ;;  %1739 = vmatprep.subr.mxu0 %v1581_v34  ;;  %v2080_v42 = vsel %vm2078_vm12, %v2069_v35, %v2071_v30 }
 0x1ae   :  { %1916 = vmatprep.subr.mxu1 %v1834_v37  ;;  %1740 = vmatpush1.msra.mxu0 %v1587_v36 }
 0x1af   :  { %2619 = vmatmul.mubr.msk.f32.vlgmr.msra.gmra.mrb[8].mxu0 %vm367_vm5, %v2616_v28  ;;  %1909 = vmatprep.mubr.f32.mxu1 %v2724_v3 }
 0x1b0   :  { %v2073_v40 = vpop.permute.xlu0 %2072  ;;  %2621 = vmatmul.mubr.msk.f32.vlgmr.msra.gmra.mrb[2].mxu1 %vm367_vm5, %v2620_v38  ;;  %v2067_v41 = vpop.permute.xlu1 %2066  ;;  %2051 = vmatprep.mubr.f32.mxu0 %v2724_v3 }
 0x1b1   :  { %1917 = vmatpush1.msra.mxu1 %v1833_v39  ;;  %1980 = vmatprep.mubr.f32.mxu1 %v2724_v3  ;;  %v2079_v43 = vsel %vm2078_vm12, %v2067_v41, %v2069_v35  ;;  %v2081_v49 = vsel %vm2078_vm12, %v2071_v30, %v2073_v40 }
 0x1b2   :  { %2093 = vmatprep.subr.mxu1 %v2080_v42 }
 0x1b4   :  { %v1829_v44 = vpop.permute.xlu0 %1828  ;;  %2622 = vmatmul.mubr.msk.f32.vlgmr.msra.gmra.mrb[0].mxu1 %vm367_vm5, %v2620_v38  ;;  %v2075_v45 = vpop.permute.xlu1 %2074 }
 0x1b5   :  { %v1835_v46 = vsel %vm1830_vm11, %v1827_v31, %v1829_v44  ;;  %2094 = vmatpush1.msra.mxu1 %v2079_v43  ;;  %1987 = vmatprep.subr.mxu0 %v1829_v44  ;;  %v2082_v47 = vsel %vm2078_vm12, %v2073_v40, %v2075_v45 }
 0x1b6   :  { %1988 = vmatpush1.msra.mxu0 %v1835_v46  ;;  %2164 = vmatprep.subr.mxu1 %v2082_v47 }
 0x1b7   :  { %2623 = vmatmul.mubr.msk.f32.vlgmr.msra.gmra.mrb[8].mxu0 %vm367_vm5, %v2620_v38  ;;  %2157 = vmatprep.mubr.f32.mxu1 %v2724_v3 }
 0x1b8   :  { %v2319_v50 = vpop.permute.xlu0 %2318  ;;  %2625 = vmatmul.mubr.msk.f32.vlgmr.msra.gmra.mrb[2].mxu1 %vm367_vm5, %v2624_v48  ;;  %v2317_v51 = vpop.permute.xlu1 %2316  ;;  %2299 = vmatprep.mubr.f32.mxu0 %v2724_v3 }
 0x1b9   :  { %2165 = vmatpush1.msra.mxu1 %v2081_v49  ;;  %v2328_v52 = vsel %vm2326_vm13, %v2317_v51, %v2319_v50  ;;  %2228 = vmatprep.mubr.f32.mxu1 %v2724_v3 }
 0x1ba   :  { %2341 = vmatprep.subr.mxu1 %v2328_v52 }
 0x1bc   :  { %v2077_v53 = vpop.permute.xlu0 %2076  ;;  %2626 = vmatmul.mubr.msk.f32.vlgmr.msra.gmra.mrb[0].mxu1 %vm367_vm5, %v2624_v48  ;;  %v2315_v54 = vpop.permute.xlu1 %2314 }
 0x1bd   :  { %v2083_v55 = vsel %vm2078_vm12, %v2075_v45, %v2077_v53  ;;  %v2327_v56 = vsel %vm2326_vm13, %v2315_v54, %v2317_v51  ;;  %2235 = vmatprep.subr.mxu0 %v2077_v53  ;;  %2405 = vmatprep.mubr.f32.mxu1 %v2724_v3 }
 0x1be   :  { %2236 = vmatpush1.msra.mxu0 %v2083_v55  ;;  %2342 = vmatpush1.msra.mxu1 %v2327_v56 }
 0x1bf   :  { %2627 = vmatmul.mubr.msk.f32.vlgmr.msra.gmra.mrb[8].mxu0 %vm367_vm5, %v2624_v48 }
 0x1c0   :  { %v2321_v58 = vpop.permute.xlu0 %2320  ;;  %2629 = vmatmul.mubr.msk.f32.vlgmr.msra.gmra.mrb[2].mxu1 %vm367_vm5, %v2628_v57  ;;  %v2323_v59 = vpop.permute.xlu1 %2322  ;;  %2547 = vmatprep.mubr.f32.mxu0 %v2724_v3 }
 0x1c1   :  { %v2329_v60 = vsel %vm2326_vm13, %v2319_v50, %v2321_v58  ;;  %v2330_v61 = vsel %vm2326_vm13, %v2321_v58, %v2323_v59  ;;  %2476 = vmatprep.mubr.f32.mxu1 %v2724_v3 }
 0x1c2   :  { %2412 = vmatprep.subr.mxu1 %v2330_v61 }
 0x1c3   :  { %2413 = vmatpush1.msra.mxu1 %v2329_v60 }
 0x1c4   :  { %v2325_v62 = vpop.permute.xlu0 %2324  ;;  %2630 = vmatmul.mubr.msk.f32.vlgmr.msra.gmra.mrb[0].mxu1 %vm367_vm5, %v2628_v57 }
 0x1c5   :  { %v2331_v63 = vsel %vm2326_vm13, %v2323_v59, %v2325_v62  ;;  %2483 = vmatprep.subr.mxu0 %v2325_v62 }
 0x1c6   :  { %2484 = vmatpush1.msra.mxu0 %v2331_v63 }
 0x1c7   :  { %2631 = vmatmul.mubr.msk.f32.vlgmr.msra.gmra.mrb[8].mxu0 %vm367_vm5, %v2628_v57 }
 0x1d1   :  { %v2564_v4 = vpop.permute.xlu1 %2563 }
 0x253   :  { %v437_v0 = vpop.f32.mrb[6].mxu0 }
 0x254   :  { %v439_v1 = vpop.f32.mrb[7].mxu0 }
 0x293   :  { %v2407_v2 = vpop.f32.mrb[2].mxu1 }
 0x294   :  { %v2662_v5 = vadd.f32 %v2407_v2, %v437_v0  ;;  %v2409_v6 = vpop.f32.mrb[3].mxu1 }
 0x295   :  { %v2663_v7 = vadd.f32 %v2409_v6, %v439_v1 }
 0x296   :  { %v2566_v8 = vadd.f32 %v2662_v5, %v2564_v4 }
 0x297   :  { %v2567_v3 = vadd.f32 %v2663_v7, %v2564_v4  ;;  %v2478_v9 = vpop.f32.mrb[0].mxu1 }
 0x298   :  { %v2572_v10 = vmax.f32 %v2566_v8, 0.0  ;;  %v2568_v11 = vadd.f32 %v2564_v4, %v2478_v9  ;;  %v2480_v12 = vpop.f32.mrb[1].mxu1 }
 0x299   :  { %v2573_v13 = vmax.f32 %v2567_v3, 0.0  ;;  %v2569_v14 = vadd.f32 %v2564_v4, %v2480_v12 }
 0x29a   :  { %2578 = vst [vmem:[%s3150_s6] sm:$0xff] %v2572_v10  ;;  %v2574_v15 = vmax.f32 %v2568_v11, 0.0  ;;  %v2549_v16 = vpop.f32.mrb[8].mxu0 }
 0x29b   :  { %2579 = vst [vmem:[%s3150_s6 + $0x8] sm:$0xff] %v2573_v13  ;;  %v2575_v17 = vmax.f32 %v2569_v14, 0.0  ;;  %v2570_v18 = vadd.f32 %v2564_v4, %v2549_v16  ;;  %v2551_v19 = vpop.f32.mrb[9].mxu0 }
 0x29c   :  { %2580 = vst [vmem:[%s3150_s6 + $0x10] sm:$0xff] %v2574_v15  ;;  %v2571_v20 = vadd.f32 %v2564_v4, %v2551_v19 }
 0x29d   :  { %2581 = vst [vmem:[%s3150_s6 + $0x18] sm:$0xff] %v2575_v17  ;;  %v2576_v21 = vmax.f32 %v2570_v18, 0.0 }
 0x29e   :  { %v2577_v22 = vmax.f32 %v2571_v20, 0.0 }
 0x29f   :  { %2582 = vst [vmem:[%s3150_s6 + $0x20] sm:$0xff] %v2576_v21 }
 0x2a0   :  { %2583 = vst.msk [vmem:[%s3150_s6 + $0x28] sm:$0xff] %vm367_vm5, %v2577_v22 }

// kernel: _lambda_.7
= control target key start
LH: loop header
LB: loop body
LE: loop exit
PB: predicated region body
PF: predicated region fallthrough
CT: control target
= control target key end

     0   :  { %v184_v3 = vmov 0.0|0.0   ;;  %vm185_vm0 = vmmov 0   ;;  %v186_v6 = vmov 0.0   ;;  %s247_s0 = inlined_call_operand.vmem [shape: f32[2,56], index: 0, kind: input, shape index: {}]   ;;  %s248_s1 = inlined_call_operand.vmem [shape: f32[56,10], index: 1, kind: input, shape index: {}]   ;;  %s249_s2 = inlined_call_operand.vmem [shape: f32[1,10], index: 2, kind: input, shape index: {}]   ;;  %s250_s3 = inlined_call_operand.hbm [shape: f32[2,10], index: 3, kind: output, shape index: {}]  }
   0x1   :  { %v16_v0 = vld [vmem:[%s248_s1] sm:$0xff]  ;;  %v17_v1 = vld [vmem:[%s248_s1 + $0x8] sm:$0xff]  ;;  %v18_v2 = vld [vmem:[%s248_s1 + $0x10] sm:$0xff]  ;;  %147 = vmatprep.subr.bf16.mxu0 %v184_v3  ;;  %144 = vmatprep.mubr.msk.f32.mxu0 %vm185_vm0, %v186_v6 }
   0x2   :  { %v148_v4 = vpack.c.bf16 %v17_v1, %v16_v0  ;;  %v19_v5 = vld [vmem:[%s248_s1 + $0x18] sm:$0xff] }
   0x3   :  { %v151_v7 = vpack.c.bf16 %v19_v5, %v18_v2 }
   0x4   :  { %149 = vmatpush3.bf16.msra.mxu0 %v148_v4 }
   0x5   :  { %8 = vsyncpa [#allocation3], 0  ;;  %150 = vmatprep.subr.bf16.mxu0 %v184_v3  ;;  %v20_v8 = vld [vmem:[%s248_s1 + $0x20] sm:$0xff]  ;;  %v21_v9 = vld [vmem:[%s248_s1 + $0x28] sm:$0xff]  ;;  %vm30_vm1 = vcmask 457728   ;;  %s187_s30 = smov [#allocation2]  }
   0x6   :  { %v154_v10 = vpack.c.bf16 %v21_v9, %v20_v8  ;;  %v22_v11 = vld [vmem:[%s248_s1 + $0x30] sm:$0xff]  ;;  %v15_v12 = vld [vmem:[%s247_s0] sm:$0x3]  ;;  %s112_s4 = sshll.u32 %s187_s30, 4  ;;  %vm104_vm2 = vcmask 74752   ;;  %s113_s4 = int_to_ptr.vmem [resolvable:$true] %s112_s4 }
   0x7   :  { %v120_v13 = vld [vmem:[%s249_s2] ss:$0 sm:$0xff]  ;;  %s160_s1 = scalar_lea.vmem %s113_s4, 32  ;;  %p165_p1 = scmp.lt.s32.totalorder %s113_s4, %s113_s4 }
   0x8   :  { %152 = vmatpush3.bf16.msra.mxu0 %v151_v7  ;;  %p161_p0 = scmp.ne.s32.totalorder %s113_s4, %s160_s1  ;;  %p166_p2 = scmp.lt.s32.totalorder %s160_s1, %s160_s1 }
   0x9   :  { %153 = vmatprep.subr.bf16.mxu0 %v184_v3 }
   0xa   :  { %p167_p3 = por %p166_p2, %p165_p1 }
   0xc   :  { %155 = vmatpush3.bf16.msra.mxu0 %v154_v10  ;;  %p168_p4 = pnand %p167_p3, %p161_p0 }
   0xd   :  { %142 = vmatprep.subr.mxu0 %v186_v6 }
  0x10   :  { %143 = vmatpush3.msra.mxu0 %v22_v11 }
  0x11   :  { %145 = vmatmul.mubr.msk.f32.vlgmr.msra.gmra.mrb[0].mxu0 %vm30_vm1, %v15_v12 }
  0xe4   :  { %v100_v14 = vpop.f32.mrb[0].mxu0 }
  0xe5   :  { %v101_v15 = vadd.f32 %v120_v13, %v100_v14  ;;  %v146_v16 = vpop.f32.mrb[1].mxu0 }
  0xe7   :  { %105 = vst.msk [vmem:[#allocation2] sm:$0x3] %vm104_vm2, %v101_v15 }
  0xe8   :  { %171 = shalt.err (!%p168_p4)
}
  0xe9   :  { %s172_s6 = scalar_lea.hbm %s250_s3, 32 }
  0xea   :  { %p173_p5 = scmp.ne.s32.totalorder %s250_s3, %s172_s6  ;;  %p176_p6 = scmp.lt.u32.totalorder %s172_s6, %s250_s3 }
  0xec   :  { %p178_p7 = pnand %p176_p6, %p173_p5 }
  0xee   :  { %181 = shalt.err (!%p178_p7)
}
  0xef   :  { %115 = dma.vmem_to_hbm [thread:$0]  %s113_s4, 32, %s250_s3, [#allocation3]  }
  0xf0   :  { %182 = dma.done.wait [#allocation3], 32  }
  0xf1   :  { %183 = vsyncadd [#allocation3], 4294967264 }
  0xf2   :  { %119 = vsyncpa [#allocation3], 1 }

// kernel: _lambda_.6
= control target key start
LH: loop header
LB: loop body
LE: loop exit
PB: predicated region body
PF: predicated region fallthrough
CT: control target
= control target key end

     0   :  { %vm107_vm0 = vcmask 1042432   ;;  %vm40_vm1 = vcmask 89088   ;;  %vm1136_vm2 = vmmov 1   ;;  %v1137_v25 = vmov 0.0|0.0   ;;  %s1763_s1 = inlined_call_operand.vmem [shape: f32[11,18], index: 1, kind: input, shape index: {}]   ;;  %s1764_s0 = inlined_call_operand.vmem [shape: f32[176,11], index: 0, kind: input, shape index: {}]   ;;  %s1765_s2 = inlined_call_operand.vmem [shape: f32[288,176], index: 2, kind: input, shape index: {}]   ;;  %s1766_s3 = inlined_call_operand.vmem [shape: f32[176,18], index: 3, kind: output, shape index: {0}]   ;;  %s1767_s4 = inlined_call_operand.vmem [shape: f32[288,18], index: 4, kind: output, shape index: {1}]  }
   0x1   :  { %v38_v0 = vld [vmem:[%s1763_s1] sm:$0xff]  ;;  %v39_v1 = vld [vmem:[%s1763_s1 + $0x8] sm:$0x7]  ;;  %vm958_vm3 = vmpackc.low %vm107_vm0, %vm1136_vm2  ;;  %996 = vmatprep.subr.bf16.mxu1 %v1137_v25  ;;  %vm403_vm4 = vcmask 392192   ;;  %vm308_vm5 = vcmask 146432  }
   0x2   :  { %v957_v2 = vpack.c.bf16 %v39_v1, %v38_v0  ;;  %v16_v3 = vld [vmem:[%s1764_s0] sm:$0xff]  ;;  %v17_v4 = vld [vmem:[%s1764_s0 + $0x8] sm:$0xff]  ;;  %v18_v5 = vld [vmem:[%s1764_s0 + $0x10] sm:$0xff] }
   0x3   :  { %924 = vmatprep.mubr.msk.f32.mxu0 %vm40_vm1, %v16_v3  ;;  %v19_v6 = vld [vmem:[%s1764_s0 + $0x18] sm:$0xff]  ;;  %v20_v7 = vld [vmem:[%s1764_s0 + $0x20] sm:$0xff]  ;;  %v21_v8 = vld [vmem:[%s1764_s0 + $0x28] sm:$0xff] }
   0x4   :  { %959 = vmatprep.subr.msk.bf16.mxu0 %vm958_vm3, %v957_v2  ;;  %v22_v9 = vld [vmem:[%s1764_s0 + $0x30] sm:$0xff]  ;;  %v23_v10 = vld [vmem:[%s1764_s0 + $0x38] sm:$0xff]  ;;  %v24_v11 = vld [vmem:[%s1764_s0 + $0x40] sm:$0xff] }
   0x5   :  { %962 = vmatpush3.bf16.msk.msra.mxu0 %vm958_vm3, %v957_v2  ;;  %v25_v12 = vld [vmem:[%s1764_s0 + $0x48] sm:$0xff]  ;;  %v26_v13 = vld [vmem:[%s1764_s0 + $0x50] sm:$0xff]  ;;  %v27_v14 = vld [vmem:[%s1764_s0 + $0x58] sm:$0xff] }
   0x6   :  { %v28_v15 = vld [vmem:[%s1764_s0 + $0x60] sm:$0xff]  ;;  %v29_v16 = vld [vmem:[%s1764_s0 + $0x68] sm:$0xff]  ;;  %v30_v17 = vld [vmem:[%s1764_s0 + $0x70] sm:$0xff]  ;;  %963 = vmatprep.subr.bf16.mxu0 %v1137_v25 }
   0x7   :  { %v31_v18 = vld [vmem:[%s1764_s0 + $0x78] sm:$0xff]  ;;  %v32_v19 = vld [vmem:[%s1764_s0 + $0x80] sm:$0xff]  ;;  %v33_v20 = vld [vmem:[%s1764_s0 + $0x88] sm:$0xff] }
   0x8   :  { %925 = vmatmul.mubr.msk.f32.vlgmr.msra.gmra.mrb[0].mxu0 %vm40_vm1, %v17_v4  ;;  %v34_v21 = vld [vmem:[%s1764_s0 + $0x90] sm:$0xff]  ;;  %v35_v22 = vld [vmem:[%s1764_s0 + $0x98] sm:$0xff]  ;;  %v36_v23 = vld [vmem:[%s1764_s0 + $0xa0] sm:$0xff] }
   0x9   :  { %927 = vmatprep.mubr.msk.f32.mxu0 %vm40_vm1, %v18_v5  ;;  %v37_v24 = vld [vmem:[%s1764_s0 + $0xa8] sm:$0xff]  ;;  %v366_v26 = vld [vmem:[%s1765_s2 + $0x118] sm:$0xff] }
   0xa   :  { %877 = vmatprep.mubr.msk.f32.mxu1 %vm403_vm4, %v366_v26  ;;  %v332_v27 = vld [vmem:[%s1765_s2 + $0x8] sm:$0xff] }
   0xb   :  { %v336_v26 = vld [vmem:[%s1765_s2 + $0x28] sm:$0xff] }
   0xc   :  { %928 = vmatmul.mubr.msk.f32.gmra.mrb[2].mxu0 %vm40_vm1, %v19_v6 }
   0xd   :  { %930 = vmatprep.mubr.msk.f32.mxu0 %vm40_vm1, %v20_v7 }
  0x10   :  { %931 = vmatmul.mubr.msk.f32.gmra.mrb[4].mxu0 %vm40_vm1, %v21_v8 }
  0x11   :  { %933 = vmatprep.mubr.msk.f32.mxu0 %vm40_vm1, %v22_v9 }
  0x14   :  { %934 = vmatmul.mubr.msk.f32.gmra.mrb[6].mxu0 %vm40_vm1, %v23_v10 }
  0x15   :  { %936 = vmatprep.mubr.msk.f32.mxu0 %vm40_vm1, %v24_v11 }
  0x18   :  { %937 = vmatmul.mubr.msk.f32.gmra.mrb[8].mxu0 %vm40_vm1, %v25_v12 }
  0x19   :  { %939 = vmatprep.mubr.msk.f32.mxu0 %vm40_vm1, %v26_v13 }
  0x1c   :  { %940 = vmatmul.mubr.msk.f32.gmra.mrb[10].mxu0 %vm40_vm1, %v27_v14 }
  0x1d   :  { %942 = vmatprep.mubr.msk.f32.mxu0 %vm40_vm1, %v28_v15 }
  0x20   :  { %943 = vmatmul.mubr.msk.f32.gmra.mrb[12].mxu0 %vm40_vm1, %v29_v16 }
  0x21   :  { %945 = vmatprep.mubr.msk.f32.mxu0 %vm40_vm1, %v30_v17 }
  0x24   :  { %946 = vmatmul.mubr.msk.f32.gmra.mrb[14].mxu0 %vm40_vm1, %v31_v18 }
  0x25   :  { %948 = vmatprep.mubr.msk.f32.mxu0 %vm40_vm1, %v32_v19  ;;  %v365_v19 = vld [vmem:[%s1765_s2 + $0x110] sm:$0xff] }
  0x28   :  { %949 = vmatmul.mubr.msk.f32.gmra.mrb[16].mxu0 %vm40_vm1, %v33_v20  ;;  %v331_v20 = vld [vmem:[%s1765_s2] sm:$0xff] }
  0x29   :  { %951 = vmatprep.mubr.msk.f32.mxu0 %vm40_vm1, %v34_v21  ;;  %v368_v21 = vld [vmem:[%s1765_s2 + $0x128] sm:$0xff] }
  0x2c   :  { %952 = vmatmul.mubr.msk.f32.gmra.mrb[18].mxu0 %vm40_vm1, %v35_v22  ;;  %v334_v22 = vld [vmem:[%s1765_s2 + $0x18] sm:$0xff] }
  0x2d   :  { %954 = vmatprep.mubr.msk.f32.mxu0 %vm40_vm1, %v36_v23  ;;  %v367_v23 = vld [vmem:[%s1765_s2 + $0x120] sm:$0xff] }
  0x30   :  { %955 = vmatmul.mubr.msk.f32.gmra.mrb[20].mxu0 %vm40_vm1, %v37_v24  ;;  %v333_v24 = vld [vmem:[%s1765_s2 + $0x10] sm:$0xff] }
  0x31   :  { %860 = vmatprep.mubr.msk.f32.mxu0 %vm403_vm4, %v332_v27  ;;  %v369_v27 = vld [vmem:[%s1765_s2 + $0x130] sm:$0xff] }
  0xdb   :  { %v926_v28 = vpop.f32.mrb[0].mxu0 }
  0xdc   :  { %1020 = vtanh.f32 %v926_v28  ;;  %v177_v29 = vpop.f32.mrb[1].mxu0  ;;  %v335_v28 = vld [vmem:[%s1765_s2 + $0x20] sm:$0xff] }
  0xdd   :  { %1022 = vtanh.f32 %v177_v29  ;;  %v372_v29 = vld [vmem:[%s1765_s2 + $0x148] sm:$0xff] }
  0xdf   :  { %v929_v30 = vpop.f32.mrb[2].mxu0 }
  0xe0   :  { %1024 = vtanh.f32 %v929_v30  ;;  %v187_v31 = vpop.f32.mrb[3].mxu0  ;;  %v338_v30 = vld [vmem:[%s1765_s2 + $0x38] sm:$0xff] }
  0xe1   :  { %1026 = vtanh.f32 %v187_v31  ;;  %v371_v31 = vld [vmem:[%s1765_s2 + $0x140] sm:$0xff] }
  0xe3   :  { %v932_v32 = vpop.f32.mrb[4].mxu0 }
  0xe4   :  { %1028 = vtanh.f32 %v932_v32  ;;  %v197_v33 = vpop.f32.mrb[5].mxu0  ;;  %v337_v32 = vld [vmem:[%s1765_s2 + $0x30] sm:$0xff] }
  0xe5   :  { %1030 = vtanh.f32 %v197_v33  ;;  %v374_v33 = vld [vmem:[%s1765_s2 + $0x158] sm:$0xff] }
  0xe6   :  { %v1021_v34 = vpop.eup %1020 }
  0xe7   :  { %v1023_v35 = vpop.eup %1022  ;;  %310 = vst.msk [vmem:[%s1766_s3 + $0x8] sm:$0xff] %vm308_vm5, %v1021_v34  ;;  %v935_v36 = vpop.f32.mrb[6].mxu0 }
  0xe8   :  { %309 = vst.msk [vmem:[%s1766_s3] sm:$0xff] %vm308_vm5, %v1023_v35  ;;  %1032 = vtanh.f32 %v935_v36  ;;  %v207_v37 = vpop.f32.mrb[7].mxu0  ;;  %v964_v38 = vpack.c.bf16 %v1021_v34, %v1023_v35  ;;  %v340_v34 = vld [vmem:[%s1765_s2 + $0x48] sm:$0xff]  ;;  %v373_v35 = vld [vmem:[%s1765_s2 + $0x150] sm:$0xff]  ;;  %v339_v36 = vld [vmem:[%s1765_s2 + $0x40] sm:$0xff] }
  0xe9   :  { %1034 = vtanh.f32 %v207_v37  ;;  %v376_v37 = vld [vmem:[%s1765_s2 + $0x168] sm:$0xff] }
  0xea   :  { %v1025_v39 = vpop.eup %1024  ;;  %965 = vmatpush1.bf16.msra.mxu0 %v964_v38  ;;  %1007 = vmatpush1.bf16.msra.mxu1 %v964_v38  ;;  %v342_v38 = vld [vmem:[%s1765_s2 + $0x58] sm:$0xff] }
  0xeb   :  { %v1027_v40 = vpop.eup %1026  ;;  %312 = vst.msk [vmem:[%s1766_s3 + $0x18] sm:$0xff] %vm308_vm5, %v1025_v39  ;;  %v938_v41 = vpop.f32.mrb[8].mxu0  ;;  %966 = vmatprep.subr.bf16.mxu0 %v1137_v25  ;;  %997 = vmatprep.subr.bf16.mxu1 %v1137_v25 }
  0xec   :  { %311 = vst.msk [vmem:[%s1766_s3 + $0x10] sm:$0xff] %vm308_vm5, %v1027_v40  ;;  %1036 = vtanh.f32 %v938_v41  ;;  %v217_v42 = vpop.f32.mrb[9].mxu0  ;;  %v967_v43 = vpack.c.bf16 %v1025_v39, %v1027_v40  ;;  %v375_v39 = vld [vmem:[%s1765_s2 + $0x160] sm:$0xff]  ;;  %v341_v40 = vld [vmem:[%s1765_s2 + $0x50] sm:$0xff]  ;;  %v378_v41 = vld [vmem:[%s1765_s2 + $0x178] sm:$0xff] }
  0xed   :  { %1038 = vtanh.f32 %v217_v42  ;;  %v344_v42 = vld [vmem:[%s1765_s2 + $0x68] sm:$0xff] }
  0xee   :  { %v1029_v44 = vpop.eup %1028  ;;  %968 = vmatpush1.bf16.msra.mxu0 %v967_v43  ;;  %1008 = vmatpush1.bf16.msra.mxu1 %v967_v43  ;;  %v377_v43 = vld [vmem:[%s1765_s2 + $0x170] sm:$0xff] }
  0xef   :  { %v1031_v45 = vpop.eup %1030  ;;  %314 = vst.msk [vmem:[%s1766_s3 + $0x28] sm:$0xff] %vm308_vm5, %v1029_v44  ;;  %v941_v46 = vpop.f32.mrb[10].mxu0  ;;  %969 = vmatprep.subr.bf16.mxu0 %v1137_v25  ;;  %998 = vmatprep.subr.bf16.mxu1 %v1137_v25 }
  0xf0   :  { %313 = vst.msk [vmem:[%s1766_s3 + $0x20] sm:$0xff] %vm308_vm5, %v1031_v45  ;;  %1040 = vtanh.f32 %v941_v46  ;;  %v227_v47 = vpop.f32.mrb[11].mxu0  ;;  %v970_v48 = vpack.c.bf16 %v1029_v44, %v1031_v45  ;;  %v343_v44 = vld [vmem:[%s1765_s2 + $0x60] sm:$0xff]  ;;  %v380_v45 = vld [vmem:[%s1765_s2 + $0x188] sm:$0xff]  ;;  %v346_v46 = vld [vmem:[%s1765_s2 + $0x78] sm:$0xff] }
  0xf1   :  { %1042 = vtanh.f32 %v227_v47  ;;  %v379_v47 = vld [vmem:[%s1765_s2 + $0x180] sm:$0xff] }
  0xf2   :  { %v1033_v49 = vpop.eup %1032  ;;  %971 = vmatpush1.bf16.msra.mxu0 %v970_v48  ;;  %1009 = vmatpush1.bf16.msra.mxu1 %v970_v48  ;;  %v345_v48 = vld [vmem:[%s1765_s2 + $0x70] sm:$0xff] }
  0xf3   :  { %v1035_v50 = vpop.eup %1034  ;;  %316 = vst.msk [vmem:[%s1766_s3 + $0x38] sm:$0xff] %vm308_vm5, %v1033_v49  ;;  %v944_v51 = vpop.f32.mrb[12].mxu0  ;;  %972 = vmatprep.subr.bf16.mxu0 %v1137_v25  ;;  %999 = vmatprep.subr.bf16.mxu1 %v1137_v25 }
  0xf4   :  { %315 = vst.msk [vmem:[%s1766_s3 + $0x30] sm:$0xff] %vm308_vm5, %v1035_v50  ;;  %1044 = vtanh.f32 %v944_v51  ;;  %v237_v52 = vpop.f32.mrb[13].mxu0  ;;  %v973_v53 = vpack.c.bf16 %v1033_v49, %v1035_v50  ;;  %v382_v49 = vld [vmem:[%s1765_s2 + $0x198] sm:$0xff]  ;;  %v348_v50 = vld [vmem:[%s1765_s2 + $0x88] sm:$0xff]  ;;  %v381_v51 = vld [vmem:[%s1765_s2 + $0x190] sm:$0xff] }
  0xf5   :  { %1046 = vtanh.f32 %v237_v52  ;;  %v347_v52 = vld [vmem:[%s1765_s2 + $0x80] sm:$0xff] }
  0xf6   :  { %v1037_v54 = vpop.eup %1036  ;;  %974 = vmatpush1.bf16.msra.mxu0 %v973_v53  ;;  %1010 = vmatpush1.bf16.msra.mxu1 %v973_v53  ;;  %v384_v53 = vld [vmem:[%s1765_s2 + $0x1a8] sm:$0xff] }
  0xf7   :  { %v1039_v55 = vpop.eup %1038  ;;  %318 = vst.msk [vmem:[%s1766_s3 + $0x48] sm:$0xff] %vm308_vm5, %v1037_v54  ;;  %v947_v56 = vpop.f32.mrb[14].mxu0  ;;  %975 = vmatprep.subr.bf16.mxu0 %v1137_v25  ;;  %1000 = vmatprep.subr.bf16.mxu1 %v1137_v25 }
  0xf8   :  { %317 = vst.msk [vmem:[%s1766_s3 + $0x40] sm:$0xff] %vm308_vm5, %v1039_v55  ;;  %1048 = vtanh.f32 %v947_v56  ;;  %v247_v57 = vpop.f32.mrb[15].mxu0  ;;  %v976_v58 = vpack.c.bf16 %v1037_v54, %v1039_v55  ;;  %v350_v54 = vld [vmem:[%s1765_s2 + $0x98] sm:$0xff]  ;;  %v383_v55 = vld [vmem:[%s1765_s2 + $0x1a0] sm:$0xff]  ;;  %v349_v56 = vld [vmem:[%s1765_s2 + $0x90] sm:$0xff] }
  0xf9   :  { %1050 = vtanh.f32 %v247_v57  ;;  %v386_v57 = vld [vmem:[%s1765_s2 + $0x1b8] sm:$0xff] }
  0xfa   :  { %v1041_v59 = vpop.eup %1040  ;;  %977 = vmatpush1.bf16.msra.mxu0 %v976_v58  ;;  %1011 = vmatpush1.bf16.msra.mxu1 %v976_v58  ;;  %v352_v58 = vld [vmem:[%s1765_s2 + $0xa8] sm:$0xff] }
  0xfb   :  { %v1043_v60 = vpop.eup %1042  ;;  %320 = vst.msk [vmem:[%s1766_s3 + $0x58] sm:$0xff] %vm308_vm5, %v1041_v59  ;;  %v950_v61 = vpop.f32.mrb[16].mxu0  ;;  %978 = vmatprep.subr.bf16.mxu0 %v1137_v25  ;;  %1001 = vmatprep.subr.bf16.mxu1 %v1137_v25 }
  0xfc   :  { %319 = vst.msk [vmem:[%s1766_s3 + $0x50] sm:$0xff] %vm308_vm5, %v1043_v60  ;;  %1052 = vtanh.f32 %v950_v61  ;;  %v257_v62 = vpop.f32.mrb[17].mxu0  ;;  %v979_v63 = vpack.c.bf16 %v1041_v59, %v1043_v60  ;;  %v385_v59 = vld [vmem:[%s1765_s2 + $0x1b0] sm:$0xff]  ;;  %v351_v60 = vld [vmem:[%s1765_s2 + $0xa0] sm:$0xff]  ;;  %v388_v61 = vld [vmem:[%s1765_s2 + $0x1c8] sm:$0xff] }
  0xfd   :  { %1054 = vtanh.f32 %v257_v62  ;;  %v354_v62 = vld [vmem:[%s1765_s2 + $0xb8] sm:$0xff] }
  0xfe   :  { %v1045_v0 = vpop.eup %1044  ;;  %980 = vmatpush1.bf16.msra.mxu0 %v979_v63  ;;  %1012 = vmatpush1.bf16.msra.mxu1 %v979_v63  ;;  %v387_v63 = vld [vmem:[%s1765_s2 + $0x1c0] sm:$0xff] }
  0xff   :  { %v1047_v1 = vpop.eup %1046  ;;  %322 = vst.msk [vmem:[%s1766_s3 + $0x68] sm:$0xff] %vm308_vm5, %v1045_v0  ;;  %v953_v2 = vpop.f32.mrb[18].mxu0  ;;  %981 = vmatprep.subr.bf16.mxu0 %v1137_v25  ;;  %1002 = vmatprep.subr.bf16.mxu1 %v1137_v25 }
 0x100   :  { %321 = vst.msk [vmem:[%s1766_s3 + $0x60] sm:$0xff] %vm308_vm5, %v1047_v1  ;;  %1056 = vtanh.f32 %v953_v2  ;;  %v267_v3 = vpop.f32.mrb[19].mxu0  ;;  %v982_v4 = vpack.c.bf16 %v1045_v0, %v1047_v1  ;;  %v353_v0 = vld [vmem:[%s1765_s2 + $0xb0] sm:$0xff]  ;;  %v390_v1 = vld [vmem:[%s1765_s2 + $0x1d8] sm:$0xff]  ;;  %v356_v2 = vld [vmem:[%s1765_s2 + $0xc8] sm:$0xff] }
 0x101   :  { %1058 = vtanh.f32 %v267_v3  ;;  %v389_v3 = vld [vmem:[%s1765_s2 + $0x1d0] sm:$0xff] }
 0x102   :  { %v1049_v5 = vpop.eup %1048  ;;  %983 = vmatpush1.bf16.msra.mxu0 %v982_v4  ;;  %1013 = vmatpush1.bf16.msra.mxu1 %v982_v4  ;;  %v355_v4 = vld [vmem:[%s1765_s2 + $0xc0] sm:$0xff] }
 0x103   :  { %v1051_v6 = vpop.eup %1050  ;;  %324 = vst.msk [vmem:[%s1766_s3 + $0x78] sm:$0xff] %vm308_vm5, %v1049_v5  ;;  %v956_v7 = vpop.f32.mrb[20].mxu0  ;;  %984 = vmatprep.subr.bf16.mxu0 %v1137_v25  ;;  %1003 = vmatprep.subr.bf16.mxu1 %v1137_v25 }
 0x104   :  { %323 = vst.msk [vmem:[%s1766_s3 + $0x70] sm:$0xff] %vm308_vm5, %v1051_v6  ;;  %1060 = vtanh.f32 %v956_v7  ;;  %v277_v8 = vpop.f32.mrb[21].mxu0  ;;  %v985_v9 = vpack.c.bf16 %v1049_v5, %v1051_v6  ;;  %v392_v5 = vld [vmem:[%s1765_s2 + $0x1e8] sm:$0xff]  ;;  %v358_v6 = vld [vmem:[%s1765_s2 + $0xd8] sm:$0xff]  ;;  %v391_v7 = vld [vmem:[%s1765_s2 + $0x1e0] sm:$0xff] }
 0x105   :  { %1062 = vtanh.f32 %v277_v8  ;;  %v357_v8 = vld [vmem:[%s1765_s2 + $0xd0] sm:$0xff] }
 0x106   :  { %v1053_v10 = vpop.eup %1052  ;;  %986 = vmatpush1.bf16.msra.mxu0 %v985_v9  ;;  %1014 = vmatpush1.bf16.msra.mxu1 %v985_v9  ;;  %v394_v9 = vld [vmem:[%s1765_s2 + $0x1f8] sm:$0xff] }
 0x107   :  { %v1055_v11 = vpop.eup %1054  ;;  %326 = vst.msk [vmem:[%s1766_s3 + $0x88] sm:$0xff] %vm308_vm5, %v1053_v10  ;;  %987 = vmatprep.subr.bf16.mxu0 %v1137_v25  ;;  %1004 = vmatprep.subr.bf16.mxu1 %v1137_v25 }
 0x108   :  { %325 = vst.msk [vmem:[%s1766_s3 + $0x80] sm:$0xff] %vm308_vm5, %v1055_v11  ;;  %v988_v12 = vpack.c.bf16 %v1053_v10, %v1055_v11  ;;  %v360_v10 = vld [vmem:[%s1765_s2 + $0xe8] sm:$0xff]  ;;  %v393_v11 = vld [vmem:[%s1765_s2 + $0x1f0] sm:$0xff] }
 0x10a   :  { %v1057_v13 = vpop.eup %1056  ;;  %989 = vmatpush1.bf16.msra.mxu0 %v988_v12  ;;  %1015 = vmatpush1.bf16.msra.mxu1 %v988_v12  ;;  %v359_v12 = vld [vmem:[%s1765_s2 + $0xe0] sm:$0xff] }
 0x10b   :  { %v1059_v14 = vpop.eup %1058  ;;  %328 = vst.msk [vmem:[%s1766_s3 + $0x98] sm:$0xff] %vm308_vm5, %v1057_v13  ;;  %990 = vmatprep.subr.bf16.mxu0 %v1137_v25  ;;  %1005 = vmatprep.subr.bf16.mxu1 %v1137_v25 }
 0x10c   :  { %327 = vst.msk [vmem:[%s1766_s3 + $0x90] sm:$0xff] %vm308_vm5, %v1059_v14  ;;  %v991_v15 = vpack.c.bf16 %v1057_v13, %v1059_v14  ;;  %v396_v13 = vld [vmem:[%s1765_s2 + $0x208] sm:$0xff]  ;;  %v362_v14 = vld [vmem:[%s1765_s2 + $0xf8] sm:$0xff] }
 0x10e   :  { %v1061_v16 = vpop.eup %1060  ;;  %992 = vmatpush1.bf16.msra.mxu0 %v991_v15  ;;  %1016 = vmatpush1.bf16.msra.mxu1 %v991_v15  ;;  %v395_v15 = vld [vmem:[%s1765_s2 + $0x200] sm:$0xff] }
 0x10f   :  { %v1063_v17 = vpop.eup %1062  ;;  %330 = vst.msk [vmem:[%s1766_s3 + $0xa8] sm:$0xff] %vm308_vm5, %v1061_v16  ;;  %993 = vmatprep.subr.bf16.mxu0 %v1137_v25  ;;  %1006 = vmatprep.subr.bf16.mxu1 %v1137_v25  ;;  %v370_v25 = vld [vmem:[%s1765_s2 + $0x138] sm:$0xff] }
 0x110   :  { %329 = vst.msk [vmem:[%s1766_s3 + $0xa0] sm:$0xff] %vm308_vm5, %v1063_v17  ;;  %v994_v18 = vpack.c.bf16 %v1061_v16, %v1063_v17  ;;  %v361_v16 = vld [vmem:[%s1765_s2 + $0xf0] sm:$0xff]  ;;  %v398_v17 = vld [vmem:[%s1765_s2 + $0x218] sm:$0xff] }
 0x112   :  { %995 = vmatpush1.bf16.msra.mxu0 %v994_v18  ;;  %1017 = vmatpush1.bf16.msra.mxu1 %v994_v18  ;;  %v364_v18 = vld [vmem:[%s1765_s2 + $0x108] sm:$0xff] }
 0x115   :  { %662 = vmatmul.mubr.f32.vlgmr.msra.gmra.mrb[0].mxu1 %v365_v19  ;;  %577 = vmatmul.mubr.f32.vlgmr.msra.gmra.mrb[22].mxu0 %v331_v20  ;;  %v397_v19 = vld [vmem:[%s1765_s2 + $0x210] sm:$0xff]  ;;  %v363_v20 = vld [vmem:[%s1765_s2 + $0x100] sm:$0xff] }
 0x116   :  { %878 = vmatprep.mubr.msk.f32.mxu1 %vm403_vm4, %v368_v21  ;;  %861 = vmatprep.mubr.msk.f32.mxu0 %vm403_vm4, %v334_v22  ;;  %v400_v21 = vld [vmem:[%s1765_s2 + $0x228] sm:$0xff]  ;;  %v399_v22 = vld [vmem:[%s1765_s2 + $0x220] sm:$0xff] }
 0x119   :  { %667 = vmatmul.mubr.f32.gmra.mrb[2].mxu1 %v367_v23  ;;  %582 = vmatmul.mubr.f32.gmra.mrb[24].mxu0 %v333_v24  ;;  %v402_v23 = vld [vmem:[%s1765_s2 + $0x238] sm:$0xff]  ;;  %v401_v24 = vld [vmem:[%s1765_s2 + $0x230] sm:$0xff] }
 0x11a   :  { %879 = vmatprep.mubr.msk.f32.mxu1 %vm403_vm4, %v370_v25  ;;  %862 = vmatprep.mubr.msk.f32.mxu0 %vm403_vm4, %v336_v26 }
 0x11d   :  { %672 = vmatmul.mubr.f32.gmra.mrb[4].mxu1 %v369_v27  ;;  %587 = vmatmul.mubr.f32.gmra.mrb[26].mxu0 %v335_v28 }
 0x11e   :  { %880 = vmatprep.mubr.msk.f32.mxu1 %vm403_vm4, %v372_v29  ;;  %863 = vmatprep.mubr.msk.f32.mxu0 %vm403_vm4, %v338_v30 }
 0x121   :  { %677 = vmatmul.mubr.f32.gmra.mrb[6].mxu1 %v371_v31  ;;  %592 = vmatmul.mubr.f32.gmra.mrb[28].mxu0 %v337_v32 }
 0x122   :  { %881 = vmatprep.mubr.msk.f32.mxu1 %vm403_vm4, %v374_v33  ;;  %864 = vmatprep.mubr.msk.f32.mxu0 %vm403_vm4, %v340_v34 }
 0x125   :  { %682 = vmatmul.mubr.f32.gmra.mrb[8].mxu1 %v373_v35  ;;  %597 = vmatmul.mubr.f32.gmra.mrb[30].mxu0 %v339_v36 }
 0x126   :  { %882 = vmatprep.mubr.msk.f32.mxu1 %vm403_vm4, %v376_v37  ;;  %865 = vmatprep.mubr.msk.f32.mxu0 %vm403_vm4, %v342_v38 }
 0x129   :  { %687 = vmatmul.mubr.f32.gmra.mrb[10].mxu1 %v375_v39  ;;  %602 = vmatmul.mubr.f32.gmra.mrb[32].mxu0 %v341_v40 }
 0x12a   :  { %883 = vmatprep.mubr.msk.f32.mxu1 %vm403_vm4, %v378_v41  ;;  %866 = vmatprep.mubr.msk.f32.mxu0 %vm403_vm4, %v344_v42 }
 0x12d   :  { %692 = vmatmul.mubr.f32.gmra.mrb[12].mxu1 %v377_v43  ;;  %607 = vmatmul.mubr.f32.gmra.mrb[34].mxu0 %v343_v44 }
 0x12e   :  { %884 = vmatprep.mubr.msk.f32.mxu1 %vm403_vm4, %v380_v45  ;;  %867 = vmatprep.mubr.msk.f32.mxu0 %vm403_vm4, %v346_v46 }
 0x131   :  { %697 = vmatmul.mubr.f32.gmra.mrb[14].mxu1 %v379_v47  ;;  %612 = vmatmul.mubr.f32.gmra.mrb[36].mxu0 %v345_v48 }
 0x132   :  { %885 = vmatprep.mubr.msk.f32.mxu1 %vm403_vm4, %v382_v49  ;;  %868 = vmatprep.mubr.msk.f32.mxu0 %vm403_vm4, %v348_v50 }
 0x135   :  { %702 = vmatmul.mubr.f32.gmra.mrb[16].mxu1 %v381_v51  ;;  %617 = vmatmul.mubr.f32.gmra.mrb[38].mxu0 %v347_v52 }
 0x136   :  { %886 = vmatprep.mubr.msk.f32.mxu1 %vm403_vm4, %v384_v53  ;;  %869 = vmatprep.mubr.msk.f32.mxu0 %vm403_vm4, %v350_v54 }
 0x139   :  { %707 = vmatmul.mubr.f32.gmra.mrb[18].mxu1 %v383_v55  ;;  %622 = vmatmul.mubr.f32.gmra.mrb[40].mxu0 %v349_v56 }
 0x13a   :  { %887 = vmatprep.mubr.msk.f32.mxu1 %vm403_vm4, %v386_v57  ;;  %870 = vmatprep.mubr.msk.f32.mxu0 %vm403_vm4, %v352_v58 }
 0x13d   :  { %712 = vmatmul.mubr.f32.gmra.mrb[20].mxu1 %v385_v59  ;;  %627 = vmatmul.mubr.f32.gmra.mrb[42].mxu0 %v351_v60 }
 0x13e   :  { %888 = vmatprep.mubr.msk.f32.mxu1 %vm403_vm4, %v388_v61  ;;  %871 = vmatprep.mubr.msk.f32.mxu0 %vm403_vm4, %v354_v62 }
 0x141   :  { %717 = vmatmul.mubr.f32.gmra.mrb[22].mxu1 %v387_v63  ;;  %632 = vmatmul.mubr.f32.gmra.mrb[44].mxu0 %v353_v0 }
 0x142   :  { %889 = vmatprep.mubr.msk.f32.mxu1 %vm403_vm4, %v390_v1  ;;  %872 = vmatprep.mubr.msk.f32.mxu0 %vm403_vm4, %v356_v2 }
 0x145   :  { %722 = vmatmul.mubr.f32.gmra.mrb[24].mxu1 %v389_v3  ;;  %637 = vmatmul.mubr.f32.gmra.mrb[46].mxu0 %v355_v4 }
 0x146   :  { %890 = vmatprep.mubr.msk.f32.mxu1 %vm403_vm4, %v392_v5  ;;  %873 = vmatprep.mubr.msk.f32.mxu0 %vm403_vm4, %v358_v6 }
 0x149   :  { %727 = vmatmul.mubr.f32.gmra.mrb[26].mxu1 %v391_v7  ;;  %642 = vmatmul.mubr.f32.gmra.mrb[48].mxu0 %v357_v8 }
 0x14a   :  { %891 = vmatprep.mubr.msk.f32.mxu1 %vm403_vm4, %v394_v9  ;;  %874 = vmatprep.mubr.msk.f32.mxu0 %vm403_vm4, %v360_v10 }
 0x14d   :  { %732 = vmatmul.mubr.f32.gmra.mrb[28].mxu1 %v393_v11  ;;  %647 = vmatmul.mubr.f32.gmra.mrb[50].mxu0 %v359_v12 }
 0x14e   :  { %892 = vmatprep.mubr.msk.f32.mxu1 %vm403_vm4, %v396_v13  ;;  %875 = vmatprep.mubr.msk.f32.mxu0 %vm403_vm4, %v362_v14 }
 0x151   :  { %737 = vmatmul.mubr.f32.gmra.mrb[30].mxu1 %v395_v15  ;;  %652 = vmatmul.mubr.f32.gmra.mrb[52].mxu0 %v361_v16 }
 0x152   :  { %893 = vmatprep.mubr.msk.f32.mxu1 %vm403_vm4, %v398_v17  ;;  %876 = vmatprep.mubr.msk.f32.mxu0 %vm403_vm4, %v364_v18 }
 0x155   :  { %742 = vmatmul.mubr.f32.gmra.mrb[32].mxu1 %v397_v19  ;;  %657 = vmatmul.mubr.f32.gmra.mrb[54].mxu0 %v363_v20 }
 0x156   :  { %894 = vmatprep.mubr.msk.f32.mxu1 %vm403_vm4, %v400_v21 }
 0x159   :  { %747 = vmatmul.mubr.f32.gmra.mrb[34].mxu1 %v399_v22 }
 0x15a   :  { %895 = vmatprep.mubr.msk.f32.mxu1 %vm403_vm4, %v402_v23 }
 0x15d   :  { %752 = vmatmul.mubr.f32.gmra.mrb[36].mxu1 %v401_v24 }
 0x1e8   :  { %v663_v25 = vpop.f32.mrb[0].mxu1  ;;  %v578_v26 = vpop.f32.mrb[22].mxu0 }
 0x1e9   :  { %1064 = vtanh.f32 %v663_v25  ;;  %v665_v27 = vpop.f32.mrb[1].mxu1  ;;  %v580_v28 = vpop.f32.mrb[23].mxu0 }
 0x1ea   :  { %1066 = vtanh.f32 %v578_v26 }
 0x1ec   :  { %v668_v29 = vpop.f32.mrb[2].mxu1  ;;  %v583_v30 = vpop.f32.mrb[24].mxu0 }
 0x1ed   :  { %1068 = vtanh.f32 %v668_v29  ;;  %v670_v31 = vpop.f32.mrb[3].mxu1  ;;  %v585_v32 = vpop.f32.mrb[25].mxu0 }
 0x1ee   :  { %1070 = vtanh.f32 %v583_v30 }
 0x1f0   :  { %v673_v33 = vpop.f32.mrb[4].mxu1  ;;  %v588_v34 = vpop.f32.mrb[26].mxu0 }
 0x1f1   :  { %1072 = vtanh.f32 %v673_v33  ;;  %v675_v35 = vpop.f32.mrb[5].mxu1  ;;  %v590_v36 = vpop.f32.mrb[27].mxu0 }
 0x1f2   :  { %1074 = vtanh.f32 %v588_v34 }
 0x1f3   :  { %v1065_v37 = vpop.eup %1064 }
 0x1f4   :  { %v1067_v38 = vpop.eup %1066  ;;  %810 = vst.msk [vmem:[%s1767_s4 + $0x88] sm:$0xff] %vm308_vm5, %v1065_v37  ;;  %v678_v39 = vpop.f32.mrb[6].mxu1 }
 0x1f5   :  { %v593_v40 = vpop.f32.mrb[28].mxu0  ;;  %793 = vst.msk [vmem:[%s1767_s4] sm:$0xff] %vm308_vm5, %v1067_v38  ;;  %1076 = vtanh.f32 %v678_v39  ;;  %v680_v41 = vpop.f32.mrb[7].mxu1 }
 0x1f6   :  { %v595_v42 = vpop.f32.mrb[29].mxu0  ;;  %1078 = vtanh.f32 %v593_v40 }
 0x1f7   :  { %v1069_v43 = vpop.eup %1068 }
 0x1f8   :  { %v1071_v44 = vpop.eup %1070  ;;  %811 = vst.msk [vmem:[%s1767_s4 + $0x90] sm:$0xff] %vm308_vm5, %v1069_v43  ;;  %v683_v45 = vpop.f32.mrb[8].mxu1 }
 0x1f9   :  { %v598_v46 = vpop.f32.mrb[30].mxu0  ;;  %794 = vst.msk [vmem:[%s1767_s4 + $0x8] sm:$0xff] %vm308_vm5, %v1071_v44  ;;  %1080 = vtanh.f32 %v683_v45  ;;  %v685_v47 = vpop.f32.mrb[9].mxu1 }
 0x1fa   :  { %v600_v48 = vpop.f32.mrb[31].mxu0  ;;  %1082 = vtanh.f32 %v598_v46 }
 0x1fb   :  { %v1073_v49 = vpop.eup %1072 }
 0x1fc   :  { %v1075_v50 = vpop.eup %1074  ;;  %812 = vst.msk [vmem:[%s1767_s4 + $0x98] sm:$0xff] %vm308_vm5, %v1073_v49  ;;  %v688_v51 = vpop.f32.mrb[10].mxu1 }
 0x1fd   :  { %v603_v52 = vpop.f32.mrb[32].mxu0  ;;  %795 = vst.msk [vmem:[%s1767_s4 + $0x10] sm:$0xff] %vm308_vm5, %v1075_v50  ;;  %1084 = vtanh.f32 %v688_v51  ;;  %v690_v53 = vpop.f32.mrb[11].mxu1 }
 0x1fe   :  { %v605_v54 = vpop.f32.mrb[33].mxu0  ;;  %1086 = vtanh.f32 %v603_v52 }
 0x1ff   :  { %v1077_v55 = vpop.eup %1076 }
 0x200   :  { %v1079_v56 = vpop.eup %1078  ;;  %813 = vst.msk [vmem:[%s1767_s4 + $0xa0] sm:$0xff] %vm308_vm5, %v1077_v55  ;;  %v693_v57 = vpop.f32.mrb[12].mxu1 }
 0x201   :  { %v608_v58 = vpop.f32.mrb[34].mxu0  ;;  %796 = vst.msk [vmem:[%s1767_s4 + $0x18] sm:$0xff] %vm308_vm5, %v1079_v56  ;;  %1088 = vtanh.f32 %v693_v57  ;;  %v695_v59 = vpop.f32.mrb[13].mxu1 }
 0x202   :  { %v610_v60 = vpop.f32.mrb[35].mxu0  ;;  %1090 = vtanh.f32 %v608_v58 }
 0x203   :  { %v1081_v61 = vpop.eup %1080 }
 0x204   :  { %v1083_v62 = vpop.eup %1082  ;;  %814 = vst.msk [vmem:[%s1767_s4 + $0xa8] sm:$0xff] %vm308_vm5, %v1081_v61  ;;  %v698_v63 = vpop.f32.mrb[14].mxu1 }
 0x205   :  { %v613_v0 = vpop.f32.mrb[36].mxu0  ;;  %797 = vst.msk [vmem:[%s1767_s4 + $0x20] sm:$0xff] %vm308_vm5, %v1083_v62  ;;  %1092 = vtanh.f32 %v698_v63  ;;  %v700_v1 = vpop.f32.mrb[15].mxu1 }
 0x206   :  { %v615_v2 = vpop.f32.mrb[37].mxu0  ;;  %1094 = vtanh.f32 %v613_v0 }
 0x207   :  { %v1085_v3 = vpop.eup %1084 }
 0x208   :  { %v1087_v4 = vpop.eup %1086  ;;  %815 = vst.msk [vmem:[%s1767_s4 + $0xb0] sm:$0xff] %vm308_vm5, %v1085_v3  ;;  %v703_v5 = vpop.f32.mrb[16].mxu1 }
 0x209   :  { %v618_v6 = vpop.f32.mrb[38].mxu0  ;;  %798 = vst.msk [vmem:[%s1767_s4 + $0x28] sm:$0xff] %vm308_vm5, %v1087_v4  ;;  %1096 = vtanh.f32 %v703_v5  ;;  %v705_v7 = vpop.f32.mrb[17].mxu1 }
 0x20a   :  { %v620_v8 = vpop.f32.mrb[39].mxu0  ;;  %1098 = vtanh.f32 %v618_v6 }
 0x20b   :  { %v1089_v9 = vpop.eup %1088 }
 0x20c   :  { %v1091_v10 = vpop.eup %1090  ;;  %816 = vst.msk [vmem:[%s1767_s4 + $0xb8] sm:$0xff] %vm308_vm5, %v1089_v9  ;;  %v708_v11 = vpop.f32.mrb[18].mxu1 }
 0x20d   :  { %v623_v12 = vpop.f32.mrb[40].mxu0  ;;  %799 = vst.msk [vmem:[%s1767_s4 + $0x30] sm:$0xff] %vm308_vm5, %v1091_v10  ;;  %1100 = vtanh.f32 %v708_v11  ;;  %v710_v13 = vpop.f32.mrb[19].mxu1 }
 0x20e   :  { %v625_v14 = vpop.f32.mrb[41].mxu0  ;;  %1102 = vtanh.f32 %v623_v12 }
 0x20f   :  { %v1093_v15 = vpop.eup %1092 }
 0x210   :  { %v1095_v16 = vpop.eup %1094  ;;  %817 = vst.msk [vmem:[%s1767_s4 + $0xc0] sm:$0xff] %vm308_vm5, %v1093_v15  ;;  %v713_v17 = vpop.f32.mrb[20].mxu1 }
 0x211   :  { %v628_v18 = vpop.f32.mrb[42].mxu0  ;;  %800 = vst.msk [vmem:[%s1767_s4 + $0x38] sm:$0xff] %vm308_vm5, %v1095_v16  ;;  %1104 = vtanh.f32 %v713_v17  ;;  %v715_v19 = vpop.f32.mrb[21].mxu1 }
 0x212   :  { %v630_v20 = vpop.f32.mrb[43].mxu0  ;;  %1106 = vtanh.f32 %v628_v18 }
 0x213   :  { %v1097_v21 = vpop.eup %1096 }
 0x214   :  { %v1099_v22 = vpop.eup %1098  ;;  %818 = vst.msk [vmem:[%s1767_s4 + $0xc8] sm:$0xff] %vm308_vm5, %v1097_v21  ;;  %v718_v23 = vpop.f32.mrb[22].mxu1 }
 0x215   :  { %v633_v24 = vpop.f32.mrb[44].mxu0  ;;  %801 = vst.msk [vmem:[%s1767_s4 + $0x40] sm:$0xff] %vm308_vm5, %v1099_v22  ;;  %1108 = vtanh.f32 %v718_v23  ;;  %v720_v25 = vpop.f32.mrb[23].mxu1 }
 0x216   :  { %v635_v26 = vpop.f32.mrb[45].mxu0  ;;  %1110 = vtanh.f32 %v633_v24 }
 0x217   :  { %v1101_v27 = vpop.eup %1100 }
 0x218   :  { %v1103_v28 = vpop.eup %1102  ;;  %819 = vst.msk [vmem:[%s1767_s4 + $0xd0] sm:$0xff] %vm308_vm5, %v1101_v27  ;;  %v723_v29 = vpop.f32.mrb[24].mxu1 }
 0x219   :  { %v638_v30 = vpop.f32.mrb[46].mxu0  ;;  %802 = vst.msk [vmem:[%s1767_s4 + $0x48] sm:$0xff] %vm308_vm5, %v1103_v28  ;;  %1112 = vtanh.f32 %v723_v29  ;;  %v725_v31 = vpop.f32.mrb[25].mxu1 }
 0x21a   :  { %v640_v32 = vpop.f32.mrb[47].mxu0  ;;  %1114 = vtanh.f32 %v638_v30 }
 0x21b   :  { %v1105_v33 = vpop.eup %1104 }
 0x21c   :  { %v1107_v34 = vpop.eup %1106  ;;  %820 = vst.msk [vmem:[%s1767_s4 + $0xd8] sm:$0xff] %vm308_vm5, %v1105_v33  ;;  %v728_v35 = vpop.f32.mrb[26].mxu1 }
 0x21d   :  { %v643_v36 = vpop.f32.mrb[48].mxu0  ;;  %803 = vst.msk [vmem:[%s1767_s4 + $0x50] sm:$0xff] %vm308_vm5, %v1107_v34  ;;  %1116 = vtanh.f32 %v728_v35  ;;  %v730_v37 = vpop.f32.mrb[27].mxu1 }
 0x21e   :  { %v645_v38 = vpop.f32.mrb[49].mxu0  ;;  %1118 = vtanh.f32 %v643_v36 }
 0x21f   :  { %v1109_v39 = vpop.eup %1108 }
 0x220   :  { %v1111_v40 = vpop.eup %1110  ;;  %821 = vst.msk [vmem:[%s1767_s4 + $0xe0] sm:$0xff] %vm308_vm5, %v1109_v39  ;;  %v733_v41 = vpop.f32.mrb[28].mxu1 }
 0x221   :  { %v648_v42 = vpop.f32.mrb[50].mxu0  ;;  %804 = vst.msk [vmem:[%s1767_s4 + $0x58] sm:$0xff] %vm308_vm5, %v1111_v40  ;;  %1120 = vtanh.f32 %v733_v41  ;;  %v735_v43 = vpop.f32.mrb[29].mxu1 }
 0x222   :  { %v650_v44 = vpop.f32.mrb[51].mxu0  ;;  %1122 = vtanh.f32 %v648_v42 }
 0x223   :  { %v1113_v45 = vpop.eup %1112 }
 0x224   :  { %v1115_v46 = vpop.eup %1114  ;;  %822 = vst.msk [vmem:[%s1767_s4 + $0xe8] sm:$0xff] %vm308_vm5, %v1113_v45  ;;  %v738_v47 = vpop.f32.mrb[30].mxu1 }
 0x225   :  { %v653_v48 = vpop.f32.mrb[52].mxu0  ;;  %805 = vst.msk [vmem:[%s1767_s4 + $0x60] sm:$0xff] %vm308_vm5, %v1115_v46  ;;  %1124 = vtanh.f32 %v738_v47  ;;  %v740_v49 = vpop.f32.mrb[31].mxu1 }
 0x226   :  { %v655_v50 = vpop.f32.mrb[53].mxu0  ;;  %1126 = vtanh.f32 %v653_v48 }
 0x227   :  { %v1117_v51 = vpop.eup %1116 }
 0x228   :  { %v1119_v52 = vpop.eup %1118  ;;  %823 = vst.msk [vmem:[%s1767_s4 + $0xf0] sm:$0xff] %vm308_vm5, %v1117_v51  ;;  %v743_v53 = vpop.f32.mrb[32].mxu1 }
 0x229   :  { %v658_v54 = vpop.f32.mrb[54].mxu0  ;;  %806 = vst.msk [vmem:[%s1767_s4 + $0x68] sm:$0xff] %vm308_vm5, %v1119_v52  ;;  %1128 = vtanh.f32 %v743_v53  ;;  %v745_v55 = vpop.f32.mrb[33].mxu1 }
 0x22a   :  { %v660_v56 = vpop.f32.mrb[55].mxu0  ;;  %1130 = vtanh.f32 %v658_v54 }
 0x22b   :  { %v1121_v57 = vpop.eup %1120 }
 0x22c   :  { %v1123_v58 = vpop.eup %1122  ;;  %824 = vst.msk [vmem:[%s1767_s4 + $0xf8] sm:$0xff] %vm308_vm5, %v1121_v57  ;;  %v748_v59 = vpop.f32.mrb[34].mxu1 }
 0x22d   :  { %807 = vst.msk [vmem:[%s1767_s4 + $0x70] sm:$0xff] %vm308_vm5, %v1123_v58  ;;  %1132 = vtanh.f32 %v748_v59  ;;  %v750_v60 = vpop.f32.mrb[35].mxu1 }
 0x22f   :  { %v1125_v61 = vpop.eup %1124 }
 0x230   :  { %v1127_v62 = vpop.eup %1126  ;;  %825 = vst.msk [vmem:[%s1767_s4 + $0x100] sm:$0xff] %vm308_vm5, %v1125_v61  ;;  %v753_v63 = vpop.f32.mrb[36].mxu1 }
 0x231   :  { %808 = vst.msk [vmem:[%s1767_s4 + $0x78] sm:$0xff] %vm308_vm5, %v1127_v62  ;;  %1134 = vtanh.f32 %v753_v63  ;;  %v755_v0 = vpop.f32.mrb[37].mxu1 }
 0x233   :  { %v1129_v1 = vpop.eup %1128 }
 0x234   :  { %v1131_v2 = vpop.eup %1130  ;;  %826 = vst.msk [vmem:[%s1767_s4 + $0x108] sm:$0xff] %vm308_vm5, %v1129_v1 }
 0x235   :  { %809 = vst.msk [vmem:[%s1767_s4 + $0x80] sm:$0xff] %vm308_vm5, %v1131_v2 }
 0x237   :  { %v1133_v3 = vpop.eup %1132 }
 0x238   :  { %827 = vst.msk [vmem:[%s1767_s4 + $0x110] sm:$0xff] %vm308_vm5, %v1133_v3 }
 0x23b   :  { %v1135_v4 = vpop.eup %1134 }
 0x23c   :  { %828 = vst.msk [vmem:[%s1767_s4 + $0x118] sm:$0xff] %vm308_vm5, %v1135_v4 }

</bundles_post_ra>
